<compile_context>
chip_gen: v7x
topology: tpu7x:2x2x1
jax: 0.10.0
libtpu: 0.0.40
codegen_flags: <defaults>
</compile_context>

<pallas_src>
import functools

import jax
import jax.numpy as jnp
from jax.experimental import pallas as pl
from jax.experimental.pallas import tpu as pltpu

IMG_SIZE = 32
IN_DIM = IMG_SIZE * IMG_SIZE     # 1024
HIDDEN = 512
LANE = 128                       # TPU lane width; latent is padded to a multiple of this
MAX_TB = 512                     # max batch-tile rows per grid step
VMEM_LIMIT_BYTES = 48 * 1024 * 1024


def _round_up(x, m):
    return ((x + m - 1) // m) * m


def _compute_tile(batch):
    """Batch tile: >=2 grid steps when possible (v7x megacore), capped at MAX_TB."""
    if batch <= 8:
        return batch                         # full-array block for tiny batches
    half = -(-batch // 2)                    # cdiv(batch, 2)
    return min(MAX_TB, _round_up(half, 8))   # sublane-aligned


def _vae_forward_kernel(x_ref, eps_ref,
                        w1_ref, b1_ref,
                        w2_ref, b2_ref,      # fused, lane-padded [w_mu || w_logvar]
                        w3_ref, b3_ref,
                        w4_ref, b4_ref,
                        recon_ref, mulogvar_ref):
    x = x_ref[...]                 # (TB, 1024) f32
    eps = eps_ref[...]             # (TB, LP)   f32 (zero-padded past latent_dim)
    lp = eps.shape[1]              # lane-aligned latent padding (multiple of 128)

    # ---- encode: h1 = relu(x @ W1 + b1) ---- (bf16 MXU operands, f32 accum)
    h1 = jnp.dot(x.astype(jnp.bfloat16), w1_ref[...],
                 preferred_element_type=jnp.float32) + b1_ref[...]
    h1 = jnp.maximum(h1, 0.0)

    # ---- fused mu/logvar projection, kept in f32 (tiny matmul, exp() fidelity) ----
    mulogvar = jnp.dot(h1, w2_ref[...],
                       preferred_element_type=jnp.float32) + b2_ref[...]
    mu = mulogvar[:, :lp]          # lane-aligned slices -> free views
    logvar = mulogvar[:, lp:]

    # ---- reparameterize (f32; padded cols have mu=logvar=eps=0 -> z=0) ----
    z = mu + eps * jnp.exp(0.5 * logvar)

    # ---- decode ----
    h3 = jnp.dot(z.astype(jnp.bfloat16), w3_ref[...],
                 preferred_element_type=jnp.float32) + b3_ref[...]
    h3 = jnp.maximum(h3, 0.0)
    recon = jnp.tanh(jnp.dot(h3.astype(jnp.bfloat16), w4_ref[...],
                             preferred_element_type=jnp.float32) + b4_ref[...])

    recon_ref[...] = recon
    mulogvar_ref[...] = mulogvar


def prepare_params(params, latent_dim):
    """ONE-TIME weight prep (do not run per forward): bf16 cast of the large
    matmul weights, fused + lane-padded mu/logvar projection (f32), and
    lane-padded decode contraction."""
    lp = _round_up(latent_dim, LANE)

    w2 = jnp.zeros((HIDDEN, 2 * lp), jnp.float32)
    w2 = w2.at[:, :latent_dim].set(params["w21"])
    w2 = w2.at[:, lp:lp + latent_dim].set(params["w22"])
    b2 = jnp.zeros((1, 2 * lp), jnp.float32)
    b2 = b2.at[:, :latent_dim].set(params["b21"])
    b2 = b2.at[:, lp:lp + latent_dim].set(params["b22"])

    w3 = jnp.zeros((lp, HIDDEN), jnp.float32).at[:latent_dim, :].set(params["w3"])

    return dict(
        w1=params["w1"].astype(jnp.bfloat16), b1=params["b1"],
        w2=w2, b2=b2,
        w3=w3.astype(jnp.bfloat16), b3=params["b3"],
        w4=params["w4"].astype(jnp.bfloat16), b4=params["b4"],
    )


@functools.partial(jax.jit, static_argnames=("latent_dim",))
def vae_forward(x_flat, eps, prep, latent_dim):
    """x_flat: (B, 1024) f32, eps: (B, latent_dim) f32, prep: prepare_params() output.
    Returns (recon, mu, logvar)."""
    B = x_flat.shape[0]
    lp = prep["w3"].shape[0]                     # lane-padded latent size

    eps_pad = jnp.zeros((B, lp), jnp.float32).at[:, :latent_dim].set(eps)

    tb = _compute_tile(B)
    grid = (pl.cdiv(B, tb),)

    def batch_tile(cols):
        return pl.BlockSpec((tb, cols), lambda i: (i, 0))

    def resident(arr):
        # Whole array, same block every grid step -> fetched once, stays in VMEM.
        # Single-buffered: the second pipeline buffer is never used.
        return pl.BlockSpec(arr.shape, lambda i: (0, 0),
                            pipeline_mode=pl.Buffered(1))

    in_specs = [
        batch_tile(IN_DIM),       # x
        batch_tile(lp),           # eps (lane-padded)
        resident(prep["w1"]), resident(prep["b1"]),
        resident(prep["w2"]), resident(prep["b2"]),
        resident(prep["w3"]), resident(prep["b3"]),
        resident(prep["w4"]), resident(prep["b4"]),
    ]
    out_specs = (
        batch_tile(IN_DIM),       # recon
        batch_tile(2 * lp),       # [mu || logvar], lane-padded
    )
    out_shapes = (
        jax.ShapeDtypeStruct((B, IN_DIM), jnp.float32),
        jax.ShapeDtypeStruct((B, 2 * lp), jnp.float32),
    )

    recon, mulogvar = pl.pallas_call(
        _vae_forward_kernel,
        out_shape=out_shapes,
        grid=grid,
        in_specs=in_specs,
        out_specs=out_specs,
        compiler_params=pltpu.CompilerParams(
            dimension_semantics=("parallel",),
            vmem_limit_bytes=VMEM_LIMIT_BYTES),
    )(x_flat, eps_pad,
      prep["w1"], prep["b1"], prep["w2"], prep["b2"],
      prep["w3"], prep["b3"], prep["w4"], prep["b4"])

    mu = mulogvar[:, :latent_dim]
    logvar = mulogvar[:, lp:lp + latent_dim]
    return recon, mu, logvar


def init_params(key, latent_dim):
    """Deterministic init mimicking torch nn.Linear default (uniform +/- 1/sqrt(fan_in)).
    Weights stored transposed: (in_features, out_features)."""
    def linear(k, fan_in, fan_out):
        kw, kb = jax.random.split(k)
        bound = 1.0 / jnp.sqrt(fan_in)
        w = jax.random.uniform(kw, (fan_in, fan_out), jnp.float32, -bound, bound)
        b = jax.random.uniform(kb, (1, fan_out), jnp.float32, -bound, bound)
        return w, b

    ks = jax.random.split(key, 5)
    w1, b1 = linear(ks[0], IN_DIM, HIDDEN)
    w21, b21 = linear(ks[1], HIDDEN, latent_dim)
    w22, b22 = linear(ks[2], HIDDEN, latent_dim)
    w3, b3 = linear(ks[3], latent_dim, HIDDEN)
    w4, b4 = linear(ks[4], HIDDEN, IN_DIM)
    return dict(w1=w1, b1=b1, w21=w21, b21=b21, w22=w22, b22=b22,
                w3=w3, b3=b3, w4=w4, b4=b4)


def reference_forward(x_flat, eps, p):
    """Pure-JAX reference mirroring the kernel's precision choices:
    bf16-operand / f32-acc dots for fc1/fc3/fc4, f32 dot for mu/logvar."""
    def bdot(a, w):
        return jnp.dot(a.astype(jnp.bfloat16), w.astype(jnp.bfloat16),
                       preferred_element_type=jnp.float32)
    h1 = jnp.maximum(bdot(x_flat, p["w1"]) + p["b1"], 0.0)
    mu = jnp.dot(h1, p["w21"], preferred_element_type=jnp.float32) + p["b21"]
    logvar = jnp.dot(h1, p["w22"], preferred_element_type=jnp.float32) + p["b22"]
    z = mu + eps * jnp.exp(0.5 * logvar)
    h3 = jnp.maximum(bdot(z, p["w3"]) + p["b3"], 0.0)
    recon = jnp.tanh(bdot(h3, p["w4"]) + p["b4"])
    return recon, mu, logvar


if __name__ == "__main__":
    key = jax.random.PRNGKey(0)
    k_param, k_x, k_eps, k_x2, k_eps2 = jax.random.split(key, 5)

    latent_dim = 16
    params = init_params(k_param, latent_dim)
    prep = prepare_params(params, latent_dim)   # one-time weight prep

    def run_and_check(batch, kx, ke):
        # Input in torch layout (N, C, H, W) with C=1, flattened like x.view(-1, 1024).
        x_nchw = jax.random.normal(kx, (batch, 1, IMG_SIZE, IMG_SIZE), jnp.float32)
        x_flat = x_nchw.reshape(-1, IN_DIM)
        # eps ~ N(0,1) generated outside the kernel (matches torch.randn_like semantics).
        eps = jax.random.normal(ke, (batch, latent_dim), jnp.float32)

        recon, mu, logvar = vae_forward(x_flat, eps, prep, latent_dim)
        jax.block_until_ready((recon, mu, logvar))

        r_ref, mu_ref, lv_ref = reference_forward(x_flat, eps, params)
        assert recon.shape == (batch, IN_DIM)
        assert mu.shape == (batch, latent_dim) and logvar.shape == (batch, latent_dim)
        assert jnp.allclose(recon, r_ref, atol=2e-2, rtol=2e-2), "recon mismatch"
        assert jnp.allclose(mu, mu_ref, atol=2e-2, rtol=2e-2), "mu mismatch"
        assert jnp.allclose(logvar, lv_ref, atol=2e-2, rtol=2e-2), "logvar mismatch"

    run_and_check(2, k_x, k_eps)      # single grid step (B <= 8)
    run_and_check(16, k_x2, k_eps2)   # two grid steps (exercises the batch-tiled pipeline)

    print("KERNEL_OK")
</pallas_src>

<mosaic_0001>
module attributes {stable_mosaic.version = 11 : i64} {
  func.func @_vae_forward_kernel(%arg0: i32, %arg1: memref<2x1024xf32, #tpu.memory_space<vmem>>, %arg2: memref<2x128xf32, #tpu.memory_space<vmem>>, %arg3: memref<1024x512xbf16, #tpu.memory_space<vmem>>, %arg4: memref<1x512xf32, #tpu.memory_space<vmem>>, %arg5: memref<512x256xf32, #tpu.memory_space<vmem>>, %arg6: memref<1x256xf32, #tpu.memory_space<vmem>>, %arg7: memref<128x512xbf16, #tpu.memory_space<vmem>>, %arg8: memref<1x512xf32, #tpu.memory_space<vmem>>, %arg9: memref<512x1024xbf16, #tpu.memory_space<vmem>>, %arg10: memref<1x1024xf32, #tpu.memory_space<vmem>>, %arg11: memref<2x1024xf32, #tpu.memory_space<vmem>>, %arg12: memref<2x256xf32, #tpu.memory_space<vmem>>) attributes {dimension_semantics = [#tpu.dimension_semantics<parallel>], iteration_bounds = array<i64: 1>, scalar_prefetch = 0 : i64, scratch_operands = 0 : i64, tpu.core_type = #tpu.core_type<tc>, window_params = [{transform_indices = @transform_0, window_bounds = array<i64: 2, 1024>}, {transform_indices = @transform_1, window_bounds = array<i64: 2, 128>}, {pipeline_mode = #tpu.pipeline_mode<synchronous>, transform_indices = @transform_2, window_bounds = array<i64: 1024, 512>}, {pipeline_mode = #tpu.pipeline_mode<synchronous>, transform_indices = @transform_3, window_bounds = array<i64: 1, 512>}, {pipeline_mode = #tpu.pipeline_mode<synchronous>, transform_indices = @transform_4, window_bounds = array<i64: 512, 256>}, {pipeline_mode = #tpu.pipeline_mode<synchronous>, transform_indices = @transform_5, window_bounds = array<i64: 1, 256>}, {pipeline_mode = #tpu.pipeline_mode<synchronous>, transform_indices = @transform_6, window_bounds = array<i64: 128, 512>}, {pipeline_mode = #tpu.pipeline_mode<synchronous>, transform_indices = @transform_7, window_bounds = array<i64: 1, 512>}, {pipeline_mode = #tpu.pipeline_mode<synchronous>, transform_indices = @transform_8, window_bounds = array<i64: 512, 1024>}, {pipeline_mode = #tpu.pipeline_mode<synchronous>, transform_indices = @transform_9, window_bounds = array<i64: 1, 1024>}, {transform_indices = @transform_10, window_bounds = array<i64: 2, 1024>}, {transform_indices = @transform_11, window_bounds = array<i64: 2, 256>}]} {
    %c0 = arith.constant 0 : index
    %c0_0 = arith.constant 0 : index
    %0 = vector.load %arg1[%c0, %c0_0] : memref<2x1024xf32, #tpu.memory_space<vmem>>, vector<2x1024xf32>
    %c0_1 = arith.constant 0 : index
    %c0_2 = arith.constant 0 : index
    %1 = vector.load %arg2[%c0_1, %c0_2] : memref<2x128xf32, #tpu.memory_space<vmem>>, vector<2x128xf32>
    %2 = arith.truncf %0 : vector<2x1024xf32> to vector<2x1024xbf16>
    %c0_3 = arith.constant 0 : index
    %c0_4 = arith.constant 0 : index
    %3 = vector.load %arg3[%c0_3, %c0_4] : memref<1024x512xbf16, #tpu.memory_space<vmem>>, vector<1024x512xbf16>
    %cst = arith.constant dense<0.000000e+00> : vector<2x512xf32>
    %4 = tpu.matmul %2, %3, %cst {dimension_numbers = #tpu.dot_dimension_numbers<[1], [0], [0], [1], [0, 0, 1, 1], [], []>} : vector<2x1024xbf16>, vector<1024x512xbf16>, vector<2x512xf32> -> vector<2x512xf32>
    %c0_5 = arith.constant 0 : index
    %c0_6 = arith.constant 0 : index
    %5 = vector.load %arg4[%c0_5, %c0_6] : memref<1x512xf32, #tpu.memory_space<vmem>>, vector<1x512xf32>
    %6 = vector.broadcast %5 : vector<1x512xf32> to vector<2x512xf32>
    %7 = arith.addf %4, %6 : vector<2x512xf32>
    %cst_7 = arith.constant 0.000000e+00 : f32
    %8 = vector.broadcast %cst_7 : f32 to vector<2x512xf32>
    %9 = arith.maximumf %7, %8 : vector<2x512xf32>
    %c0_8 = arith.constant 0 : index
    %c0_9 = arith.constant 0 : index
    %10 = vector.load %arg5[%c0_8, %c0_9] : memref<512x256xf32, #tpu.memory_space<vmem>>, vector<512x256xf32>
    %cst_10 = arith.constant dense<0.000000e+00> : vector<2x256xf32>
    %11 = tpu.matmul %9, %10, %cst_10 {dimension_numbers = #tpu.dot_dimension_numbers<[1], [0], [0], [1], [0, 0, 1, 1], [], []>} : vector<2x512xf32>, vector<512x256xf32>, vector<2x256xf32> -> vector<2x256xf32>
    %c0_11 = arith.constant 0 : index
    %c0_12 = arith.constant 0 : index
    %12 = vector.load %arg6[%c0_11, %c0_12] : memref<1x256xf32, #tpu.memory_space<vmem>>, vector<1x256xf32>
    %13 = vector.broadcast %12 : vector<1x256xf32> to vector<2x256xf32>
    %14 = arith.addf %11, %13 : vector<2x256xf32>
    %15 = vector.extract_strided_slice %14 {offsets = [0, 0], sizes = [2, 128], strides = [1, 1]} : vector<2x256xf32> to vector<2x128xf32>
    %16 = vector.extract_strided_slice %14 {offsets = [0, 128], sizes = [2, 128], strides = [1, 1]} : vector<2x256xf32> to vector<2x128xf32>
    %cst_13 = arith.constant 5.000000e-01 : f32
    %17 = vector.broadcast %cst_13 : f32 to vector<2x128xf32>
    %18 = arith.mulf %17, %16 : vector<2x128xf32>
    %19 = math.exp %18 : vector<2x128xf32>
    %20 = arith.mulf %1, %19 : vector<2x128xf32>
    %21 = arith.addf %15, %20 : vector<2x128xf32>
    %22 = arith.truncf %21 : vector<2x128xf32> to vector<2x128xbf16>
    %c0_14 = arith.constant 0 : index
    %c0_15 = arith.constant 0 : index
    %23 = vector.load %arg7[%c0_14, %c0_15] : memref<128x512xbf16, #tpu.memory_space<vmem>>, vector<128x512xbf16>
    %cst_16 = arith.constant dense<0.000000e+00> : vector<2x512xf32>
    %24 = tpu.matmul %22, %23, %cst_16 {dimension_numbers = #tpu.dot_dimension_numbers<[1], [0], [0], [1], [0, 0, 1, 1], [], []>} : vector<2x128xbf16>, vector<128x512xbf16>, vector<2x512xf32> -> vector<2x512xf32>
    %c0_17 = arith.constant 0 : index
    %c0_18 = arith.constant 0 : index
    %25 = vector.load %arg8[%c0_17, %c0_18] : memref<1x512xf32, #tpu.memory_space<vmem>>, vector<1x512xf32>
    %26 = vector.broadcast %25 : vector<1x512xf32> to vector<2x512xf32>
    %27 = arith.addf %24, %26 : vector<2x512xf32>
    %cst_19 = arith.constant 0.000000e+00 : f32
    %28 = vector.broadcast %cst_19 : f32 to vector<2x512xf32>
    %29 = arith.maximumf %27, %28 : vector<2x512xf32>
    %30 = arith.truncf %29 : vector<2x512xf32> to vector<2x512xbf16>
    %c0_20 = arith.constant 0 : index
    %c0_21 = arith.constant 0 : index
    %31 = vector.load %arg9[%c0_20, %c0_21] : memref<512x1024xbf16, #tpu.memory_space<vmem>>, vector<512x1024xbf16>
    %cst_22 = arith.constant dense<0.000000e+00> : vector<2x1024xf32>
    %32 = tpu.matmul %30, %31, %cst_22 {dimension_numbers = #tpu.dot_dimension_numbers<[1], [0], [0], [1], [0, 0, 1, 1], [], []>} : vector<2x512xbf16>, vector<512x1024xbf16>, vector<2x1024xf32> -> vector<2x1024xf32>
    %c0_23 = arith.constant 0 : index
    %c0_24 = arith.constant 0 : index
    %33 = vector.load %arg10[%c0_23, %c0_24] : memref<1x1024xf32, #tpu.memory_space<vmem>>, vector<1x1024xf32>
    %34 = vector.broadcast %33 : vector<1x1024xf32> to vector<2x1024xf32>
    %35 = arith.addf %32, %34 : vector<2x1024xf32>
    %36 = math.tanh %35 : vector<2x1024xf32>
    %c0_25 = arith.constant 0 : index
    %c0_26 = arith.constant 0 : index
    %37 = vector.load %arg11[%c0_25, %c0_26] : memref<2x1024xf32, #tpu.memory_space<vmem>>, vector<2x1024xf32>
    tpu.vector_store %arg11[%c0_25, %c0_26], %36 {strides = array<i32>} : memref<2x1024xf32, #tpu.memory_space<vmem>>, vector<2x1024xf32>,
    %c0_27 = arith.constant 0 : index
    %c0_28 = arith.constant 0 : index
    %38 = vector.load %arg12[%c0_27, %c0_28] : memref<2x256xf32, #tpu.memory_space<vmem>>, vector<2x256xf32>
    tpu.vector_store %arg12[%c0_27, %c0_28], %14 {strides = array<i32>} : memref<2x256xf32, #tpu.memory_space<vmem>>, vector<2x256xf32>,
    return
  }
  func.func @transform_0(%arg0: i32) -> (i32, i32) {
    %c0_i32 = arith.constant 0 : i32
    %c0_i32_0 = arith.constant 0 : i32
    return %arg0, %c0_i32 : i32, i32
  }
  func.func @transform_1(%arg0: i32) -> (i32, i32) {
    %c0_i32 = arith.constant 0 : i32
    %c0_i32_0 = arith.constant 0 : i32
    return %arg0, %c0_i32 : i32, i32
  }
  func.func @transform_2(%arg0: i32) -> (i32, i32) {
    %c0_i32 = arith.constant 0 : i32
    %c0_i32_0 = arith.constant 0 : i32
    %c0_i32_1 = arith.constant 0 : i32
    return %c0_i32, %c0_i32_0 : i32, i32
  }
  func.func @transform_3(%arg0: i32) -> (i32, i32) {
    %c0_i32 = arith.constant 0 : i32
    %c0_i32_0 = arith.constant 0 : i32
    %c0_i32_1 = arith.constant 0 : i32
    return %c0_i32, %c0_i32_0 : i32, i32
  }
  func.func @transform_4(%arg0: i32) -> (i32, i32) {
    %c0_i32 = arith.constant 0 : i32
    %c0_i32_0 = arith.constant 0 : i32
    %c0_i32_1 = arith.constant 0 : i32
    return %c0_i32, %c0_i32_0 : i32, i32
  }
  func.func @transform_5(%arg0: i32) -> (i32, i32) {
    %c0_i32 = arith.constant 0 : i32
    %c0_i32_0 = arith.constant 0 : i32
    %c0_i32_1 = arith.constant 0 : i32
    return %c0_i32, %c0_i32_0 : i32, i32
  }
  func.func @transform_6(%arg0: i32) -> (i32, i32) {
    %c0_i32 = arith.constant 0 : i32
    %c0_i32_0 = arith.constant 0 : i32
    %c0_i32_1 = arith.constant 0 : i32
    return %c0_i32, %c0_i32_0 : i32, i32
  }
  func.func @transform_7(%arg0: i32) -> (i32, i32) {
    %c0_i32 = arith.constant 0 : i32
    %c0_i32_0 = arith.constant 0 : i32
    %c0_i32_1 = arith.constant 0 : i32
    return %c0_i32, %c0_i32_0 : i32, i32
  }
  func.func @transform_8(%arg0: i32) -> (i32, i32) {
    %c0_i32 = arith.constant 0 : i32
    %c0_i32_0 = arith.constant 0 : i32
    %c0_i32_1 = arith.constant 0 : i32
    return %c0_i32, %c0_i32_0 : i32, i32
  }
  func.func @transform_9(%arg0: i32) -> (i32, i32) {
    %c0_i32 = arith.constant 0 : i32
    %c0_i32_0 = arith.constant 0 : i32
    %c0_i32_1 = arith.constant 0 : i32
    return %c0_i32, %c0_i32_0 : i32, i32
  }
  func.func @transform_10(%arg0: i32) -> (i32, i32) {
    %c0_i32 = arith.constant 0 : i32
    %c0_i32_0 = arith.constant 0 : i32
    return %arg0, %c0_i32 : i32, i32
  }
  func.func @transform_11(%arg0: i32) -> (i32, i32) {
    %c0_i32 = arith.constant 0 : i32
    %c0_i32_0 = arith.constant 0 : i32
    return %arg0, %c0_i32 : i32, i32
  }
}

</mosaic_0001>

<bundles_post_ra>
// kernel: vae_forward.1
= control target key start
LH: loop header
LB: loop body
LE: loop exit
PB: predicated region body
PF: predicated region fallthrough
CT: control target
= control target key end

     0   :  { %17 = vsyncpa [#allocation3], 0  ;;  %s6249_s0 = inlined_call_operand.hbm [shape: f32[2,1024], index: 0, kind: input, shape index: {}]   ;;  %s6250_s1 = inlined_call_operand.vmem [shape: f32[2,128], index: 1, kind: input, shape index: {}]   ;;  %s6251_s2 = inlined_call_operand.hbm [shape: bf16[1024,512], index: 2, kind: input, shape index: {}]   ;;  %s6252_s3 = inlined_call_operand.vmem [shape: f32[1,512], index: 3, kind: input, shape index: {}]   ;;  %s6253_s4 = inlined_call_operand.hbm [shape: f32[512,256], index: 4, kind: input, shape index: {}]   ;;  %s6254_s5 = inlined_call_operand.vmem [shape: f32[1,256], index: 5, kind: input, shape index: {}]   ;;  %s6255_s6 = inlined_call_operand.hbm [shape: bf16[128,512], index: 6, kind: input, shape index: {}]   ;;  %s6256_s7 = inlined_call_operand.vmem [shape: f32[1,512], index: 7, kind: input, shape index: {}]   ;;  %s6257_s8 = inlined_call_operand.hbm [shape: bf16[512,1024], index: 8, kind: input, shape index: {}]   ;;  %s6258_s9 = inlined_call_operand.vmem [shape: f32[1,1024], index: 9, kind: input, shape index: {}]   ;;  %s6259_s10 = inlined_call_operand.hbm [shape: f32[2,1024], index: 10, kind: output, shape index: {0}]   ;;  %s6260_s11 = inlined_call_operand.vmem [shape: f32[2,256], index: 11, kind: output, shape index: {1}]  }
   0x1   :  { %18 = vsyncpa [#allocation6], 0 }
   0x2   :  { %19 = vsyncpa [#allocation9], 0 }
   0x3   :  { %20 = vsyncpa [#allocation4], 0  ;;  %s5968_s17 = smov [#allocation5]   ;;  %s5828_s21 = scalar_lea.hbm %s6251_s2, 32768 }
   0x4   :  { %s38_s18 = sshll.u32 %s5968_s17, 4  ;;  %p5829_p0 = scmp.ne.s32.totalorder %s6251_s2, %s5828_s21  ;;  %s39_s18 = int_to_ptr.vmem [resolvable:$true] %s38_s18 }
   0x5   :  { %p5832_p1 = scmp.lt.u32.totalorder %s5828_s21, %s6251_s2 }
   0x7   :  { %p5834_p2 = pnand %p5832_p1, %p5829_p0 }
   0x9   :  { %5837 = shalt.err (!%p5834_p2)
}
   0xa   :  { %s5838_s26 = scalar_lea.vmem %s39_s18, 32768  ;;  %p5843_p4 = scmp.lt.s32.totalorder %s39_s18, %s39_s18 }
   0xb   :  { %p5839_p3 = scmp.ne.s32.totalorder %s39_s18, %s5838_s26  ;;  %p5844_p5 = scmp.lt.s32.totalorder %s5838_s26, %s5838_s26 }
   0xd   :  { %p5845_p6 = por %p5844_p5, %p5843_p4 }
   0xf   :  { %p5846_p7 = pnand %p5845_p6, %p5839_p3 }
  0x11   :  { %5849 = shalt.err (!%p5846_p7)
}
  0x12   :  { %s5969_s27 = smov 256   ;;  %s5970_s28 = smov 16  }
  0x13   :  { %44 = dma.hbm_to_vmem [thread:$0]  %s6251_s2, 32768, %s39_s18, [#allocation6], %s5969_s27, %s5969_s27, %s5970_s28  }
  0x14   :  { %s5971_s12 = smov [#allocation8]   ;;  %s5972_s14 = smov [#allocation2]  }
  0x15   :  { %s66_s13 = sshll.u32 %s5971_s12, 4  ;;  %s27_s15 = sshll.u32 %s5972_s14, 4  ;;  %s67_s13 = int_to_ptr.vmem [resolvable:$true] %s66_s13  ;;  %s28_s15 = int_to_ptr.vmem [resolvable:$true] %s27_s15 }
  0x16   :  { %s5850_s19 = scalar_lea.hbm %s6255_s6, 4096 }
  0x17   :  { %p5851_p8 = scmp.ne.s32.totalorder %s6255_s6, %s5850_s19  ;;  %p5854_p9 = scmp.lt.u32.totalorder %s5850_s19, %s6255_s6 }
  0x19   :  { %p5856_p10 = pnand %p5854_p9, %p5851_p8 }
  0x1b   :  { %5859 = shalt.err (!%p5856_p10)
}
  0x1c   :  { %s5860_s2 = scalar_lea.vmem %s67_s13, 4096  ;;  %p5865_p12 = scmp.lt.s32.totalorder %s67_s13, %s67_s13 }
  0x1d   :  { %p5861_p11 = scmp.ne.s32.totalorder %s67_s13, %s5860_s2  ;;  %p5866_p13 = scmp.lt.s32.totalorder %s5860_s2, %s5860_s2 }
  0x1f   :  { %p5867_p0 = por %p5866_p13, %p5865_p12 }
  0x21   :  { %p5868_p1 = pnand %p5867_p0, %p5861_p11 }
  0x23   :  { %5871 = shalt.err (!%p5868_p1)
}
  0x24   :  { %72 = dma.hbm_to_vmem [thread:$0]  %s6255_s6, 4096, %s67_s13, [#allocation9], %s5969_s27, %s5969_s27, %s5970_s28  }
  0x25   :  { %s5872_s29 = scalar_lea.hbm %s6249_s0, 256 }
  0x26   :  { %p5873_p2 = scmp.ne.s32.totalorder %s6249_s0, %s5872_s29  ;;  %p5876_p3 = scmp.lt.u32.totalorder %s5872_s29, %s6249_s0 }
  0x28   :  { %p5878_p4 = pnand %p5876_p3, %p5873_p2 }
  0x2a   :  { %5881 = shalt.err (!%p5878_p4)
}
  0x2b   :  { %s5882_s17 = scalar_lea.vmem %s28_s15, 256  ;;  %p5887_p6 = scmp.lt.s32.totalorder %s28_s15, %s28_s15 }
  0x2c   :  { %p5883_p5 = scmp.ne.s32.totalorder %s28_s15, %s5882_s17  ;;  %p5888_p7 = scmp.lt.s32.totalorder %s5882_s17, %s5882_s17 }
  0x2e   :  { %p5889_p8 = por %p5888_p7, %p5887_p6 }
  0x30   :  { %p5890_p9 = pnand %p5889_p8, %p5883_p5 }
  0x32   :  { %5893 = shalt.err (!%p5890_p9)
}
  0x33   :  { %30 = dma.hbm_to_vmem [thread:$0]  %s6249_s0, 256, %s28_s15, [#allocation3]  }
  0x34   :  { %s5973_s19 = smov [#allocation7]   ;;  %s5974_s21 = smov [#allocation10]  }
  0x35   :  { %s52_s20 = sshll.u32 %s5973_s19, 4  ;;  %s80_s22 = sshll.u32 %s5974_s21, 4  ;;  %s53_s20 = int_to_ptr.vmem [resolvable:$true] %s52_s20  ;;  %s81_s22 = int_to_ptr.vmem [resolvable:$true] %s80_s22 }
  0x36   :  { %s5894_s18 = scalar_lea.hbm %s6253_s4, 16384 }
  0x37   :  { %p5895_p10 = scmp.ne.s32.totalorder %s6253_s4, %s5894_s18  ;;  %p5898_p11 = scmp.lt.u32.totalorder %s5894_s18, %s6253_s4 }
  0x39   :  { %p5900_p12 = pnand %p5898_p11, %p5895_p10 }
  0x3b   :  { %5903 = shalt.err (!%p5900_p12)
}
  0x3c   :  { %s5904_s0 = scalar_lea.vmem %s53_s20, 16384  ;;  %p5909_p0 = scmp.lt.s32.totalorder %s53_s20, %s53_s20 }
  0x3d   :  { %p5905_p13 = scmp.ne.s32.totalorder %s53_s20, %s5904_s0  ;;  %p5910_p1 = scmp.lt.s32.totalorder %s5904_s0, %s5904_s0 }
  0x3f   :  { %p5911_p2 = por %p5910_p1, %p5909_p0 }
  0x41   :  { %p5912_p3 = pnand %p5911_p2, %p5905_p13 }
  0x43   :  { %5915 = shalt.err (!%p5912_p3)
}
  0x44   :  { %58 = dma.hbm_to_vmem [thread:$0]  %s6253_s4, 16384, %s53_s20, [#allocation6], %s5969_s27, %s5969_s27, %s5970_s28  }
  0x45   :  { %s5916_s16 = scalar_lea.hbm %s6257_s8, 32768 }
  0x46   :  { %p5917_p4 = scmp.ne.s32.totalorder %s6257_s8, %s5916_s16  ;;  %p5920_p5 = scmp.lt.u32.totalorder %s5916_s16, %s6257_s8 }
  0x48   :  { %p5922_p6 = pnand %p5920_p5, %p5917_p4 }
  0x4a   :  { %5925 = shalt.err (!%p5922_p6)
}
  0x4b   :  { %s5926_s21 = scalar_lea.vmem %s81_s22, 32768  ;;  %p5931_p8 = scmp.lt.s32.totalorder %s81_s22, %s81_s22 }
  0x4c   :  { %p5927_p7 = scmp.ne.s32.totalorder %s81_s22, %s5926_s21  ;;  %p5932_p9 = scmp.lt.s32.totalorder %s5926_s21, %s5926_s21 }
  0x4e   :  { %p5933_p10 = por %p5932_p9, %p5931_p8 }
  0x50   :  { %p5934_p11 = pnand %p5933_p10, %p5927_p7 }
  0x52   :  { %5937 = shalt.err (!%p5934_p11)
}
  0x53   :  { %s5975_s4 = smov 512   ;;  %s5976_s27 = smov 32  }
  0x54   :  { %86 = dma.hbm_to_vmem [thread:$0]  %s6257_s8, 32768, %s81_s22, [#allocation9], %s5975_s4, %s5975_s4, %s5976_s27  }
  0x55   :  { %5960 = dma.done.wait [#allocation3], 256  }
  0x56   :  { %5961 = vsyncadd [#allocation3], 4294967040 }
  0x57   :  { %5962 = dma.done.wait [#allocation6], 49152  }
  0x58   :  { %5963 = vsyncadd [#allocation6], 4294918144 }
  0x59   :  { %5964 = dma.done.wait [#allocation9], 36864  }
  0x5a   :  { %5965 = vsyncadd [#allocation9], 4294930432  ;;  %v5376_v0 = vld [vmem:[#allocation5 + $0x4] ss:$16 sps:$4 sm:$0xff]   ;;  %v5378_v1 = vld [vmem:[#allocation5 + $0xc] ss:$16 sps:$4 sm:$0xff]   ;;  %v114_v38 = vlaneseq }
  0x5b   :  { %1718 = vmatprep.subr.bf16.mxu0 %v5376_v0  ;;  %v5380_v2 = vld [vmem:[#allocation5] ss:$16 sps:$4 sm:$0xff]   ;;  %v5381_v3 = vld [vmem:[#allocation5 + $0x8] ss:$16 sps:$4 sm:$0xff]   ;;  %1882 = vmatprep.subr.bf16.mxu1 %v5378_v1  ;;  %v5382_v4 = vld [vmem:[#allocation5 + $0x24] ss:$16 sps:$4 sm:$0xff]  }
  0x5c   :  { %1719 = vmatpush1.bf16.msra.mxu0 %v5380_v2  ;;  %1883 = vmatpush1.bf16.msra.mxu1 %v5381_v3  ;;  %v5384_v5 = vld [vmem:[#allocation5 + $0x2c] ss:$16 sps:$4 sm:$0xff]   ;;  %v5386_v6 = vld [vmem:[#allocation5 + $0x20] ss:$16 sps:$4 sm:$0xff]   ;;  %v5387_v7 = vld [vmem:[#allocation5 + $0x28] ss:$16 sps:$4 sm:$0xff]  }
  0x5d   :  { %1720 = vmatprep.subr.bf16.mxu0 %v5382_v4  ;;  %1884 = vmatprep.subr.bf16.mxu1 %v5384_v5  ;;  %v5388_v8 = vld [vmem:[#allocation5 + $0x44] ss:$16 sps:$4 sm:$0xff]   ;;  %v5390_v9 = vld [vmem:[#allocation5 + $0x4c] ss:$16 sps:$4 sm:$0xff]   ;;  %v5392_v10 = vld [vmem:[#allocation5 + $0x40] ss:$16 sps:$4 sm:$0xff]  }
  0x5e   :  { %v5393_v11 = vld [vmem:[#allocation5 + $0x48] ss:$16 sps:$4 sm:$0xff]   ;;  %v5394_v12 = vld [vmem:[#allocation5 + $0x64] ss:$16 sps:$4 sm:$0xff]   ;;  %v5396_v13 = vld [vmem:[#allocation5 + $0x6c] ss:$16 sps:$4 sm:$0xff]  }
  0x5f   :  { %v5398_v14 = vld [vmem:[#allocation5 + $0x60] ss:$16 sps:$4 sm:$0xff]   ;;  %v5399_v15 = vld [vmem:[#allocation5 + $0x68] ss:$16 sps:$4 sm:$0xff]   ;;  %v5400_v16 = vld [vmem:[#allocation5 + $0x84] ss:$16 sps:$4 sm:$0xff]  }
  0x60   :  { %1721 = vmatpush1.bf16.msra.mxu0 %v5386_v6  ;;  %1885 = vmatpush1.bf16.msra.mxu1 %v5387_v7  ;;  %v5402_v17 = vld [vmem:[#allocation5 + $0x8c] ss:$16 sps:$4 sm:$0xff]   ;;  %v5404_v18 = vld [vmem:[#allocation5 + $0x80] ss:$16 sps:$4 sm:$0xff]   ;;  %v5405_v19 = vld [vmem:[#allocation5 + $0x88] ss:$16 sps:$4 sm:$0xff]  }
  0x61   :  { %1722 = vmatprep.subr.bf16.mxu0 %v5388_v8  ;;  %1886 = vmatprep.subr.bf16.mxu1 %v5390_v9  ;;  %v5406_v20 = vld [vmem:[#allocation5 + $0xa4] ss:$16 sps:$4 sm:$0xff]   ;;  %v5408_v21 = vld [vmem:[#allocation5 + $0xac] ss:$16 sps:$4 sm:$0xff]   ;;  %v5410_v22 = vld [vmem:[#allocation5 + $0xa0] ss:$16 sps:$4 sm:$0xff]  }
  0x62   :  { %v5411_v23 = vld [vmem:[#allocation5 + $0xa8] ss:$16 sps:$4 sm:$0xff]   ;;  %v5412_v24 = vld [vmem:[#allocation5 + $0xc4] ss:$16 sps:$4 sm:$0xff]   ;;  %v5414_v25 = vld [vmem:[#allocation5 + $0xcc] ss:$16 sps:$4 sm:$0xff]  }
  0x63   :  { %v5416_v26 = vld [vmem:[#allocation5 + $0xc0] ss:$16 sps:$4 sm:$0xff]   ;;  %v5417_v27 = vld [vmem:[#allocation5 + $0xc8] ss:$16 sps:$4 sm:$0xff]   ;;  %v5418_v28 = vld [vmem:[#allocation5 + $0xe4] ss:$16 sps:$4 sm:$0xff]  }
  0x64   :  { %1723 = vmatpush1.bf16.msra.mxu0 %v5392_v10  ;;  %1887 = vmatpush1.bf16.msra.mxu1 %v5393_v11  ;;  %v5420_v29 = vld [vmem:[#allocation5 + $0xec] ss:$16 sps:$4 sm:$0xff]   ;;  %v5422_v30 = vld [vmem:[#allocation5 + $0xe0] ss:$16 sps:$4 sm:$0xff]   ;;  %v5423_v31 = vld [vmem:[#allocation5 + $0xe8] ss:$16 sps:$4 sm:$0xff]  }
  0x65   :  { %1724 = vmatprep.subr.bf16.mxu0 %v5394_v12  ;;  %1888 = vmatprep.subr.bf16.mxu1 %v5396_v13  ;;  %v5424_v32 = vld [vmem:[#allocation5 + $0x104] ss:$16 sps:$4 sm:$0xff]   ;;  %v5426_v33 = vld [vmem:[#allocation5 + $0x10c] ss:$16 sps:$4 sm:$0xff]   ;;  %v5428_v34 = vld [vmem:[#allocation5 + $0x100] ss:$16 sps:$4 sm:$0xff]  }
  0x66   :  { %v5429_v35 = vld [vmem:[#allocation5 + $0x108] ss:$16 sps:$4 sm:$0xff]   ;;  %v5977_v36 = vmov 1983009808   ;;  %v5430_v39 = vld [vmem:[#allocation5 + $0x124] ss:$16 sps:$4 sm:$0xff]  }
  0x67   :  { %v112_v37 = vunpack.c.l.s4 %v5977_v36  ;;  %v5432_v40 = vld [vmem:[#allocation5 + $0x12c] ss:$16 sps:$4 sm:$0xff]   ;;  %v5434_v41 = vld [vmem:[#allocation5 + $0x120] ss:$16 sps:$4 sm:$0xff]   ;;  %v6109_v43 = vshrl.u32 %v114_v38, 7 }
  0x68   :  { %1725 = vmatpush1.bf16.msra.mxu0 %v5398_v14  ;;  %1889 = vmatpush1.bf16.msra.mxu1 %v5399_v15  ;;  %v5435_v44 = vld [vmem:[#allocation5 + $0x128] ss:$16 sps:$4 sm:$0xff]   ;;  %v5436_v45 = vld [vmem:[#allocation5 + $0x144] ss:$16 sps:$4 sm:$0xff]   ;;  %v5438_v46 = vld [vmem:[#allocation5 + $0x14c] ss:$16 sps:$4 sm:$0xff]  }
  0x69   :  { %1726 = vmatprep.subr.bf16.mxu0 %v5400_v16  ;;  %1890 = vmatprep.subr.bf16.mxu1 %v5402_v17  ;;  %v113_v42 = vunpack.c.0.s8 %v112_v37  ;;  %v5440_v47 = vld [vmem:[#allocation5 + $0x140] ss:$16 sps:$4 sm:$0xff]   ;;  %v5441_v48 = vld [vmem:[#allocation5 + $0x148] ss:$16 sps:$4 sm:$0xff]   ;;  %v5442_v50 = vld [vmem:[#allocation5 + $0x164] ss:$16 sps:$4 sm:$0xff]  }
  0x6a   :  { %v5444_v51 = vld [vmem:[#allocation5 + $0x16c] ss:$16 sps:$4 sm:$0xff]   ;;  %v105_v52 = vld [vmem:[#allocation2] sm:$0xff]  ;;  %v5447_v55 = vld [vmem:[#allocation5 + $0x168] ss:$16 sps:$4 sm:$0xff]  }
  0x6b   :  { %v6112_v49 = vsub.s32 %v113_v42, %v6109_v43  ;;  %v5446_v53 = vld [vmem:[#allocation5 + $0x160] ss:$16 sps:$4 sm:$0xff]   ;;  %v5448_v56 = vld [vmem:[#allocation5 + $0x184] ss:$16 sps:$4 sm:$0xff]   ;;  %v5450_v57 = vld [vmem:[#allocation5 + $0x18c] ss:$16 sps:$4 sm:$0xff]   ;;  %v110_v4 = vcombine.high %v105_v52, %v105_v52 }
  0x6c   :  { %1727 = vmatpush1.bf16.msra.mxu0 %v5404_v18  ;;  %1891 = vmatpush1.bf16.msra.mxu1 %v5405_v19  ;;  %v5452_v59 = vld [vmem:[#allocation5 + $0x180] ss:$16 sps:$4 sm:$0xff]   ;;  %v5453_v61 = vld [vmem:[#allocation5 + $0x188] ss:$16 sps:$4 sm:$0xff]   ;;  %v5454_v62 = vld [vmem:[#allocation5 + $0x1a4] ss:$16 sps:$4 sm:$0xff]  }
  0x6d   :  { %1728 = vmatprep.subr.bf16.mxu0 %v5406_v20  ;;  %1892 = vmatprep.subr.bf16.mxu1 %v5408_v21  ;;  %v117_v54 = vrot.slane %v105_v52, %v6112_v49  ;;  %v5456_v63 = vld [vmem:[#allocation5 + $0x1ac] ss:$16 sps:$4 sm:$0xff]   ;;  %v5458_v0 = vld [vmem:[#allocation5 + $0x1a0] ss:$16 sps:$4 sm:$0xff]   ;;  %v5459_v1 = vld [vmem:[#allocation5 + $0x1a8] ss:$16 sps:$4 sm:$0xff]   ;;  %v6116_v9 = vrot.slane %v110_v4, %v6112_v49 }
  0x6e   :  { %v5460_v2 = vld [vmem:[#allocation5 + $0x1c4] ss:$16 sps:$4 sm:$0xff]   ;;  %v5462_v3 = vld [vmem:[#allocation5 + $0x1cc] ss:$16 sps:$4 sm:$0xff]   ;;  %v5464_v5 = vld [vmem:[#allocation5 + $0x1c0] ss:$16 sps:$4 sm:$0xff]  }
  0x6f   :  { %v125_v58 = vcombine.high %v117_v54, %v117_v54  ;;  %v5465_v6 = vld [vmem:[#allocation5 + $0x1c8] ss:$16 sps:$4 sm:$0xff]   ;;  %v5466_v7 = vld [vmem:[#allocation5 + $0x1e4] ss:$16 sps:$4 sm:$0xff]   ;;  %v5468_v8 = vld [vmem:[#allocation5 + $0x1ec] ss:$16 sps:$4 sm:$0xff]   ;;  %v126_v14 = vcombine.high %v6116_v9, %v6116_v9  ;;  %v152_v16 = vpack.c.bf16 %v117_v54, %v117_v54 }
  0x70   :  { %1729 = vmatpush1.bf16.msra.mxu0 %v5410_v22  ;;  %1893 = vmatpush1.bf16.msra.mxu1 %v5411_v23  ;;  %v5470_v10 = vld [vmem:[#allocation5 + $0x1e0] ss:$16 sps:$4 sm:$0xff]   ;;  %v5471_v11 = vld [vmem:[#allocation5 + $0x1e8] ss:$16 sps:$4 sm:$0xff]   ;;  %v5475_v12 = vld [vmem:[#allocation5 + $0x204] ss:$16 sps:$4 sm:$0xff]  }
  0x71   :  { %1730 = vmatprep.subr.bf16.mxu0 %v5412_v24  ;;  %1894 = vmatprep.subr.bf16.mxu1 %v5414_v25  ;;  %v153_v60 = vpack.c.bf16 %v125_v58, %v125_v58  ;;  %v5478_v13 = vld [vmem:[#allocation5 + $0x20c] ss:$16 sps:$4 sm:$0xff]   ;;  %v5473_v15 = vld [vmem:[#allocation5 + $0x200] ss:$16 sps:$4 sm:$0xff]   ;;  %v5476_v17 = vld [vmem:[#allocation5 + $0x208] ss:$16 sps:$4 sm:$0xff]   ;;  %v155_v20 = vpack.c.bf16 %v126_v14, %v126_v14 }
  0x72   :  { %v5481_v18 = vld [vmem:[#allocation5 + $0x224] ss:$16 sps:$4 sm:$0xff]   ;;  %v5484_v19 = vld [vmem:[#allocation5 + $0x22c] ss:$16 sps:$4 sm:$0xff]   ;;  %v5479_v21 = vld [vmem:[#allocation5 + $0x220] ss:$16 sps:$4 sm:$0xff]  }
  0x73   :  { %1750 = vmatprep.mubr.bf16.mxu0 %v153_v60  ;;  %1914 = vmatprep.mubr.bf16.mxu1 %v153_v60  ;;  %v5482_v22 = vld [vmem:[#allocation5 + $0x228] ss:$16 sps:$4 sm:$0xff]   ;;  %v5487_v23 = vld [vmem:[#allocation5 + $0x244] ss:$16 sps:$4 sm:$0xff]   ;;  %v5490_v24 = vld [vmem:[#allocation5 + $0x24c] ss:$16 sps:$4 sm:$0xff]  }
  0x74   :  { %1731 = vmatpush1.bf16.msra.mxu0 %v5416_v26  ;;  %1895 = vmatpush1.bf16.msra.mxu1 %v5417_v27  ;;  %v5485_v25 = vld [vmem:[#allocation5 + $0x240] ss:$16 sps:$4 sm:$0xff]   ;;  %v5488_v26 = vld [vmem:[#allocation5 + $0x248] ss:$16 sps:$4 sm:$0xff]   ;;  %v5493_v27 = vld [vmem:[#allocation5 + $0x264] ss:$16 sps:$4 sm:$0xff]  }
  0x75   :  { %1732 = vmatprep.subr.bf16.mxu0 %v5418_v28  ;;  %1896 = vmatprep.subr.bf16.mxu1 %v5420_v29  ;;  %v5496_v28 = vld [vmem:[#allocation5 + $0x26c] ss:$16 sps:$4 sm:$0xff]   ;;  %v5491_v29 = vld [vmem:[#allocation5 + $0x260] ss:$16 sps:$4 sm:$0xff]   ;;  %v5506_v38 = vld [vmem:[#allocation5 + $0x2a8] ss:$16 sps:$4 sm:$0xff]  }
  0x76   :  { %v5508_v36 = vld [vmem:[#allocation5 + $0x2ac] ss:$16 sps:$4 sm:$0xff]   ;;  %v5503_v37 = vld [vmem:[#allocation5 + $0x2a0] ss:$16 sps:$4 sm:$0xff]   ;;  %v5512_v42 = vld [vmem:[#allocation5 + $0x2c8] ss:$16 sps:$4 sm:$0xff]  }
  0x77   :  { %v5524_v52 = vld [vmem:[#allocation5 + $0x308] ss:$16 sps:$4 sm:$0xff]   ;;  %v5532_v54 = vld [vmem:[#allocation5 + $0x32c] ss:$16 sps:$4 sm:$0xff]   ;;  %v5565_v14 = vld [vmem:[#allocation5 + $0x3e4] ss:$16 sps:$4 sm:$0xff]  }
  0x78   :  { %1733 = vmatpush1.bf16.msra.mxu0 %v5422_v30  ;;  %1897 = vmatpush1.bf16.msra.mxu1 %v5423_v31  ;;  %v5494_v30 = vld [vmem:[#allocation5 + $0x268] ss:$16 sps:$4 sm:$0xff]   ;;  %v5499_v31 = vld [vmem:[#allocation5 + $0x284] ss:$16 sps:$4 sm:$0xff]   ;;  %v5538_v58 = vld [vmem:[#allocation5 + $0x34c] ss:$16 sps:$4 sm:$0xff]  }
  0x79   :  { %1734 = vmatprep.subr.bf16.mxu0 %v5424_v32  ;;  %1898 = vmatprep.subr.bf16.mxu1 %v5426_v33  ;;  %v5502_v32 = vld [vmem:[#allocation5 + $0x28c] ss:$16 sps:$4 sm:$0xff]   ;;  %v5497_v33 = vld [vmem:[#allocation5 + $0x280] ss:$16 sps:$4 sm:$0xff]   ;;  %v5536_v60 = vld [vmem:[#allocation5 + $0x348] ss:$16 sps:$4 sm:$0xff]  }
  0x7a   :  { %v5548_v4 = vld [vmem:[#allocation5 + $0x388] ss:$16 sps:$4 sm:$0xff]  }
  0x7c   :  { %1735 = vmatpush1.bf16.msra.mxu0 %v5428_v34  ;;  %1899 = vmatpush1.bf16.msra.mxu1 %v5429_v35  ;;  %v5500_v34 = vld [vmem:[#allocation5 + $0x288] ss:$16 sps:$4 sm:$0xff]   ;;  %v5505_v35 = vld [vmem:[#allocation5 + $0x2a4] ss:$16 sps:$4 sm:$0xff]  }
  0x7d   :  { %1736 = vmatprep.subr.bf16.mxu0 %v5430_v39  ;;  %1900 = vmatprep.subr.bf16.mxu1 %v5432_v40  ;;  %v5511_v39 = vld [vmem:[#allocation5 + $0x2c4] ss:$16 sps:$4 sm:$0xff]   ;;  %v5514_v40 = vld [vmem:[#allocation5 + $0x2cc] ss:$16 sps:$4 sm:$0xff]  }
  0x80   :  { %1737 = vmatpush1.bf16.msra.mxu0 %v5434_v41  ;;  %1901 = vmatpush1.bf16.msra.mxu1 %v5435_v44  ;;  %v5509_v41 = vld [vmem:[#allocation5 + $0x2c0] ss:$16 sps:$4 sm:$0xff]   ;;  %v5517_v44 = vld [vmem:[#allocation5 + $0x2e4] ss:$16 sps:$4 sm:$0xff]  }
  0x81   :  { %1738 = vmatprep.subr.bf16.mxu0 %v5436_v45  ;;  %1902 = vmatprep.subr.bf16.mxu1 %v5438_v46  ;;  %v5520_v45 = vld [vmem:[#allocation5 + $0x2ec] ss:$16 sps:$4 sm:$0xff]   ;;  %v5515_v46 = vld [vmem:[#allocation5 + $0x2e0] ss:$16 sps:$4 sm:$0xff]  }
  0x84   :  { %1739 = vmatpush1.bf16.msra.mxu0 %v5440_v47  ;;  %1903 = vmatpush1.bf16.msra.mxu1 %v5441_v48  ;;  %v5518_v47 = vld [vmem:[#allocation5 + $0x2e8] ss:$16 sps:$4 sm:$0xff]   ;;  %v5523_v48 = vld [vmem:[#allocation5 + $0x304] ss:$16 sps:$4 sm:$0xff]  }
  0x85   :  { %1740 = vmatprep.subr.bf16.mxu0 %v5442_v50  ;;  %1904 = vmatprep.subr.bf16.mxu1 %v5444_v51  ;;  %v5526_v50 = vld [vmem:[#allocation5 + $0x30c] ss:$16 sps:$4 sm:$0xff]   ;;  %v5521_v51 = vld [vmem:[#allocation5 + $0x300] ss:$16 sps:$4 sm:$0xff]  }
  0x88   :  { %1741 = vmatpush1.bf16.msra.mxu0 %v5446_v53  ;;  %1905 = vmatpush1.bf16.msra.mxu1 %v5447_v55  ;;  %v5529_v53 = vld [vmem:[#allocation5 + $0x324] ss:$16 sps:$4 sm:$0xff]   ;;  %v5527_v55 = vld [vmem:[#allocation5 + $0x320] ss:$16 sps:$4 sm:$0xff]  }
  0x89   :  { %1742 = vmatprep.subr.bf16.mxu0 %v5448_v56  ;;  %1906 = vmatprep.subr.bf16.mxu1 %v5450_v57  ;;  %v5530_v56 = vld [vmem:[#allocation5 + $0x328] ss:$16 sps:$4 sm:$0xff]   ;;  %v5535_v57 = vld [vmem:[#allocation5 + $0x344] ss:$16 sps:$4 sm:$0xff]  }
  0x8c   :  { %1743 = vmatpush1.bf16.msra.mxu0 %v5452_v59  ;;  %1907 = vmatpush1.bf16.msra.mxu1 %v5453_v61  ;;  %v5533_v59 = vld [vmem:[#allocation5 + $0x340] ss:$16 sps:$4 sm:$0xff]   ;;  %v5541_v61 = vld [vmem:[#allocation5 + $0x364] ss:$16 sps:$4 sm:$0xff]  }
  0x8d   :  { %1744 = vmatprep.subr.bf16.mxu0 %v5454_v62  ;;  %1908 = vmatprep.subr.bf16.mxu1 %v5456_v63  ;;  %v5544_v62 = vld [vmem:[#allocation5 + $0x36c] ss:$16 sps:$4 sm:$0xff]   ;;  %v5539_v63 = vld [vmem:[#allocation5 + $0x360] ss:$16 sps:$4 sm:$0xff]  }
  0x90   :  { %1745 = vmatpush1.bf16.msra.mxu0 %v5458_v0  ;;  %1909 = vmatpush1.bf16.msra.mxu1 %v5459_v1  ;;  %v5542_v0 = vld [vmem:[#allocation5 + $0x368] ss:$16 sps:$4 sm:$0xff]   ;;  %v5547_v1 = vld [vmem:[#allocation5 + $0x384] ss:$16 sps:$4 sm:$0xff]  }
  0x91   :  { %1746 = vmatprep.subr.bf16.mxu0 %v5460_v2  ;;  %1910 = vmatprep.subr.bf16.mxu1 %v5462_v3  ;;  %v5550_v2 = vld [vmem:[#allocation5 + $0x38c] ss:$16 sps:$4 sm:$0xff]   ;;  %v5545_v3 = vld [vmem:[#allocation5 + $0x380] ss:$16 sps:$4 sm:$0xff]  }
  0x94   :  { %1747 = vmatpush1.bf16.msra.mxu0 %v5464_v5  ;;  %1911 = vmatpush1.bf16.msra.mxu1 %v5465_v6  ;;  %v5553_v5 = vld [vmem:[#allocation5 + $0x3a4] ss:$16 sps:$4 sm:$0xff]   ;;  %v5556_v6 = vld [vmem:[#allocation5 + $0x3ac] ss:$16 sps:$4 sm:$0xff]  }
  0x95   :  { %1748 = vmatprep.subr.bf16.mxu0 %v5466_v7  ;;  %1912 = vmatprep.subr.bf16.mxu1 %v5468_v8  ;;  %v5551_v7 = vld [vmem:[#allocation5 + $0x3a0] ss:$16 sps:$4 sm:$0xff]   ;;  %v5554_v8 = vld [vmem:[#allocation5 + $0x3a8] ss:$16 sps:$4 sm:$0xff]  }
  0x98   :  { %1749 = vmatpush1.bf16.msra.mxu0 %v5470_v10  ;;  %1913 = vmatpush1.bf16.msra.mxu1 %v5471_v11  ;;  %v5559_v10 = vld [vmem:[#allocation5 + $0x3c4] ss:$16 sps:$4 sm:$0xff]   ;;  %v5562_v11 = vld [vmem:[#allocation5 + $0x3cc] ss:$16 sps:$4 sm:$0xff]  }
  0x99   :  { %1759 = vmatprep.subr.bf16.mxu0 %v5475_v12  ;;  %1923 = vmatprep.subr.bf16.mxu1 %v5478_v13  ;;  %v5557_v12 = vld [vmem:[#allocation5 + $0x3c0] ss:$16 sps:$4 sm:$0xff]   ;;  %v5560_v13 = vld [vmem:[#allocation5 + $0x3c8] ss:$16 sps:$4 sm:$0xff]  }
  0x9b   :  { %1751 = vmatmul.mubr.bf16.vlgmr.msra.gmra.mrb[0].mxu0 %v152_v16  ;;  %1915 = vmatmul.mubr.bf16.vlgmr.msra.gmra.mrb[0].mxu1 %v152_v16  ;;  %v5563_v16 = vld [vmem:[#allocation5 + $0x3e0] ss:$16 sps:$4 sm:$0xff]  }
  0x9c   :  { %1760 = vmatpush1.bf16.msra.mxu0 %v5473_v15  ;;  %1924 = vmatpush1.bf16.msra.mxu1 %v5476_v17  ;;  %v5568_v15 = vld [vmem:[#allocation5 + $0x3ec] ss:$16 sps:$4 sm:$0xff]   ;;  %v5566_v17 = vld [vmem:[#allocation5 + $0x3e8] ss:$16 sps:$4 sm:$0xff]  }
  0x9d   :  { %1761 = vmatprep.subr.bf16.mxu0 %v5481_v18  ;;  %1925 = vmatprep.subr.bf16.mxu1 %v5484_v19  ;;  %v5571_v18 = vld [vmem:[#allocation5 + $0x404] ss:$16 sps:$4 sm:$0xff]   ;;  %v5574_v19 = vld [vmem:[#allocation5 + $0x40c] ss:$16 sps:$4 sm:$0xff]  }
  0x9e   :  { %1791 = vmatprep.mubr.bf16.mxu0 %v155_v20  ;;  %1955 = vmatprep.mubr.bf16.mxu1 %v155_v20  ;;  %v5569_v20 = vld [vmem:[#allocation5 + $0x400] ss:$16 sps:$4 sm:$0xff]  }
  0xa0   :  { %1762 = vmatpush1.bf16.msra.mxu0 %v5479_v21  ;;  %1926 = vmatpush1.bf16.msra.mxu1 %v5482_v22  ;;  %v154_v21 = vpack.c.bf16 %v6116_v9, %v6116_v9  ;;  %v5572_v22 = vld [vmem:[#allocation5 + $0x408] ss:$16 sps:$4 sm:$0xff]   ;;  %v5575_v9 = vld [vmem:[#allocation5 + $0x420] ss:$16 sps:$4 sm:$0xff]  }
  0xa1   :  { %1763 = vmatprep.subr.bf16.mxu0 %v5487_v23  ;;  %1927 = vmatprep.subr.bf16.mxu1 %v5490_v24  ;;  %v6122_v23 = vld [vmem:[#allocation2 + $0x8] sm:$0xff]  ;;  %v5577_v24 = vld [vmem:[#allocation5 + $0x424] ss:$16 sps:$4 sm:$0xff]  }
  0xa4   :  { %1764 = vmatpush1.bf16.msra.mxu0 %v5485_v25  ;;  %1928 = vmatpush1.bf16.msra.mxu1 %v5488_v26  ;;  %v5580_v25 = vld [vmem:[#allocation5 + $0x42c] ss:$16 sps:$4 sm:$0xff]   ;;  %v6126_v26 = vrot.slane %v6122_v23, %v6112_v49 }
  0xa5   :  { %1765 = vmatprep.subr.bf16.mxu0 %v5493_v27  ;;  %1929 = vmatprep.subr.bf16.mxu1 %v5496_v28  ;;  %v5578_v28 = vld [vmem:[#allocation5 + $0x428] ss:$16 sps:$4 sm:$0xff]  }
  0xa6   :  { %v142_v27 = vcombine.high %v6126_v26, %v6126_v26 }
  0xa8   :  { %1766 = vmatpush1.bf16.msra.mxu0 %v5491_v29  ;;  %1930 = vmatpush1.bf16.msra.mxu1 %v5494_v30  ;;  %v5583_v29 = vld [vmem:[#allocation5 + $0x444] ss:$16 sps:$4 sm:$0xff]   ;;  %v5586_v30 = vld [vmem:[#allocation5 + $0x44c] ss:$16 sps:$4 sm:$0xff]  }
  0xa9   :  { %1767 = vmatprep.subr.bf16.mxu0 %v5499_v31  ;;  %1931 = vmatprep.subr.bf16.mxu1 %v5502_v32  ;;  %v157_v31 = vpack.c.bf16 %v142_v27, %v142_v27  ;;  %v5581_v32 = vld [vmem:[#allocation5 + $0x440] ss:$16 sps:$4 sm:$0xff]  }
  0xaa   :  { %v5659_v27 = vld [vmem:[#allocation5 + $0x5e0] ss:$16 sps:$4 sm:$0xff]  }
  0xac   :  { %1768 = vmatpush1.bf16.msra.mxu0 %v5497_v33  ;;  %1932 = vmatpush1.bf16.msra.mxu1 %v5500_v34  ;;  %v5584_v33 = vld [vmem:[#allocation5 + $0x448] ss:$16 sps:$4 sm:$0xff]   ;;  %v5589_v34 = vld [vmem:[#allocation5 + $0x464] ss:$16 sps:$4 sm:$0xff]  }
  0xad   :  { %1769 = vmatprep.subr.bf16.mxu0 %v5505_v35  ;;  %1933 = vmatprep.subr.bf16.mxu1 %v5508_v36  ;;  %v5592_v35 = vld [vmem:[#allocation5 + $0x46c] ss:$16 sps:$4 sm:$0xff]   ;;  %v5587_v36 = vld [vmem:[#allocation5 + $0x460] ss:$16 sps:$4 sm:$0xff]  }
  0xb0   :  { %1770 = vmatpush1.bf16.msra.mxu0 %v5503_v37  ;;  %1934 = vmatpush1.bf16.msra.mxu1 %v5506_v38  ;;  %v5590_v37 = vld [vmem:[#allocation5 + $0x468] ss:$16 sps:$4 sm:$0xff]   ;;  %v5595_v38 = vld [vmem:[#allocation5 + $0x484] ss:$16 sps:$4 sm:$0xff]  }
  0xb1   :  { %1771 = vmatprep.subr.bf16.mxu0 %v5511_v39  ;;  %1935 = vmatprep.subr.bf16.mxu1 %v5514_v40  ;;  %v5598_v39 = vld [vmem:[#allocation5 + $0x48c] ss:$16 sps:$4 sm:$0xff]   ;;  %v5593_v40 = vld [vmem:[#allocation5 + $0x480] ss:$16 sps:$4 sm:$0xff]  }
  0xb4   :  { %1772 = vmatpush1.bf16.msra.mxu0 %v5509_v41  ;;  %1936 = vmatpush1.bf16.msra.mxu1 %v5512_v42  ;;  %v5596_v41 = vld [vmem:[#allocation5 + $0x488] ss:$16 sps:$4 sm:$0xff]   ;;  %v5601_v42 = vld [vmem:[#allocation5 + $0x4a4] ss:$16 sps:$4 sm:$0xff]  }
  0xb5   :  { %1773 = vmatprep.subr.bf16.mxu0 %v5517_v44  ;;  %1937 = vmatprep.subr.bf16.mxu1 %v5520_v45  ;;  %v5604_v44 = vld [vmem:[#allocation5 + $0x4ac] ss:$16 sps:$4 sm:$0xff]   ;;  %v5599_v45 = vld [vmem:[#allocation5 + $0x4a0] ss:$16 sps:$4 sm:$0xff]  }
  0xb8   :  { %1774 = vmatpush1.bf16.msra.mxu0 %v5515_v46  ;;  %1938 = vmatpush1.bf16.msra.mxu1 %v5518_v47  ;;  %v5602_v46 = vld [vmem:[#allocation5 + $0x4a8] ss:$16 sps:$4 sm:$0xff]   ;;  %v5607_v47 = vld [vmem:[#allocation5 + $0x4c4] ss:$16 sps:$4 sm:$0xff]  }
  0xb9   :  { %1775 = vmatprep.subr.bf16.mxu0 %v5523_v48  ;;  %1939 = vmatprep.subr.bf16.mxu1 %v5526_v50  ;;  %v5610_v48 = vld [vmem:[#allocation5 + $0x4cc] ss:$16 sps:$4 sm:$0xff]   ;;  %v5605_v50 = vld [vmem:[#allocation5 + $0x4c0] ss:$16 sps:$4 sm:$0xff]  }
  0xbc   :  { %1776 = vmatpush1.bf16.msra.mxu0 %v5521_v51  ;;  %1940 = vmatpush1.bf16.msra.mxu1 %v5524_v52  ;;  %v5608_v51 = vld [vmem:[#allocation5 + $0x4c8] ss:$16 sps:$4 sm:$0xff]   ;;  %v5613_v52 = vld [vmem:[#allocation5 + $0x4e4] ss:$16 sps:$4 sm:$0xff]  }
  0xbd   :  { %1777 = vmatprep.subr.bf16.mxu0 %v5529_v53  ;;  %1941 = vmatprep.subr.bf16.mxu1 %v5532_v54  ;;  %v5616_v53 = vld [vmem:[#allocation5 + $0x4ec] ss:$16 sps:$4 sm:$0xff]   ;;  %v5611_v54 = vld [vmem:[#allocation5 + $0x4e0] ss:$16 sps:$4 sm:$0xff]  }
  0xc0   :  { %1778 = vmatpush1.bf16.msra.mxu0 %v5527_v55  ;;  %1942 = vmatpush1.bf16.msra.mxu1 %v5530_v56  ;;  %v5614_v55 = vld [vmem:[#allocation5 + $0x4e8] ss:$16 sps:$4 sm:$0xff]   ;;  %v5619_v56 = vld [vmem:[#allocation5 + $0x504] ss:$16 sps:$4 sm:$0xff]  }
  0xc1   :  { %1779 = vmatprep.subr.bf16.mxu0 %v5535_v57  ;;  %1943 = vmatprep.subr.bf16.mxu1 %v5538_v58  ;;  %v5622_v57 = vld [vmem:[#allocation5 + $0x50c] ss:$16 sps:$4 sm:$0xff]   ;;  %v5617_v58 = vld [vmem:[#allocation5 + $0x500] ss:$16 sps:$4 sm:$0xff]  }
  0xc4   :  { %1780 = vmatpush1.bf16.msra.mxu0 %v5533_v59  ;;  %1944 = vmatpush1.bf16.msra.mxu1 %v5536_v60  ;;  %v5620_v59 = vld [vmem:[#allocation5 + $0x508] ss:$16 sps:$4 sm:$0xff]   ;;  %v5625_v60 = vld [vmem:[#allocation5 + $0x524] ss:$16 sps:$4 sm:$0xff]  }
  0xc5   :  { %1781 = vmatprep.subr.bf16.mxu0 %v5541_v61  ;;  %1945 = vmatprep.subr.bf16.mxu1 %v5544_v62  ;;  %v5628_v61 = vld [vmem:[#allocation5 + $0x52c] ss:$16 sps:$4 sm:$0xff]   ;;  %v5623_v62 = vld [vmem:[#allocation5 + $0x520] ss:$16 sps:$4 sm:$0xff]  }
  0xc8   :  { %1782 = vmatpush1.bf16.msra.mxu0 %v5539_v63  ;;  %1946 = vmatpush1.bf16.msra.mxu1 %v5542_v0  ;;  %v5626_v63 = vld [vmem:[#allocation5 + $0x528] ss:$16 sps:$4 sm:$0xff]   ;;  %v5631_v0 = vld [vmem:[#allocation5 + $0x544] ss:$16 sps:$4 sm:$0xff]  }
  0xc9   :  { %1783 = vmatprep.subr.bf16.mxu0 %v5547_v1  ;;  %1947 = vmatprep.subr.bf16.mxu1 %v5550_v2  ;;  %v5634_v1 = vld [vmem:[#allocation5 + $0x54c] ss:$16 sps:$4 sm:$0xff]   ;;  %v5629_v2 = vld [vmem:[#allocation5 + $0x540] ss:$16 sps:$4 sm:$0xff]  }
  0xcc   :  { %1784 = vmatpush1.bf16.msra.mxu0 %v5545_v3  ;;  %1948 = vmatpush1.bf16.msra.mxu1 %v5548_v4  ;;  %v5632_v3 = vld [vmem:[#allocation5 + $0x548] ss:$16 sps:$4 sm:$0xff]   ;;  %v5637_v4 = vld [vmem:[#allocation5 + $0x564] ss:$16 sps:$4 sm:$0xff]  }
  0xcd   :  { %1785 = vmatprep.subr.bf16.mxu0 %v5553_v5  ;;  %1949 = vmatprep.subr.bf16.mxu1 %v5556_v6  ;;  %v5640_v5 = vld [vmem:[#allocation5 + $0x56c] ss:$16 sps:$4 sm:$0xff]   ;;  %v5635_v6 = vld [vmem:[#allocation5 + $0x560] ss:$16 sps:$4 sm:$0xff]  }
  0xd0   :  { %1786 = vmatpush1.bf16.msra.mxu0 %v5551_v7  ;;  %1950 = vmatpush1.bf16.msra.mxu1 %v5554_v8  ;;  %v5638_v7 = vld [vmem:[#allocation5 + $0x568] ss:$16 sps:$4 sm:$0xff]   ;;  %v5643_v8 = vld [vmem:[#allocation5 + $0x584] ss:$16 sps:$4 sm:$0xff]  }
  0xd1   :  { %1787 = vmatprep.subr.bf16.mxu0 %v5559_v10  ;;  %1951 = vmatprep.subr.bf16.mxu1 %v5562_v11  ;;  %v5646_v10 = vld [vmem:[#allocation5 + $0x58c] ss:$16 sps:$4 sm:$0xff]   ;;  %v5641_v11 = vld [vmem:[#allocation5 + $0x580] ss:$16 sps:$4 sm:$0xff]  }
  0xd4   :  { %1788 = vmatpush1.bf16.msra.mxu0 %v5557_v12  ;;  %1952 = vmatpush1.bf16.msra.mxu1 %v5560_v13  ;;  %v5644_v12 = vld [vmem:[#allocation5 + $0x588] ss:$16 sps:$4 sm:$0xff]   ;;  %v5649_v13 = vld [vmem:[#allocation5 + $0x5a4] ss:$16 sps:$4 sm:$0xff]  }
  0xd5   :  { %1789 = vmatprep.subr.bf16.mxu0 %v5565_v14  ;;  %1953 = vmatprep.subr.bf16.mxu1 %v5568_v15  ;;  %v5652_v14 = vld [vmem:[#allocation5 + $0x5ac] ss:$16 sps:$4 sm:$0xff]   ;;  %v5647_v15 = vld [vmem:[#allocation5 + $0x5a0] ss:$16 sps:$4 sm:$0xff]  }
  0xd8   :  { %1790 = vmatpush1.bf16.msra.mxu0 %v5563_v16  ;;  %1954 = vmatpush1.bf16.msra.mxu1 %v5566_v17  ;;  %v5650_v16 = vld [vmem:[#allocation5 + $0x5a8] ss:$16 sps:$4 sm:$0xff]   ;;  %v5655_v17 = vld [vmem:[#allocation5 + $0x5c4] ss:$16 sps:$4 sm:$0xff]  }
  0xd9   :  { %1800 = vmatprep.subr.bf16.mxu0 %v5571_v18  ;;  %1964 = vmatprep.subr.bf16.mxu1 %v5574_v19  ;;  %v5658_v18 = vld [vmem:[#allocation5 + $0x5cc] ss:$16 sps:$4 sm:$0xff]   ;;  %v127_v19 = vcombine.high %v6122_v23, %v6122_v23  ;;  %v5665_v23 = vld [vmem:[#allocation5 + $0x600] ss:$16 sps:$4 sm:$0xff]  }
  0xdb   :  { %1792 = vmatmul.mubr.bf16.vlgmr.msra.gmra.mrb[0].mxu0 %v154_v21  ;;  %1956 = vmatmul.mubr.bf16.vlgmr.msra.gmra.mrb[0].mxu1 %v154_v21  ;;  %v5656_v21 = vld [vmem:[#allocation5 + $0x5c8] ss:$16 sps:$4 sm:$0xff]  }
  0xdc   :  { %1801 = vmatpush1.bf16.msra.mxu0 %v5569_v20  ;;  %1965 = vmatpush1.bf16.msra.mxu1 %v5572_v22  ;;  %v5653_v20 = vld [vmem:[#allocation5 + $0x5c0] ss:$16 sps:$4 sm:$0xff]   ;;  %v5661_v22 = vld [vmem:[#allocation5 + $0x5e4] ss:$16 sps:$4 sm:$0xff]  }
  0xdd   :  { %1802 = vmatprep.subr.bf16.mxu0 %v5577_v24  ;;  %1966 = vmatprep.subr.bf16.mxu1 %v5580_v25  ;;  %v5664_v24 = vld [vmem:[#allocation5 + $0x5ec] ss:$16 sps:$4 sm:$0xff]   ;;  %v6133_v25 = vrot.slane %v127_v19, %v6112_v49  ;;  %v5740_v19 = vld [vmem:[#allocation5 + $0x788] ss:$16 sps:$4 sm:$0xff]  }
  0xde   :  { %1832 = vmatprep.mubr.bf16.mxu0 %v157_v31  ;;  %1996 = vmatprep.mubr.bf16.mxu1 %v157_v31 }
  0xdf   :  { %v143_v31 = vcombine.high %v6133_v25, %v6133_v25 }
  0xe0   :  { %1803 = vmatpush1.bf16.msra.mxu0 %v5575_v9  ;;  %1967 = vmatpush1.bf16.msra.mxu1 %v5578_v28  ;;  %v5662_v9 = vld [vmem:[#allocation5 + $0x5e8] ss:$16 sps:$4 sm:$0xff]   ;;  %v5667_v28 = vld [vmem:[#allocation5 + $0x604] ss:$16 sps:$4 sm:$0xff]  }
  0xe1   :  { %1804 = vmatprep.subr.bf16.mxu0 %v5583_v29  ;;  %1968 = vmatprep.subr.bf16.mxu1 %v5586_v30  ;;  %v5670_v29 = vld [vmem:[#allocation5 + $0x60c] ss:$16 sps:$4 sm:$0xff]   ;;  %v5668_v30 = vld [vmem:[#allocation5 + $0x608] ss:$16 sps:$4 sm:$0xff]  }
  0xe4   :  { %1805 = vmatpush1.bf16.msra.mxu0 %v5581_v32  ;;  %1969 = vmatpush1.bf16.msra.mxu1 %v5584_v33  ;;  %v156_v32 = vpack.c.bf16 %v6126_v26, %v6126_v26  ;;  %v5673_v33 = vld [vmem:[#allocation5 + $0x624] ss:$16 sps:$4 sm:$0xff]  }
  0xe5   :  { %1806 = vmatprep.subr.bf16.mxu0 %v5589_v34  ;;  %1970 = vmatprep.subr.bf16.mxu1 %v5592_v35  ;;  %v5676_v34 = vld [vmem:[#allocation5 + $0x62c] ss:$16 sps:$4 sm:$0xff]   ;;  %v5671_v35 = vld [vmem:[#allocation5 + $0x620] ss:$16 sps:$4 sm:$0xff]   ;;  %v5685_v26 = vld [vmem:[#allocation5 + $0x664] ss:$16 sps:$4 sm:$0xff]  }
  0xe8   :  { %1807 = vmatpush1.bf16.msra.mxu0 %v5587_v36  ;;  %1971 = vmatpush1.bf16.msra.mxu1 %v5590_v37  ;;  %v5674_v36 = vld [vmem:[#allocation5 + $0x628] ss:$16 sps:$4 sm:$0xff]   ;;  %v159_v37 = vpack.c.bf16 %v143_v31, %v143_v31 }
  0xe9   :  { %1808 = vmatprep.subr.bf16.mxu0 %v5595_v38  ;;  %1972 = vmatprep.subr.bf16.mxu1 %v5598_v39  ;;  %v5679_v38 = vld [vmem:[#allocation5 + $0x644] ss:$16 sps:$4 sm:$0xff]   ;;  %v5682_v39 = vld [vmem:[#allocation5 + $0x64c] ss:$16 sps:$4 sm:$0xff]  }
  0xea   :  { %v2051_v31 = vld [vmem:[#allocation7 + $0x8] sm:$0xff] }
  0xec   :  { %1809 = vmatpush1.bf16.msra.mxu0 %v5593_v40  ;;  %1973 = vmatpush1.bf16.msra.mxu1 %v5596_v41  ;;  %v5677_v40 = vld [vmem:[#allocation5 + $0x640] ss:$16 sps:$4 sm:$0xff]   ;;  %v5680_v41 = vld [vmem:[#allocation5 + $0x648] ss:$16 sps:$4 sm:$0xff]  }
  0xed   :  { %1810 = vmatprep.subr.bf16.mxu0 %v5601_v42  ;;  %1974 = vmatprep.subr.bf16.mxu1 %v5604_v44  ;;  %v5688_v42 = vld [vmem:[#allocation5 + $0x66c] ss:$16 sps:$4 sm:$0xff]   ;;  %v5683_v44 = vld [vmem:[#allocation5 + $0x660] ss:$16 sps:$4 sm:$0xff]  }
  0xf0   :  { %1811 = vmatpush1.bf16.msra.mxu0 %v5599_v45  ;;  %1975 = vmatpush1.bf16.msra.mxu1 %v5602_v46  ;;  %v5686_v45 = vld [vmem:[#allocation5 + $0x668] ss:$16 sps:$4 sm:$0xff]   ;;  %v5691_v46 = vld [vmem:[#allocation5 + $0x684] ss:$16 sps:$4 sm:$0xff]  }
  0xf1   :  { %1812 = vmatprep.subr.bf16.mxu0 %v5607_v47  ;;  %1976 = vmatprep.subr.bf16.mxu1 %v5610_v48  ;;  %v5694_v47 = vld [vmem:[#allocation5 + $0x68c] ss:$16 sps:$4 sm:$0xff]   ;;  %v5689_v48 = vld [vmem:[#allocation5 + $0x680] ss:$16 sps:$4 sm:$0xff]  }
  0xf4   :  { %1813 = vmatpush1.bf16.msra.mxu0 %v5605_v50  ;;  %1977 = vmatpush1.bf16.msra.mxu1 %v5608_v51  ;;  %v5692_v50 = vld [vmem:[#allocation5 + $0x688] ss:$16 sps:$4 sm:$0xff]   ;;  %v5697_v51 = vld [vmem:[#allocation5 + $0x6a4] ss:$16 sps:$4 sm:$0xff]  }
  0xf5   :  { %1814 = vmatprep.subr.bf16.mxu0 %v5613_v52  ;;  %1978 = vmatprep.subr.bf16.mxu1 %v5616_v53  ;;  %v5700_v52 = vld [vmem:[#allocation5 + $0x6ac] ss:$16 sps:$4 sm:$0xff]   ;;  %v5695_v53 = vld [vmem:[#allocation5 + $0x6a0] ss:$16 sps:$4 sm:$0xff]  }
  0xf8   :  { %1815 = vmatpush1.bf16.msra.mxu0 %v5611_v54  ;;  %1979 = vmatpush1.bf16.msra.mxu1 %v5614_v55  ;;  %v5698_v54 = vld [vmem:[#allocation5 + $0x6a8] ss:$16 sps:$4 sm:$0xff]   ;;  %v5703_v55 = vld [vmem:[#allocation5 + $0x6c4] ss:$16 sps:$4 sm:$0xff]  }
  0xf9   :  { %1816 = vmatprep.subr.bf16.mxu0 %v5619_v56  ;;  %1980 = vmatprep.subr.bf16.mxu1 %v5622_v57  ;;  %v5706_v56 = vld [vmem:[#allocation5 + $0x6cc] ss:$16 sps:$4 sm:$0xff]   ;;  %v5701_v57 = vld [vmem:[#allocation5 + $0x6c0] ss:$16 sps:$4 sm:$0xff]  }
  0xfc   :  { %1817 = vmatpush1.bf16.msra.mxu0 %v5617_v58  ;;  %1981 = vmatpush1.bf16.msra.mxu1 %v5620_v59  ;;  %v5704_v58 = vld [vmem:[#allocation5 + $0x6c8] ss:$16 sps:$4 sm:$0xff]   ;;  %v5709_v59 = vld [vmem:[#allocation5 + $0x6e4] ss:$16 sps:$4 sm:$0xff]  }
  0xfd   :  { %1818 = vmatprep.subr.bf16.mxu0 %v5625_v60  ;;  %1982 = vmatprep.subr.bf16.mxu1 %v5628_v61  ;;  %v5712_v60 = vld [vmem:[#allocation5 + $0x6ec] ss:$16 sps:$4 sm:$0xff]   ;;  %v5707_v61 = vld [vmem:[#allocation5 + $0x6e0] ss:$16 sps:$4 sm:$0xff]  }
 0x100   :  { %1819 = vmatpush1.bf16.msra.mxu0 %v5623_v62  ;;  %1983 = vmatpush1.bf16.msra.mxu1 %v5626_v63  ;;  %v5710_v62 = vld [vmem:[#allocation5 + $0x6e8] ss:$16 sps:$4 sm:$0xff]   ;;  %v5715_v63 = vld [vmem:[#allocation5 + $0x704] ss:$16 sps:$4 sm:$0xff]  }
 0x101   :  { %1820 = vmatprep.subr.bf16.mxu0 %v5631_v0  ;;  %1984 = vmatprep.subr.bf16.mxu1 %v5634_v1  ;;  %v5718_v0 = vld [vmem:[#allocation5 + $0x70c] ss:$16 sps:$4 sm:$0xff]   ;;  %v5713_v1 = vld [vmem:[#allocation5 + $0x700] ss:$16 sps:$4 sm:$0xff]  }
 0x104   :  { %1821 = vmatpush1.bf16.msra.mxu0 %v5629_v2  ;;  %1985 = vmatpush1.bf16.msra.mxu1 %v5632_v3  ;;  %v5716_v2 = vld [vmem:[#allocation5 + $0x708] ss:$16 sps:$4 sm:$0xff]   ;;  %v5721_v3 = vld [vmem:[#allocation5 + $0x724] ss:$16 sps:$4 sm:$0xff]  }
 0x105   :  { %1822 = vmatprep.subr.bf16.mxu0 %v5637_v4  ;;  %1986 = vmatprep.subr.bf16.mxu1 %v5640_v5  ;;  %v5724_v4 = vld [vmem:[#allocation5 + $0x72c] ss:$16 sps:$4 sm:$0xff]   ;;  %v5719_v5 = vld [vmem:[#allocation5 + $0x720] ss:$16 sps:$4 sm:$0xff]  }
 0x108   :  { %1823 = vmatpush1.bf16.msra.mxu0 %v5635_v6  ;;  %1987 = vmatpush1.bf16.msra.mxu1 %v5638_v7  ;;  %v5722_v6 = vld [vmem:[#allocation5 + $0x728] ss:$16 sps:$4 sm:$0xff]   ;;  %v5727_v7 = vld [vmem:[#allocation5 + $0x744] ss:$16 sps:$4 sm:$0xff]  }
 0x109   :  { %1824 = vmatprep.subr.bf16.mxu0 %v5643_v8  ;;  %1988 = vmatprep.subr.bf16.mxu1 %v5646_v10  ;;  %v5730_v8 = vld [vmem:[#allocation5 + $0x74c] ss:$16 sps:$4 sm:$0xff]   ;;  %v5725_v10 = vld [vmem:[#allocation5 + $0x740] ss:$16 sps:$4 sm:$0xff]  }
 0x10c   :  { %1825 = vmatpush1.bf16.msra.mxu0 %v5641_v11  ;;  %1989 = vmatpush1.bf16.msra.mxu1 %v5644_v12  ;;  %v5728_v11 = vld [vmem:[#allocation5 + $0x748] ss:$16 sps:$4 sm:$0xff]   ;;  %v5733_v12 = vld [vmem:[#allocation5 + $0x764] ss:$16 sps:$4 sm:$0xff]  }
 0x10d   :  { %1826 = vmatprep.subr.bf16.mxu0 %v5649_v13  ;;  %1990 = vmatprep.subr.bf16.mxu1 %v5652_v14  ;;  %v5736_v13 = vld [vmem:[#allocation5 + $0x76c] ss:$16 sps:$4 sm:$0xff]   ;;  %v5731_v14 = vld [vmem:[#allocation5 + $0x760] ss:$16 sps:$4 sm:$0xff]  }
 0x110   :  { %1827 = vmatpush1.bf16.msra.mxu0 %v5647_v15  ;;  %1991 = vmatpush1.bf16.msra.mxu1 %v5650_v16  ;;  %v5734_v15 = vld [vmem:[#allocation5 + $0x768] ss:$16 sps:$4 sm:$0xff]   ;;  %v5739_v16 = vld [vmem:[#allocation5 + $0x784] ss:$16 sps:$4 sm:$0xff]  }
 0x111   :  { %1828 = vmatprep.subr.bf16.mxu0 %v5655_v17  ;;  %1992 = vmatprep.subr.bf16.mxu1 %v5658_v18  ;;  %v5742_v17 = vld [vmem:[#allocation5 + $0x78c] ss:$16 sps:$4 sm:$0xff]   ;;  %v5737_v18 = vld [vmem:[#allocation5 + $0x780] ss:$16 sps:$4 sm:$0xff]  }
 0x114   :  { %1829 = vmatpush1.bf16.msra.mxu0 %v5653_v20  ;;  %1993 = vmatpush1.bf16.msra.mxu1 %v5656_v21  ;;  %v5745_v20 = vld [vmem:[#allocation5 + $0x7a4] ss:$16 sps:$4 sm:$0xff]   ;;  %v5748_v21 = vld [vmem:[#allocation5 + $0x7ac] ss:$16 sps:$4 sm:$0xff]  }
 0x115   :  { %1830 = vmatprep.subr.bf16.mxu0 %v5661_v22  ;;  %1994 = vmatprep.subr.bf16.mxu1 %v5664_v24  ;;  %v5743_v22 = vld [vmem:[#allocation5 + $0x7a0] ss:$16 sps:$4 sm:$0xff]   ;;  %v5746_v24 = vld [vmem:[#allocation5 + $0x7a8] ss:$16 sps:$4 sm:$0xff]  }
 0x118   :  { %1831 = vmatpush1.bf16.msra.mxu0 %v5659_v27  ;;  %1995 = vmatpush1.bf16.msra.mxu1 %v5662_v9  ;;  %v5751_v27 = vld [vmem:[#allocation5 + $0x7c4] ss:$16 sps:$4 sm:$0xff]   ;;  %v5754_v9 = vld [vmem:[#allocation5 + $0x7cc] ss:$16 sps:$4 sm:$0xff]  }
 0x119   :  { %1841 = vmatprep.subr.bf16.mxu0 %v5667_v28  ;;  %2005 = vmatprep.subr.bf16.mxu1 %v5670_v29  ;;  %v5749_v28 = vld [vmem:[#allocation5 + $0x7c0] ss:$16 sps:$4 sm:$0xff]   ;;  %v5752_v29 = vld [vmem:[#allocation5 + $0x7c8] ss:$16 sps:$4 sm:$0xff]  }
 0x11b   :  { %1833 = vmatmul.mubr.bf16.vlgmr.msra.gmra.mrb[0].mxu0 %v156_v32  ;;  %1997 = vmatmul.mubr.bf16.vlgmr.msra.gmra.mrb[0].mxu1 %v156_v32  ;;  %v2053_v32 = vld [vmem:[#allocation7 + $0x18] sm:$0xff] }
 0x11c   :  { %1842 = vmatpush1.bf16.msra.mxu0 %v5665_v23  ;;  %2006 = vmatpush1.bf16.msra.mxu1 %v5668_v30  ;;  %v5757_v23 = vld [vmem:[#allocation5 + $0x7e4] ss:$16 sps:$4 sm:$0xff]   ;;  %v5760_v30 = vld [vmem:[#allocation5 + $0x7ec] ss:$16 sps:$4 sm:$0xff]  }
 0x11d   :  { %1843 = vmatprep.subr.bf16.mxu0 %v5673_v33  ;;  %2007 = vmatprep.subr.bf16.mxu1 %v5676_v34  ;;  %v5755_v33 = vld [vmem:[#allocation5 + $0x7e0] ss:$16 sps:$4 sm:$0xff]   ;;  %v5758_v34 = vld [vmem:[#allocation5 + $0x7e8] ss:$16 sps:$4 sm:$0xff]  }
 0x11e   :  { %1873 = vmatprep.mubr.bf16.mxu0 %v159_v37  ;;  %2037 = vmatprep.mubr.bf16.mxu1 %v159_v37  ;;  %v2052_v37 = vld [vmem:[#allocation7 + $0x10] sm:$0xff] }
 0x120   :  { %1844 = vmatpush1.bf16.msra.mxu0 %v5671_v35  ;;  %2008 = vmatpush1.bf16.msra.mxu1 %v5674_v36  ;;  %v5180_v35 = vpack.c.bf16 %v2053_v32, %v2051_v31  ;;  %v2050_v36 = vld [vmem:[#allocation7] sm:$0xff]  ;;  %v2091_v31 = vld [vmem:[#allocation7 + $0x148] sm:$0xff]  ;;  %v2093_v32 = vld [vmem:[#allocation7 + $0x158] sm:$0xff] }
 0x121   :  { %1845 = vmatprep.subr.bf16.mxu0 %v5679_v38  ;;  %2009 = vmatprep.subr.bf16.mxu1 %v5682_v39  ;;  %v2055_v38 = vld [vmem:[#allocation7 + $0x28] sm:$0xff]  ;;  %v2057_v39 = vld [vmem:[#allocation7 + $0x38] sm:$0xff] }
 0x124   :  { %1846 = vmatpush1.bf16.msra.mxu0 %v5677_v40  ;;  %2010 = vmatpush1.bf16.msra.mxu1 %v5680_v41  ;;  %v158_v40 = vpack.c.bf16 %v6133_v25, %v6133_v25  ;;  %v5182_v41 = vpack.c.bf16 %v2052_v37, %v2050_v36  ;;  %v2092_v36 = vld [vmem:[#allocation7 + $0x150] sm:$0xff]  ;;  %v2095_v37 = vld [vmem:[#allocation7 + $0x168] sm:$0xff] }
 0x125   :  { %1847 = vmatprep.subr.bf16.mxu0 %v5685_v26  ;;  %2011 = vmatprep.subr.bf16.mxu1 %v5688_v42  ;;  %v5184_v26 = vpack.c.bf16 %v2057_v39, %v2055_v38  ;;  %v2054_v42 = vld [vmem:[#allocation7 + $0x20] sm:$0xff]  ;;  %v2097_v38 = vld [vmem:[#allocation7 + $0x178] sm:$0xff] }
 0x128   :  { %1848 = vmatpush1.bf16.msra.mxu0 %v5683_v44  ;;  %2012 = vmatpush1.bf16.msra.mxu1 %v5686_v45  ;;  %v2056_v44 = vld [vmem:[#allocation7 + $0x30] sm:$0xff]  ;;  %v2059_v45 = vld [vmem:[#allocation7 + $0x48] sm:$0xff] }
 0x129   :  { %1849 = vmatprep.subr.bf16.mxu0 %v5691_v46  ;;  %2013 = vmatprep.subr.bf16.mxu1 %v5694_v47  ;;  %v2061_v46 = vld [vmem:[#allocation7 + $0x58] sm:$0xff]  ;;  %v5186_v47 = vpack.c.bf16 %v2056_v44, %v2054_v42  ;;  %v2099_v42 = vld [vmem:[#allocation7 + $0x188] sm:$0xff] }
 0x12a   :  { %v2101_v44 = vld [vmem:[#allocation7 + $0x198] sm:$0xff] }
 0x12c   :  { %1850 = vmatpush1.bf16.msra.mxu0 %v5689_v48  ;;  %2014 = vmatpush1.bf16.msra.mxu1 %v5692_v50  ;;  %v5188_v48 = vpack.c.bf16 %v2061_v46, %v2059_v45  ;;  %v2058_v50 = vld [vmem:[#allocation7 + $0x40] sm:$0xff]  ;;  %v5228_v46 = vpack.c.bf16 %v2101_v44, %v2099_v42  ;;  %v2125_v42 = vld [vmem:[#allocation7 + $0x258] sm:$0xff] }
 0x12d   :  { %1851 = vmatprep.subr.bf16.mxu0 %v5697_v51  ;;  %2015 = vmatprep.subr.bf16.mxu1 %v5700_v52  ;;  %v2060_v51 = vld [vmem:[#allocation7 + $0x50] sm:$0xff]  ;;  %v2063_v52 = vld [vmem:[#allocation7 + $0x68] sm:$0xff] }
 0x12e   :  { %v5190_v25 = vpack.c.bf16 %v2060_v51, %v2058_v50  ;;  %v2103_v50 = vld [vmem:[#allocation7 + $0x1a8] sm:$0xff]  ;;  %v2105_v51 = vld [vmem:[#allocation7 + $0x1b8] sm:$0xff] }
 0x130   :  { %1852 = vmatpush1.bf16.msra.mxu0 %v5695_v53  ;;  %2016 = vmatpush1.bf16.msra.mxu1 %v5698_v54  ;;  %v2065_v53 = vld [vmem:[#allocation7 + $0x78] sm:$0xff] }
 0x131   :  { %1853 = vmatprep.subr.bf16.mxu0 %v5703_v55  ;;  %2017 = vmatprep.subr.bf16.mxu1 %v5706_v56  ;;  %v5192_v54 = vpack.c.bf16 %v2065_v53, %v2063_v52  ;;  %v2062_v55 = vld [vmem:[#allocation7 + $0x60] sm:$0xff]  ;;  %v2064_v56 = vld [vmem:[#allocation7 + $0x70] sm:$0xff]  ;;  %v5232_v53 = vpack.c.bf16 %v2105_v51, %v2103_v50  ;;  %v2129_v50 = vld [vmem:[#allocation7 + $0x278] sm:$0xff] }
 0x134   :  { %1854 = vmatpush1.bf16.msra.mxu0 %v5701_v57  ;;  %2018 = vmatpush1.bf16.msra.mxu1 %v5704_v58  ;;  %v2067_v57 = vld [vmem:[#allocation7 + $0x88] sm:$0xff]  ;;  %v2069_v58 = vld [vmem:[#allocation7 + $0x98] sm:$0xff] }
 0x135   :  { %1855 = vmatprep.subr.bf16.mxu0 %v5709_v59  ;;  %2019 = vmatprep.subr.bf16.mxu1 %v5712_v60  ;;  %v5194_v59 = vpack.c.bf16 %v2064_v56, %v2062_v55  ;;  %v5196_v60 = vpack.c.bf16 %v2069_v58, %v2067_v57  ;;  %v2107_v55 = vld [vmem:[#allocation7 + $0x1c8] sm:$0xff]  ;;  %v2109_v56 = vld [vmem:[#allocation7 + $0x1d8] sm:$0xff] }
 0x136   :  { %v5236_v58 = vpack.c.bf16 %v2109_v56, %v2107_v55  ;;  %v2133_v55 = vld [vmem:[#allocation7 + $0x298] sm:$0xff] }
 0x138   :  { %1856 = vmatpush1.bf16.msra.mxu0 %v5707_v61  ;;  %2020 = vmatpush1.bf16.msra.mxu1 %v5710_v62  ;;  %v2066_v61 = vld [vmem:[#allocation7 + $0x80] sm:$0xff]  ;;  %v2068_v62 = vld [vmem:[#allocation7 + $0x90] sm:$0xff] }
 0x139   :  { %1857 = vmatprep.subr.bf16.mxu0 %v5715_v63  ;;  %2021 = vmatprep.subr.bf16.mxu1 %v5718_v0  ;;  %v2071_v63 = vld [vmem:[#allocation7 + $0xa8] sm:$0xff]  ;;  %v2073_v0 = vld [vmem:[#allocation7 + $0xb8] sm:$0xff] }
 0x13c   :  { %1858 = vmatpush1.bf16.msra.mxu0 %v5713_v1  ;;  %2022 = vmatpush1.bf16.msra.mxu1 %v5716_v2  ;;  %v5198_v1 = vpack.c.bf16 %v2068_v62, %v2066_v61  ;;  %v5200_v2 = vpack.c.bf16 %v2073_v0, %v2071_v63  ;;  %v2111_v62 = vld [vmem:[#allocation7 + $0x1e8] sm:$0xff]  ;;  %v2113_v63 = vld [vmem:[#allocation7 + $0x1f8] sm:$0xff] }
 0x13d   :  { %1859 = vmatprep.subr.bf16.mxu0 %v5721_v3  ;;  %2023 = vmatprep.subr.bf16.mxu1 %v5724_v4  ;;  %v2070_v3 = vld [vmem:[#allocation7 + $0xa0] sm:$0xff]  ;;  %v2072_v4 = vld [vmem:[#allocation7 + $0xb0] sm:$0xff]  ;;  %v5240_v0 = vpack.c.bf16 %v2113_v63, %v2111_v62 }
 0x140   :  { %1860 = vmatpush1.bf16.msra.mxu0 %v5719_v5  ;;  %2024 = vmatpush1.bf16.msra.mxu1 %v5722_v6  ;;  %v2075_v5 = vld [vmem:[#allocation7 + $0xc8] sm:$0xff]  ;;  %v2077_v6 = vld [vmem:[#allocation7 + $0xd8] sm:$0xff] }
 0x141   :  { %1861 = vmatprep.subr.bf16.mxu0 %v5727_v7  ;;  %2025 = vmatprep.subr.bf16.mxu1 %v5730_v8  ;;  %v5202_v7 = vpack.c.bf16 %v2072_v4, %v2070_v3  ;;  %v5204_v8 = vpack.c.bf16 %v2077_v6, %v2075_v5  ;;  %v2115_v4 = vld [vmem:[#allocation7 + $0x208] sm:$0xff]  ;;  %v2117_v5 = vld [vmem:[#allocation7 + $0x218] sm:$0xff] }
 0x142   :  { %v5244_v6 = vpack.c.bf16 %v2117_v5, %v2115_v4 }
 0x144   :  { %1862 = vmatpush1.bf16.msra.mxu0 %v5725_v10  ;;  %2026 = vmatpush1.bf16.msra.mxu1 %v5728_v11  ;;  %v2074_v10 = vld [vmem:[#allocation7 + $0xc0] sm:$0xff]  ;;  %v2076_v11 = vld [vmem:[#allocation7 + $0xd0] sm:$0xff] }
 0x145   :  { %1863 = vmatprep.subr.bf16.mxu0 %v5733_v12  ;;  %2027 = vmatprep.subr.bf16.mxu1 %v5736_v13  ;;  %v2079_v12 = vld [vmem:[#allocation7 + $0xe8] sm:$0xff]  ;;  %v2081_v13 = vld [vmem:[#allocation7 + $0xf8] sm:$0xff] }
 0x148   :  { %1864 = vmatpush1.bf16.msra.mxu0 %v5731_v14  ;;  %2028 = vmatpush1.bf16.msra.mxu1 %v5734_v15  ;;  %v5206_v14 = vpack.c.bf16 %v2076_v11, %v2074_v10  ;;  %v5208_v15 = vpack.c.bf16 %v2081_v13, %v2079_v12  ;;  %v5767_v10 = vld [vmem:[#allocation8 + $0x24] ss:$16 sps:$4 sm:$0xff]   ;;  %v5765_v11 = vld [vmem:[#allocation8 + $0x20] ss:$16 sps:$4 sm:$0xff]   ;;  %v6142_v12 = vsub.s32 0, %v6109_v43 }
 0x149   :  { %1865 = vmatprep.subr.bf16.mxu0 %v5739_v16  ;;  %2029 = vmatprep.subr.bf16.mxu1 %v5742_v17  ;;  %v2078_v16 = vld [vmem:[#allocation7 + $0xe0] sm:$0xff]  ;;  %v2080_v17 = vld [vmem:[#allocation7 + $0xf0] sm:$0xff] }
 0x14a   :  { %v6147_v13 = vld [vmem:[%s6252_s3] sm:$0xf] }
 0x14c   :  { %1866 = vmatpush1.bf16.msra.mxu0 %v5737_v18  ;;  %2030 = vmatpush1.bf16.msra.mxu1 %v5740_v19  ;;  %v2083_v18 = vld [vmem:[#allocation7 + $0x108] sm:$0xff]  ;;  %v2085_v19 = vld [vmem:[#allocation7 + $0x118] sm:$0xff] }
 0x14d   :  { %1867 = vmatprep.subr.bf16.mxu0 %v5745_v20  ;;  %2031 = vmatprep.subr.bf16.mxu1 %v5748_v21  ;;  %v5210_v20 = vpack.c.bf16 %v2080_v17, %v2078_v16  ;;  %v5212_v21 = vpack.c.bf16 %v2085_v19, %v2083_v18  ;;  %v421_v16 = vrot.slane %v6147_v13, %v6142_v12 }
 0x150   :  { %1868 = vmatpush1.bf16.msra.mxu0 %v5743_v22  ;;  %2032 = vmatpush1.bf16.msra.mxu1 %v5746_v24  ;;  %v2082_v22 = vld [vmem:[#allocation7 + $0x100] sm:$0xff]  ;;  %v2084_v24 = vld [vmem:[#allocation7 + $0x110] sm:$0xff] }
 0x151   :  { %1869 = vmatprep.subr.bf16.mxu0 %v5751_v27  ;;  %2033 = vmatprep.subr.bf16.mxu1 %v5754_v9  ;;  %v2087_v27 = vld [vmem:[#allocation7 + $0x128] sm:$0xff]  ;;  %v2089_v9 = vld [vmem:[#allocation7 + $0x138] sm:$0xff] }
 0x154   :  { %1870 = vmatpush1.bf16.msra.mxu0 %v5749_v28  ;;  %2034 = vmatpush1.bf16.msra.mxu1 %v5752_v29  ;;  %v5214_v28 = vpack.c.bf16 %v2084_v24, %v2082_v22  ;;  %v5216_v29 = vpack.c.bf16 %v2089_v9, %v2087_v27  ;;  %v2114_v27 = vld [vmem:[#allocation7 + $0x200] sm:$0xff]  ;;  %v2116_v9 = vld [vmem:[#allocation7 + $0x210] sm:$0xff] }
 0x155   :  { %1871 = vmatprep.subr.bf16.mxu0 %v5757_v23  ;;  %2035 = vmatprep.subr.bf16.mxu1 %v5760_v30  ;;  %v2086_v23 = vld [vmem:[#allocation7 + $0x120] sm:$0xff]  ;;  %v2088_v30 = vld [vmem:[#allocation7 + $0x130] sm:$0xff] }
 0x158   :  { %1872 = vmatpush1.bf16.msra.mxu0 %v5755_v33  ;;  %2036 = vmatpush1.bf16.msra.mxu1 %v5758_v34  ;;  %v5218_v33 = vpack.c.bf16 %v2088_v30, %v2086_v23  ;;  %v5220_v34 = vpack.c.bf16 %v2093_v32, %v2091_v31  ;;  %v2119_v31 = vld [vmem:[#allocation7 + $0x228] sm:$0xff]  ;;  %v2121_v32 = vld [vmem:[#allocation7 + $0x238] sm:$0xff] }
 0x159   :  { %5181 = vmatprep.subr.bf16.mxu0 %v5180_v35  ;;  %v2090_v35 = vld [vmem:[#allocation7 + $0x140] sm:$0xff] }
 0x15a   :  { %v5222_v39 = vpack.c.bf16 %v2092_v36, %v2090_v35  ;;  %v5246_v36 = vpack.c.bf16 %v2116_v9, %v2114_v27  ;;  %v2146_v27 = vld [vmem:[#allocation7 + $0x300] sm:$0xff]  ;;  %v2148_v9 = vld [vmem:[#allocation7 + $0x310] sm:$0xff] }
 0x15b   :  { %1874 = vmatmul.mubr.bf16.vlgmr.msra.gmra.mrb[0].mxu0 %v158_v40  ;;  %2038 = vmatmul.mubr.bf16.vlgmr.msra.gmra.mrb[0].mxu1 %v158_v40  ;;  %v5224_v40 = vpack.c.bf16 %v2097_v38, %v2095_v37  ;;  %v5248_v38 = vpack.c.bf16 %v2121_v32, %v2119_v31  ;;  %v2150_v31 = vld [vmem:[#allocation7 + $0x320] sm:$0xff]  ;;  %v2152_v32 = vld [vmem:[#allocation7 + $0x330] sm:$0xff] }
 0x15c   :  { %5183 = vmatpush1.bf16.msra.mxu0 %v5182_v41  ;;  %v2094_v41 = vld [vmem:[#allocation7 + $0x160] sm:$0xff] }
 0x15d   :  { %5185 = vmatprep.subr.bf16.mxu0 %v5184_v26  ;;  %v2096_v26 = vld [vmem:[#allocation7 + $0x170] sm:$0xff] }
 0x15e   :  { %v5226_v45 = vpack.c.bf16 %v2096_v26, %v2094_v41  ;;  %v2123_v26 = vld [vmem:[#allocation7 + $0x248] sm:$0xff] }
 0x160   :  { %5187 = vmatpush1.bf16.msra.mxu0 %v5186_v47  ;;  %v2098_v47 = vld [vmem:[#allocation7 + $0x180] sm:$0xff] }
 0x161   :  { %5189 = vmatprep.subr.bf16.mxu0 %v5188_v48  ;;  %v2100_v48 = vld [vmem:[#allocation7 + $0x190] sm:$0xff] }
 0x162   :  { %v5230_v52 = vpack.c.bf16 %v2100_v48, %v2098_v47  ;;  %v2124_v47 = vld [vmem:[#allocation7 + $0x250] sm:$0xff]  ;;  %v2127_v48 = vld [vmem:[#allocation7 + $0x268] sm:$0xff] }
 0x164   :  { %5191 = vmatpush1.bf16.msra.mxu0 %v5190_v25  ;;  %v2102_v25 = vld [vmem:[#allocation7 + $0x1a0] sm:$0xff] }
 0x165   :  { %5193 = vmatprep.subr.bf16.mxu0 %v5192_v54  ;;  %v2104_v54 = vld [vmem:[#allocation7 + $0x1b0] sm:$0xff] }
 0x166   :  { %v5234_v57 = vpack.c.bf16 %v2104_v54, %v2102_v25  ;;  %v2128_v25 = vld [vmem:[#allocation7 + $0x270] sm:$0xff]  ;;  %v2131_v54 = vld [vmem:[#allocation7 + $0x288] sm:$0xff] }
 0x168   :  { %5195 = vmatpush1.bf16.msra.mxu0 %v5194_v59  ;;  %v2106_v59 = vld [vmem:[#allocation7 + $0x1c0] sm:$0xff] }
 0x169   :  { %5197 = vmatprep.subr.bf16.mxu0 %v5196_v60  ;;  %v2108_v60 = vld [vmem:[#allocation7 + $0x1d0] sm:$0xff] }
 0x16a   :  { %v5238_v61 = vpack.c.bf16 %v2108_v60, %v2106_v59  ;;  %v2132_v59 = vld [vmem:[#allocation7 + $0x290] sm:$0xff]  ;;  %v2135_v60 = vld [vmem:[#allocation7 + $0x2a8] sm:$0xff] }
 0x16c   :  { %5199 = vmatpush1.bf16.msra.mxu0 %v5198_v1  ;;  %v2110_v1 = vld [vmem:[#allocation7 + $0x1e0] sm:$0xff] }
 0x16d   :  { %5201 = vmatprep.subr.bf16.mxu0 %v5200_v2  ;;  %v2112_v2 = vld [vmem:[#allocation7 + $0x1f0] sm:$0xff] }
 0x16e   :  { %v5242_v3 = vpack.c.bf16 %v2112_v2, %v2110_v1  ;;  %v2136_v1 = vld [vmem:[#allocation7 + $0x2b0] sm:$0xff]  ;;  %v2139_v2 = vld [vmem:[#allocation7 + $0x2c8] sm:$0xff] }
 0x170   :  { %5203 = vmatpush1.bf16.msra.mxu0 %v5202_v7  ;;  %v5762_v7 = vld [vmem:[#allocation8] ss:$16 sps:$4 sm:$0xff]  }
 0x171   :  { %5205 = vmatprep.subr.bf16.mxu0 %v5204_v8  ;;  %v5764_v8 = vld [vmem:[#allocation8 + $0x4] ss:$16 sps:$4 sm:$0xff]  }
 0x172   :  { %2552 = vmatprep.subr.bf16.mxu1 %v5764_v8  ;;  %v2143_v8 = vld [vmem:[#allocation7 + $0x2e8] sm:$0xff] }
 0x173   :  { %2553 = vmatpush1.bf16.msra.mxu1 %v5762_v7  ;;  %v2140_v7 = vld [vmem:[#allocation7 + $0x2d0] sm:$0xff] }
 0x174   :  { %5207 = vmatpush1.bf16.msra.mxu0 %v5206_v14  ;;  %2554 = vmatprep.subr.bf16.mxu1 %v5767_v10  ;;  %v6150_v14 = vsub.s32 1, %v6109_v43  ;;  %v2145_v10 = vld [vmem:[#allocation7 + $0x2f8] sm:$0xff] }
 0x175   :  { %5209 = vmatprep.subr.bf16.mxu0 %v5208_v15  ;;  %v6153_v15 = vsub.s32 3, %v6109_v43 }
 0x176   :  { %v425_v17 = vrot.slane %v6147_v13, %v6150_v14 }
 0x177   :  { %2555 = vmatpush1.bf16.msra.mxu1 %v5765_v11  ;;  %v433_v18 = vrot.slane %v6147_v13, %v6153_v15 }
 0x178   :  { %5211 = vmatpush1.bf16.msra.mxu0 %v5210_v20 }
 0x179   :  { %5213 = vmatprep.subr.bf16.mxu0 %v5212_v21 }
 0x17c   :  { %5215 = vmatpush1.bf16.msra.mxu0 %v5214_v28 }
 0x17d   :  { %5217 = vmatprep.subr.bf16.mxu0 %v5216_v29 }
 0x180   :  { %5219 = vmatpush1.bf16.msra.mxu0 %v5218_v33 }
 0x181   :  { %5221 = vmatprep.subr.bf16.mxu0 %v5220_v34 }
 0x184   :  { %5223 = vmatpush1.bf16.msra.mxu0 %v5222_v39  ;;  %v2118_v39 = vld [vmem:[#allocation7 + $0x220] sm:$0xff] }
 0x185   :  { %5225 = vmatprep.subr.bf16.mxu0 %v5224_v40  ;;  %v2120_v40 = vld [vmem:[#allocation7 + $0x230] sm:$0xff] }
 0x186   :  { %v5250_v44 = vpack.c.bf16 %v2120_v40, %v2118_v39  ;;  %v2159_v39 = vld [vmem:[#allocation7 + $0x368] sm:$0xff]  ;;  %v2161_v40 = vld [vmem:[#allocation7 + $0x378] sm:$0xff] }
 0x188   :  { %5227 = vmatpush1.bf16.msra.mxu0 %v5226_v45  ;;  %v5252_v45 = vpack.c.bf16 %v2125_v42, %v2123_v26  ;;  %v5288_v26 = vpack.c.bf16 %v2161_v40, %v2159_v39  ;;  %v2158_v42 = vld [vmem:[#allocation7 + $0x360] sm:$0xff] }
 0x189   :  { %5229 = vmatprep.subr.bf16.mxu0 %v5228_v46  ;;  %v2122_v46 = vld [vmem:[#allocation7 + $0x240] sm:$0xff] }
 0x18a   :  { %v5254_v51 = vpack.c.bf16 %v2124_v47, %v2122_v46  ;;  %v2165_v46 = vld [vmem:[#allocation7 + $0x398] sm:$0xff] }
 0x18c   :  { %5231 = vmatpush1.bf16.msra.mxu0 %v5230_v52  ;;  %v5256_v52 = vpack.c.bf16 %v2129_v50, %v2127_v48  ;;  %v2162_v50 = vld [vmem:[#allocation7 + $0x380] sm:$0xff] }
 0x18d   :  { %5233 = vmatprep.subr.bf16.mxu0 %v5232_v53  ;;  %v2126_v53 = vld [vmem:[#allocation7 + $0x260] sm:$0xff] }
 0x18e   :  { %v5258_v56 = vpack.c.bf16 %v2128_v25, %v2126_v53  ;;  %v2169_v53 = vld [vmem:[#allocation7 + $0x3b8] sm:$0xff] }
 0x190   :  { %5235 = vmatpush1.bf16.msra.mxu0 %v5234_v57  ;;  %v5260_v57 = vpack.c.bf16 %v2133_v55, %v2131_v54  ;;  %v2166_v55 = vld [vmem:[#allocation7 + $0x3a0] sm:$0xff] }
 0x191   :  { %5237 = vmatprep.subr.bf16.mxu0 %v5236_v58  ;;  %v2130_v58 = vld [vmem:[#allocation7 + $0x280] sm:$0xff] }
 0x192   :  { %v5262_v62 = vpack.c.bf16 %v2132_v59, %v2130_v58  ;;  %v2173_v58 = vld [vmem:[#allocation7 + $0x3d8] sm:$0xff] }
 0x194   :  { %5239 = vmatpush1.bf16.msra.mxu0 %v5238_v61  ;;  %v2137_v61 = vld [vmem:[#allocation7 + $0x2b8] sm:$0xff] }
 0x195   :  { %5241 = vmatprep.subr.bf16.mxu0 %v5240_v0  ;;  %v5264_v63 = vpack.c.bf16 %v2137_v61, %v2135_v60  ;;  %v2134_v0 = vld [vmem:[#allocation7 + $0x2a0] sm:$0xff]  ;;  %v6164_v60 = vsub.s32 2, %v6109_v43 }
 0x196   :  { %v5266_v4 = vpack.c.bf16 %v2136_v1, %v2134_v0  ;;  %v2175_v0 = vld [vmem:[#allocation7 + $0x3e8] sm:$0xff]  ;;  %v2177_v1 = vld [vmem:[#allocation7 + $0x3f8] sm:$0xff] }
 0x198   :  { %5243 = vmatpush1.bf16.msra.mxu0 %v5242_v3  ;;  %v2141_v3 = vld [vmem:[#allocation7 + $0x2d8] sm:$0xff] }
 0x199   :  { %5245 = vmatprep.subr.bf16.mxu0 %v5244_v6  ;;  %v5268_v5 = vpack.c.bf16 %v2141_v3, %v2139_v2  ;;  %v2138_v6 = vld [vmem:[#allocation7 + $0x2c0] sm:$0xff]  ;;  %v429_v3 = vrot.slane %v6147_v13, %v6164_v60 }
 0x19a   :  { %v5270_v11 = vpack.c.bf16 %v2140_v7, %v2138_v6  ;;  %v2176_v6 = vld [vmem:[#allocation7 + $0x3f0] sm:$0xff] }
 0x19b   :  { %v5776_v13 = vld [vmem:[#allocation8 + $0x84] ss:$16 sps:$4 sm:$0xff]  }
 0x22e   :  { %v1875_v19 = vpop.f32.mrb[0].mxu0  ;;  %v6161_v20 = vpop.f32.mrb[0].mxu1 }
 0x22f   :  { %v5308_v21 = vadd.f32 %v1875_v19, %v421_v16  ;;  %v1877_v22 = vpop.f32.mrb[1].mxu0  ;;  %v2041_v24 = vpop.f32.mrb[1].mxu1  ;;  %v5272_v16 = vpack.c.bf16 %v2145_v10, %v2143_v8  ;;  %v2147_v19 = vld [vmem:[#allocation7 + $0x308] sm:$0xff]  ;;  %v5310_v8 = vadd.f32 %v6161_v20, %v429_v3  ;;  %v5782_v20 = vld [vmem:[#allocation8 + $0xc4] ss:$16 sps:$4 sm:$0xff]  }
 0x230   :  { %v5309_v28 = vadd.f32 %v1877_v22, %v425_v17  ;;  %v5311_v29 = vadd.f32 %v2041_v24, %v433_v18  ;;  %v1879_v23 = vpop.f32.mrb[2].mxu0  ;;  %v2043_v30 = vpop.f32.mrb[2].mxu1  ;;  %v2142_v17 = vld [vmem:[#allocation7 + $0x2e0] sm:$0xff]  ;;  %v2144_v18 = vld [vmem:[#allocation7 + $0x2f0] sm:$0xff]  ;;  %v2719_v3 = vld [vmem:[#allocation10 + $0x268] sm:$0xff] }
 0x231   :  { %v1880_v33 = vpop.f32.mrb[3].mxu0  ;;  %v2044_v34 = vpop.f32.mrb[3].mxu1  ;;  %v2046_v37 = vmax.f32 %v5308_v21, 0.0  ;;  %v2149_v21 = vld [vmem:[#allocation7 + $0x318] sm:$0xff]  ;;  %v5274_v22 = vpack.c.bf16 %v2144_v18, %v2142_v17  ;;  %v5278_v23 = vpack.c.bf16 %v2148_v9, %v2146_v27  ;;  %v2048_v10 = vmax.f32 %v5310_v8, 0.0 }
 0x232   :  { %v2047_v35 = vmax.f32 %v5309_v28, 0.0  ;;  %v2049_v41 = vmax.f32 %v5311_v29, 0.0  ;;  %v5276_v24 = vpack.c.bf16 %v2149_v21, %v2147_v19  ;;  %v2151_v28 = vld [vmem:[#allocation7 + $0x328] sm:$0xff]  ;;  %v2153_v29 = vld [vmem:[#allocation7 + $0x338] sm:$0xff]  ;;  %v5773_v17 = vld [vmem:[#allocation8 + $0x64] ss:$16 sps:$4 sm:$0xff]  }
 0x233   :  { %v5280_v30 = vpack.c.bf16 %v2153_v29, %v2151_v28  ;;  %v2155_v33 = vld [vmem:[#allocation7 + $0x348] sm:$0xff]  ;;  %v2157_v34 = vld [vmem:[#allocation7 + $0x358] sm:$0xff]  ;;  %v5771_v18 = vld [vmem:[#allocation8 + $0x60] ss:$16 sps:$4 sm:$0xff]  }
 0x234   :  { %2254 = vmatprep.mubr.f32.mxu0 %v2047_v35  ;;  %v5282_v35 = vpack.c.bf16 %v2152_v32, %v2150_v31  ;;  %v5774_v19 = vld [vmem:[#allocation8 + $0x80] ss:$16 sps:$4 sm:$0xff]   ;;  %v5779_v21 = vld [vmem:[#allocation8 + $0xa4] ss:$16 sps:$4 sm:$0xff]   ;;  %v5788_v29 = vld [vmem:[#allocation8 + $0xc] ss:$16 sps:$4 sm:$0xff]  }
 0x235   :  { %2255 = vmatmul.mubr.f32.vlgmr.msra.gmra.mrb[4].mxu0 %v2046_v37  ;;  %v2154_v37 = vld [vmem:[#allocation7 + $0x340] sm:$0xff] }
 0x236   :  { %5247 = vmatpush1.bf16.msra.mxu0 %v5246_v36  ;;  %2325 = vmatprep.mubr.f32.mxu0 %v2049_v41  ;;  %v5284_v36 = vpack.c.bf16 %v2157_v34, %v2155_v33  ;;  %v5780_v27 = vld [vmem:[#allocation8 + $0xc0] ss:$16 sps:$4 sm:$0xff]   ;;  %v5785_v9 = vld [vmem:[#allocation8 + $0xe4] ss:$16 sps:$4 sm:$0xff]   ;;  %v2651_v33 = vld [vmem:[#allocation10 + $0x48] sm:$0xff] }
 0x237   :  { %5249 = vmatprep.subr.bf16.mxu0 %v5248_v38  ;;  %v2156_v38 = vld [vmem:[#allocation7 + $0x350] sm:$0xff]  ;;  %v2655_v34 = vld [vmem:[#allocation10 + $0x68] sm:$0xff] }
 0x238   :  { %v5286_v41 = vpack.c.bf16 %v2156_v38, %v2154_v37  ;;  %v5783_v28 = vld [vmem:[#allocation8 + $0xe0] ss:$16 sps:$4 sm:$0xff]   ;;  %v2659_v37 = vld [vmem:[#allocation10 + $0x88] sm:$0xff] }
 0x239   :  { %v2663_v38 = vld [vmem:[#allocation10 + $0xa8] sm:$0xff] }
 0x23a   :  { %5251 = vmatpush1.bf16.msra.mxu0 %v5250_v44  ;;  %v2160_v44 = vld [vmem:[#allocation7 + $0x370] sm:$0xff]  ;;  %v4942_v39 = vcombine.high %v2659_v37, %v2663_v38  ;;  %v4941_v40 = vcombine.low %v2659_v37, %v2663_v38 }
 0x23b   :  { %5253 = vmatprep.subr.bf16.mxu0 %v5252_v45  ;;  %v2163_v45 = vld [vmem:[#allocation7 + $0x388] sm:$0xff]  ;;  %v5290_v47 = vpack.c.bf16 %v2160_v44, %v2158_v42  ;;  %v107_v38 = vld [vmem:[%s6250_s1] sm:$0x3] }
 0x23c   :  { %v5292_v48 = vpack.c.bf16 %v2165_v46, %v2163_v45  ;;  %v2675_v45 = vld [vmem:[#allocation10 + $0x108] sm:$0xff] }
 0x23d   :  { %v2679_v46 = vld [vmem:[#allocation10 + $0x128] sm:$0xff] }
 0x23e   :  { %5255 = vmatpush1.bf16.msra.mxu0 %v5254_v51  ;;  %v2164_v51 = vld [vmem:[#allocation7 + $0x390] sm:$0xff] }
 0x23f   :  { %5257 = vmatprep.subr.bf16.mxu0 %v5256_v52  ;;  %v2167_v52 = vld [vmem:[#allocation7 + $0x3a8] sm:$0xff]  ;;  %v5294_v25 = vpack.c.bf16 %v2164_v51, %v2162_v50 }
 0x240   :  { %v5296_v54 = vpack.c.bf16 %v2169_v53, %v2167_v52  ;;  %v2683_v50 = vld [vmem:[#allocation10 + $0x148] sm:$0xff] }
 0x241   :  { %v2687_v51 = vld [vmem:[#allocation10 + $0x168] sm:$0xff] }
 0x242   :  { %5259 = vmatpush1.bf16.msra.mxu0 %v5258_v56  ;;  %v2168_v56 = vld [vmem:[#allocation7 + $0x3b0] sm:$0xff]  ;;  %v4966_v52 = vcombine.high %v2683_v50, %v2687_v51  ;;  %v4965_v53 = vcombine.low %v2683_v50, %v2687_v51  ;;  %v5795_v50 = vld [vmem:[#allocation8 + $0x68] ss:$16 sps:$4 sm:$0xff]   ;;  %v5800_v51 = vld [vmem:[#allocation8 + $0x8c] ss:$16 sps:$4 sm:$0xff]  }
 0x243   :  { %5261 = vmatprep.subr.bf16.mxu0 %v5260_v57  ;;  %v2171_v57 = vld [vmem:[#allocation7 + $0x3c8] sm:$0xff]  ;;  %v5298_v59 = vpack.c.bf16 %v2168_v56, %v2166_v55 }
 0x244   :  { %v5300_v61 = vpack.c.bf16 %v2173_v58, %v2171_v57  ;;  %v2699_v57 = vld [vmem:[#allocation10 + $0x1c8] sm:$0xff] }
 0x245   :  { %v2703_v58 = vld [vmem:[#allocation10 + $0x1e8] sm:$0xff] }
 0x246   :  { %5263 = vmatpush1.bf16.msra.mxu0 %v5262_v62  ;;  %v2170_v62 = vld [vmem:[#allocation7 + $0x3c0] sm:$0xff] }
 0x247   :  { %5265 = vmatprep.subr.bf16.mxu0 %v5264_v63  ;;  %v2172_v63 = vld [vmem:[#allocation7 + $0x3d0] sm:$0xff] }
 0x248   :  { %v5302_v2 = vpack.c.bf16 %v2172_v63, %v2170_v62  ;;  %v2707_v62 = vld [vmem:[#allocation10 + $0x208] sm:$0xff] }
 0x249   :  { %v2711_v63 = vld [vmem:[#allocation10 + $0x228] sm:$0xff] }
 0x24a   :  { %5267 = vmatpush1.bf16.msra.mxu0 %v5266_v4  ;;  %v5304_v4 = vpack.c.bf16 %v2177_v1, %v2175_v0  ;;  %v4990_v0 = vcombine.high %v2707_v62, %v2711_v63  ;;  %v4989_v1 = vcombine.low %v2707_v62, %v2711_v63  ;;  %v2654_v62 = vld [vmem:[#allocation10 + $0x60] sm:$0xff] }
 0x24b   :  { %5269 = vmatprep.subr.bf16.mxu0 %v5268_v5  ;;  %v2174_v5 = vld [vmem:[#allocation7 + $0x3e0] sm:$0xff] }
 0x24c   :  { %v5306_v7 = vpack.c.bf16 %v2176_v6, %v2174_v5  ;;  %v2723_v6 = vld [vmem:[#allocation10 + $0x288] sm:$0xff] }
 0x24e   :  { %5271 = vmatpush1.bf16.msra.mxu0 %v5270_v11  ;;  %v5770_v11 = vld [vmem:[#allocation8 + $0x44] ss:$16 sps:$4 sm:$0xff]  }
 0x24f   :  { %5273 = vmatprep.subr.bf16.mxu0 %v5272_v16  ;;  %v5768_v16 = vld [vmem:[#allocation8 + $0x40] ss:$16 sps:$4 sm:$0xff]   ;;  %2556 = vmatprep.subr.bf16.mxu1 %v5770_v11  ;;  %v2731_v11 = vld [vmem:[#allocation10 + $0x2c8] sm:$0xff] }
 0x250   :  { %2557 = vmatpush1.bf16.msra.mxu1 %v5768_v16  ;;  %v2735_v16 = vld [vmem:[#allocation10 + $0x2e8] sm:$0xff] }
 0x251   :  { %2558 = vmatprep.subr.bf16.mxu1 %v5773_v17  ;;  %v5014_v17 = vcombine.high %v2731_v11, %v2735_v16 }
 0x252   :  { %5275 = vmatpush1.bf16.msra.mxu0 %v5274_v22  ;;  %v5777_v22 = vld [vmem:[#allocation8 + $0xa0] ss:$16 sps:$4 sm:$0xff]  }
 0x253   :  { %5277 = vmatprep.subr.bf16.mxu0 %v5276_v24  ;;  %v5978_v24 = vmov 0  }
 0x254   :  { %2559 = vmatpush1.bf16.msra.mxu1 %v5771_v18  ;;  %2584 = vmatprep.mubr.bf16.mxu1 %v5978_v24  ;;  %v5013_v18 = vcombine.low %v2731_v11, %v2735_v16  ;;  %v2678_v11 = vld [vmem:[#allocation10 + $0x120] sm:$0xff] }
 0x255   :  { %2560 = vmatprep.subr.bf16.mxu1 %v5776_v13  ;;  %v2739_v13 = vld [vmem:[#allocation10 + $0x308] sm:$0xff] }
 0x256   :  { %5279 = vmatpush1.bf16.msra.mxu0 %v5278_v23  ;;  %v2643_v23 = vld [vmem:[#allocation10 + $0x8] sm:$0xff] }
 0x257   :  { %5281 = vmatprep.subr.bf16.mxu0 %v5280_v30  ;;  %v2647_v30 = vld [vmem:[#allocation10 + $0x28] sm:$0xff] }
 0x258   :  { %2561 = vmatpush1.bf16.msra.mxu1 %v5774_v19  ;;  %v4925_v31 = vcombine.low %v2643_v23, %v2647_v30  ;;  %v4926_v32 = vcombine.high %v2643_v23, %v2647_v30  ;;  %v2743_v19 = vld [vmem:[#allocation10 + $0x328] sm:$0xff] }
 0x259   :  { %2562 = vmatprep.subr.bf16.mxu1 %v5779_v21  ;;  %v5022_v21 = vcombine.high %v2739_v13, %v2743_v19 }
 0x25a   :  { %5283 = vmatpush1.bf16.msra.mxu0 %v5282_v35  ;;  %v4934_v35 = vcombine.high %v2651_v33, %v2655_v34 }
 0x25b   :  { %5285 = vmatprep.subr.bf16.mxu0 %v5284_v36  ;;  %v4933_v36 = vcombine.low %v2651_v33, %v2655_v34 }
 0x25c   :  { %2563 = vmatpush1.bf16.msra.mxu1 %v5777_v22  ;;  %v5021_v22 = vcombine.low %v2739_v13, %v2743_v19  ;;  %v2686_v13 = vld [vmem:[#allocation10 + $0x160] sm:$0xff] }
 0x25d   :  { %2564 = vmatprep.subr.bf16.mxu1 %v5782_v20  ;;  %v2747_v20 = vld [vmem:[#allocation10 + $0x348] sm:$0xff] }
 0x25e   :  { %5287 = vmatpush1.bf16.msra.mxu0 %v5286_v41  ;;  %v2667_v41 = vld [vmem:[#allocation10 + $0xc8] sm:$0xff] }
 0x25f   :  { %5289 = vmatprep.subr.bf16.mxu0 %v5288_v26  ;;  %v2671_v26 = vld [vmem:[#allocation10 + $0xe8] sm:$0xff] }
 0x260   :  { %2565 = vmatpush1.bf16.msra.mxu1 %v5780_v27  ;;  %v4950_v42 = vcombine.high %v2667_v41, %v2671_v26  ;;  %v4949_v44 = vcombine.low %v2667_v41, %v2671_v26  ;;  %v2751_v27 = vld [vmem:[#allocation10 + $0x368] sm:$0xff] }
 0x261   :  { %2566 = vmatprep.subr.bf16.mxu1 %v5785_v9  ;;  %v5030_v9 = vcombine.high %v2747_v20, %v2751_v27  ;;  %v5786_v26 = vld [vmem:[#allocation8 + $0x8] ss:$16 sps:$4 sm:$0xff]  }
 0x262   :  { %5291 = vmatpush1.bf16.msra.mxu0 %v5290_v47  ;;  %v4958_v47 = vcombine.high %v2675_v45, %v2679_v46 }
 0x263   :  { %5293 = vmatprep.subr.bf16.mxu0 %v5292_v48  ;;  %v4957_v48 = vcombine.low %v2675_v45, %v2679_v46  ;;  %v5789_v45 = vld [vmem:[#allocation8 + $0x28] ss:$16 sps:$4 sm:$0xff]   ;;  %v5794_v46 = vld [vmem:[#allocation8 + $0x4c] ss:$16 sps:$4 sm:$0xff]  }
 0x264   :  { %2567 = vmatpush1.bf16.msra.mxu1 %v5783_v28  ;;  %v5029_v28 = vcombine.low %v2747_v20, %v2751_v27  ;;  %v2694_v20 = vld [vmem:[#allocation10 + $0x1a0] sm:$0xff] }
 0x265   :  { %2593 = vmatprep.subr.bf16.mxu1 %v5788_v29  ;;  %v2178_v29 = vld [vmem:[%s6254_s5] sm:$0x3] }
 0x266   :  { %5295 = vmatpush1.bf16.msra.mxu0 %v5294_v25  ;;  %v2691_v25 = vld [vmem:[#allocation10 + $0x188] sm:$0xff]  ;;  %v2183_v23 = vrot.slane %v2178_v29, %v6142_v12  ;;  %v2187_v30 = vrot.slane %v2178_v29, %v6150_v14  ;;  %v2702_v29 = vld [vmem:[#allocation10 + $0x1e0] sm:$0xff] }
 0x267   :  { %5297 = vmatprep.subr.bf16.mxu0 %v5296_v54  ;;  %v2695_v54 = vld [vmem:[#allocation10 + $0x1a8] sm:$0xff] }
 0x268   :  { %v4974_v55 = vcombine.high %v2691_v25, %v2695_v54  ;;  %v4973_v56 = vcombine.low %v2691_v25, %v2695_v54  ;;  %v5801_v25 = vld [vmem:[#allocation8 + $0xa8] ss:$16 sps:$4 sm:$0xff]   ;;  %v5806_v54 = vld [vmem:[#allocation8 + $0xcc] ss:$16 sps:$4 sm:$0xff]  }
 0x26a   :  { %5299 = vmatpush1.bf16.msra.mxu0 %v5298_v59  ;;  %v4982_v59 = vcombine.high %v2699_v57, %v2703_v58 }
 0x26b   :  { %5301 = vmatprep.subr.bf16.mxu0 %v5300_v61  ;;  %v4981_v61 = vcombine.low %v2699_v57, %v2703_v58  ;;  %v2646_v57 = vld [vmem:[#allocation10 + $0x20] sm:$0xff]  ;;  %v5807_v58 = vld [vmem:[#allocation8 + $0xe8] ss:$16 sps:$4 sm:$0xff]  }
 0x26e   :  { %5303 = vmatpush1.bf16.msra.mxu0 %v5302_v2  ;;  %v2715_v2 = vld [vmem:[#allocation10 + $0x248] sm:$0xff] }
 0x26f   :  { %5305 = vmatprep.subr.bf16.mxu0 %v5304_v4  ;;  %v4998_v4 = vcombine.high %v2715_v2, %v2719_v3  ;;  %v4997_v5 = vcombine.low %v2715_v2, %v2719_v3  ;;  %v2662_v2 = vld [vmem:[#allocation10 + $0xa0] sm:$0xff] }
 0x272   :  { %5307 = vmatpush1.bf16.msra.mxu0 %v5306_v7  ;;  %v2727_v7 = vld [vmem:[#allocation10 + $0x2a8] sm:$0xff] }
 0x273   :  { %4302 = vmatprep.subr.bf16.mxu0 %v4926_v32  ;;  %v5006_v8 = vcombine.high %v2723_v6, %v2727_v7 }
 0x275   :  { %2326 = vmatmul.mubr.f32.vlgmr.msra.gmra.mrb[4].mxu0 %v2048_v10  ;;  %v5005_v10 = vcombine.low %v2723_v6, %v2727_v7  ;;  %v2670_v6 = vld [vmem:[#allocation10 + $0xe0] sm:$0xff] }
 0x276   :  { %4303 = vmatpush1.bf16.msra.mxu0 %v4925_v31 }
 0x277   :  { %4304 = vmatprep.subr.bf16.mxu0 %v4934_v35 }
 0x27a   :  { %4305 = vmatpush1.bf16.msra.mxu0 %v4933_v36 }
 0x27b   :  { %4306 = vmatprep.subr.bf16.mxu0 %v4942_v39 }
 0x27e   :  { %4307 = vmatpush1.bf16.msra.mxu0 %v4941_v40 }
 0x27f   :  { %4308 = vmatprep.subr.bf16.mxu0 %v4950_v42 }
 0x282   :  { %4309 = vmatpush1.bf16.msra.mxu0 %v4949_v44  ;;  %v5791_v44 = vld [vmem:[#allocation8 + $0x2c] ss:$16 sps:$4 sm:$0xff]  }
 0x283   :  { %4310 = vmatprep.subr.bf16.mxu0 %v4958_v47  ;;  %v5792_v47 = vld [vmem:[#allocation8 + $0x48] ss:$16 sps:$4 sm:$0xff]  }
 0x286   :  { %4311 = vmatpush1.bf16.msra.mxu0 %v4957_v48  ;;  %v5797_v48 = vld [vmem:[#allocation8 + $0x6c] ss:$16 sps:$4 sm:$0xff]  }
 0x287   :  { %4312 = vmatprep.subr.bf16.mxu0 %v4966_v52  ;;  %v5798_v52 = vld [vmem:[#allocation8 + $0x88] ss:$16 sps:$4 sm:$0xff]  }
 0x28a   :  { %4313 = vmatpush1.bf16.msra.mxu0 %v4965_v53  ;;  %v5803_v53 = vld [vmem:[#allocation8 + $0xac] ss:$16 sps:$4 sm:$0xff]  }
 0x28b   :  { %4314 = vmatprep.subr.bf16.mxu0 %v4974_v55  ;;  %v5809_v55 = vld [vmem:[#allocation8 + $0xec] ss:$16 sps:$4 sm:$0xff]  }
 0x28e   :  { %4315 = vmatpush1.bf16.msra.mxu0 %v4973_v56  ;;  %v2642_v56 = vld [vmem:[#allocation10] sm:$0xff] }
 0x28f   :  { %4316 = vmatprep.subr.bf16.mxu0 %v4982_v59  ;;  %v4924_v59 = vcombine.high %v2642_v56, %v2646_v57  ;;  %v4923_v63 = vcombine.low %v2642_v56, %v2646_v57  ;;  %v2758_v56 = vld [vmem:[#allocation10 + $0x3a0] sm:$0xff]  ;;  %v2755_v57 = vld [vmem:[#allocation10 + $0x388] sm:$0xff] }
 0x292   :  { %4317 = vmatpush1.bf16.msra.mxu0 %v4981_v61  ;;  %v2650_v61 = vld [vmem:[#allocation10 + $0x40] sm:$0xff] }
 0x293   :  { %4318 = vmatprep.subr.bf16.mxu0 %v4990_v0  ;;  %v4932_v0 = vcombine.high %v2650_v61, %v2654_v62  ;;  %v4931_v3 = vcombine.low %v2650_v61, %v2654_v62 }
 0x296   :  { %4319 = vmatpush1.bf16.msra.mxu0 %v4989_v1  ;;  %v2658_v1 = vld [vmem:[#allocation10 + $0x80] sm:$0xff] }
 0x297   :  { %4320 = vmatprep.subr.bf16.mxu0 %v4998_v4  ;;  %v4940_v4 = vcombine.high %v2658_v1, %v2662_v2  ;;  %v4939_v7 = vcombine.low %v2658_v1, %v2662_v2  ;;  %v2766_v1 = vld [vmem:[#allocation10 + $0x3e0] sm:$0xff]  ;;  %v2763_v2 = vld [vmem:[#allocation10 + $0x3c8] sm:$0xff] }
 0x29a   :  { %4321 = vmatpush1.bf16.msra.mxu0 %v4997_v5  ;;  %v2666_v5 = vld [vmem:[#allocation10 + $0xc0] sm:$0xff] }
 0x29b   :  { %4322 = vmatprep.subr.bf16.mxu0 %v5006_v8  ;;  %v4948_v8 = vcombine.high %v2666_v5, %v2670_v6  ;;  %v4947_v16 = vcombine.low %v2666_v5, %v2670_v6 }
 0x29e   :  { %4323 = vmatpush1.bf16.msra.mxu0 %v5005_v10  ;;  %v2674_v10 = vld [vmem:[#allocation10 + $0x100] sm:$0xff] }
 0x29f   :  { %4324 = vmatprep.subr.bf16.mxu0 %v5014_v17  ;;  %v4956_v17 = vcombine.high %v2674_v10, %v2678_v11  ;;  %v4955_v19 = vcombine.low %v2674_v10, %v2678_v11  ;;  %v2774_v10 = vld [vmem:[#allocation10 + $0x420] sm:$0xff]  ;;  %v2771_v11 = vld [vmem:[#allocation10 + $0x408] sm:$0xff] }
 0x2a2   :  { %4325 = vmatpush1.bf16.msra.mxu0 %v5013_v18  ;;  %v2682_v18 = vld [vmem:[#allocation10 + $0x140] sm:$0xff] }
 0x2a3   :  { %4326 = vmatprep.subr.bf16.mxu0 %v5022_v21  ;;  %v4964_v21 = vcombine.high %v2682_v18, %v2686_v13  ;;  %v4963_v27 = vcombine.low %v2682_v18, %v2686_v13 }
 0x2a6   :  { %4327 = vmatpush1.bf16.msra.mxu0 %v5021_v22  ;;  %v2690_v22 = vld [vmem:[#allocation10 + $0x180] sm:$0xff] }
 0x2a7   :  { %4328 = vmatprep.subr.bf16.mxu0 %v5030_v9  ;;  %v4972_v9 = vcombine.high %v2690_v22, %v2694_v20 }
 0x2aa   :  { %4329 = vmatpush1.bf16.msra.mxu0 %v5029_v28  ;;  %v2698_v28 = vld [vmem:[#allocation10 + $0x1c0] sm:$0xff] }
 0x348   :  { %v2327_v31 = vpop.f32.mrb[4].mxu0 }
 0x349   :  { %v5312_v32 = vadd.f32 %v2327_v31, %v2183_v23  ;;  %v2329_v33 = vpop.f32.mrb[5].mxu0  ;;  %v4971_v23 = vcombine.low %v2690_v22, %v2694_v20  ;;  %v2706_v31 = vld [vmem:[#allocation10 + $0x200] sm:$0xff] }
 0x34a   :  { %v5313_v34 = vadd.f32 %v2329_v33, %v2187_v30  ;;  %v4980_v30 = vcombine.high %v2698_v28, %v2702_v29  ;;  %v4979_v33 = vcombine.low %v2698_v28, %v2702_v29 }
 0x34c   :  { %v2332_v35 = vmul.f32 0.5, %v5313_v34  ;;  %v4604_v36 = vcombine.low %v5312_v32, %v5313_v34 }
 0x34e   :  { %v2333_v37 = vmul.f32 1.442695, %v2332_v35  ;;  %5179 = vst.sshfl [vmem:[%s6260_s11] sm:$0x33 pattern:$0x76325410] %v4604_v36  ;;  %v2714_v35 = vld [vmem:[#allocation10 + $0x240] sm:$0xff] }
 0x34f   :  { %v2718_v36 = vld [vmem:[#allocation10 + $0x260] sm:$0xff] }
 0x350   :  { %5810 = vpow2.f32 %v2333_v37 }
 0x35a   :  { %v5811_v39 = vpop.eup %5810 }
 0x35b   :  { %v2335_v40 = vmul.f32 %v5811_v39, %v107_v38  ;;  %v4996_v38 = vcombine.high %v2714_v35, %v2718_v36  ;;  %v2722_v39 = vld [vmem:[#allocation10 + $0x280] sm:$0xff] }
 0x35d   :  { %v2336_v41 = vadd.f32 %v5312_v32, %v2335_v40  ;;  %v2710_v32 = vld [vmem:[#allocation10 + $0x220] sm:$0xff] }
 0x35e   :  { %v4988_v34 = vcombine.high %v2706_v31, %v2710_v32  ;;  %v4987_v37 = vcombine.low %v2706_v31, %v2710_v32  ;;  %v2726_v40 = vld [vmem:[#allocation10 + $0x2a0] sm:$0xff] }
 0x35f   :  { %v2337_v42 = vpack.c.bf16 %v2336_v41, %v2336_v41  ;;  %v4995_v41 = vcombine.low %v2714_v35, %v2718_v36  ;;  %v2778_v32 = vld [vmem:[#allocation10 + $0x440] sm:$0xff]  ;;  %v2779_v35 = vld [vmem:[#allocation10 + $0x448] sm:$0xff] }
 0x360   :  { %v2783_v36 = vld [vmem:[#allocation10 + $0x468] sm:$0xff] }
 0x361   :  { %2585 = vmatmul.mubr.bf16.vlgmr.msra.gmra.mrb[4].mxu1 %v2337_v42 }
 0x362   :  { %2594 = vmatpush1.bf16.msra.mxu1 %v5786_v26  ;;  %2625 = vmatprep.mubr.bf16.mxu1 %v5978_v24  ;;  %v5804_v24 = vld [vmem:[#allocation8 + $0xc8] ss:$16 sps:$4 sm:$0xff]   ;;  %v5004_v26 = vcombine.high %v2722_v39, %v2726_v40 }
 0x363   :  { %2595 = vmatprep.subr.bf16.mxu1 %v5791_v44  ;;  %v2734_v44 = vld [vmem:[#allocation10 + $0x2e0] sm:$0xff] }
 0x366   :  { %2596 = vmatpush1.bf16.msra.mxu1 %v5789_v45  ;;  %v5003_v45 = vcombine.low %v2722_v39, %v2726_v40  ;;  %v5062_v40 = vcombine.high %v2779_v35, %v2783_v36 }
 0x367   :  { %2597 = vmatprep.subr.bf16.mxu1 %v5794_v46 }
 0x36a   :  { %2598 = vmatpush1.bf16.msra.mxu1 %v5792_v47  ;;  %v2738_v47 = vld [vmem:[#allocation10 + $0x300] sm:$0xff] }
 0x36b   :  { %2599 = vmatprep.subr.bf16.mxu1 %v5797_v48  ;;  %v2742_v48 = vld [vmem:[#allocation10 + $0x320] sm:$0xff] }
 0x36e   :  { %2600 = vmatpush1.bf16.msra.mxu1 %v5795_v50 }
 0x36f   :  { %2601 = vmatprep.subr.bf16.mxu1 %v5800_v51  ;;  %v5020_v51 = vcombine.high %v2738_v47, %v2742_v48 }
 0x372   :  { %2602 = vmatpush1.bf16.msra.mxu1 %v5798_v52  ;;  %v2746_v52 = vld [vmem:[#allocation10 + $0x340] sm:$0xff] }
 0x373   :  { %2603 = vmatprep.subr.bf16.mxu1 %v5803_v53  ;;  %v2750_v53 = vld [vmem:[#allocation10 + $0x360] sm:$0xff] }
 0x376   :  { %2604 = vmatpush1.bf16.msra.mxu1 %v5801_v25  ;;  %v5019_v25 = vcombine.low %v2738_v47, %v2742_v48 }
 0x377   :  { %2605 = vmatprep.subr.bf16.mxu1 %v5806_v54  ;;  %v5028_v54 = vcombine.high %v2746_v52, %v2750_v53 }
 0x37a   :  { %2606 = vmatpush1.bf16.msra.mxu1 %v5804_v24  ;;  %v5027_v24 = vcombine.low %v2746_v52, %v2750_v53  ;;  %v2795_v52 = vld [vmem:[#allocation10 + $0x4c8] sm:$0xff] }
 0x37b   :  { %2607 = vmatprep.subr.bf16.mxu1 %v5809_v55  ;;  %v2754_v55 = vld [vmem:[#allocation10 + $0x380] sm:$0xff]  ;;  %v2799_v53 = vld [vmem:[#allocation10 + $0x4e8] sm:$0xff] }
 0x37e   :  { %2608 = vmatpush1.bf16.msra.mxu1 %v5807_v58  ;;  %v5036_v58 = vcombine.high %v2754_v55, %v2758_v56 }
 0x37f   :  { %4220 = vmatprep.subr.bf16.mxu1 %v4924_v59  ;;  %v2759_v59 = vld [vmem:[#allocation10 + $0x3a8] sm:$0xff] }
 0x380   :  { %v5037_v61 = vcombine.low %v2755_v57, %v2759_v59  ;;  %v5038_v62 = vcombine.high %v2755_v57, %v2759_v59  ;;  %v2806_v57 = vld [vmem:[#allocation10 + $0x520] sm:$0xff]  ;;  %v2807_v59 = vld [vmem:[#allocation10 + $0x528] sm:$0xff] }
 0x381   :  { %2626 = vmatmul.mubr.bf16.vlgmr.msra.gmra.mrb[8].mxu1 %v2337_v42  ;;  %v2730_v42 = vld [vmem:[#allocation10 + $0x2c0] sm:$0xff] }
 0x382   :  { %4221 = vmatpush1.bf16.msra.mxu1 %v4923_v63  ;;  %v5012_v46 = vcombine.high %v2730_v42, %v2734_v44  ;;  %v5011_v50 = vcombine.low %v2730_v42, %v2734_v44  ;;  %v5035_v63 = vcombine.low %v2754_v55, %v2758_v56  ;;  %4330 = vmatprep.subr.bf16.mxu0 %v5038_v62  ;;  %v2787_v42 = vld [vmem:[#allocation10 + $0x488] sm:$0xff]  ;;  %v2802_v56 = vld [vmem:[#allocation10 + $0x500] sm:$0xff] }
 0x383   :  { %4222 = vmatprep.subr.bf16.mxu1 %v4932_v0  ;;  %v2762_v0 = vld [vmem:[#allocation10 + $0x3c0] sm:$0xff]  ;;  %4331 = vmatpush1.bf16.msra.mxu0 %v5037_v61  ;;  %v2791_v44 = vld [vmem:[#allocation10 + $0x4a8] sm:$0xff]  ;;  %v5078_v55 = vcombine.high %v2795_v52, %v2799_v53  ;;  %v5077_v62 = vcombine.low %v2795_v52, %v2799_v53 }
 0x384   :  { %v5070_v48 = vcombine.high %v2787_v42, %v2791_v44  ;;  %v2843_v52 = vld [vmem:[#allocation10 + $0x648] sm:$0xff] }
 0x385   :  { %v2847_v53 = vld [vmem:[#allocation10 + $0x668] sm:$0xff] }
 0x386   :  { %4223 = vmatpush1.bf16.msra.mxu1 %v4931_v3  ;;  %v5044_v3 = vcombine.high %v2762_v0, %v2766_v1 }
 0x387   :  { %4224 = vmatprep.subr.bf16.mxu1 %v4940_v4  ;;  %v2767_v4 = vld [vmem:[#allocation10 + $0x3e8] sm:$0xff] }
 0x388   :  { %v5045_v5 = vcombine.low %v2763_v2, %v2767_v4  ;;  %v5046_v6 = vcombine.high %v2763_v2, %v2767_v4  ;;  %v2814_v2 = vld [vmem:[#allocation10 + $0x560] sm:$0xff]  ;;  %v2815_v4 = vld [vmem:[#allocation10 + $0x568] sm:$0xff] }
 0x38a   :  { %4225 = vmatpush1.bf16.msra.mxu1 %v4939_v7  ;;  %v5043_v7 = vcombine.low %v2762_v0, %v2766_v1  ;;  %4332 = vmatprep.subr.bf16.mxu0 %v5046_v6  ;;  %v2810_v1 = vld [vmem:[#allocation10 + $0x540] sm:$0xff] }
 0x38b   :  { %4226 = vmatprep.subr.bf16.mxu1 %v4948_v8  ;;  %v2770_v8 = vld [vmem:[#allocation10 + $0x400] sm:$0xff]  ;;  %4333 = vmatpush1.bf16.msra.mxu0 %v5045_v5  ;;  %v5083_v5 = vcombine.low %v2802_v56, %v2806_v57 }
 0x38c   :  { %v5051_v18 = vcombine.low %v2770_v8, %v2774_v10 }
 0x38e   :  { %4227 = vmatpush1.bf16.msra.mxu1 %v4947_v16  ;;  %v5052_v16 = vcombine.high %v2770_v8, %v2774_v10  ;;  %v2818_v10 = vld [vmem:[#allocation10 + $0x580] sm:$0xff] }
 0x38f   :  { %4228 = vmatprep.subr.bf16.mxu1 %v4956_v17  ;;  %v2775_v17 = vld [vmem:[#allocation10 + $0x428] sm:$0xff] }
 0x390   :  { %v5053_v13 = vcombine.low %v2771_v11, %v2775_v17 }
 0x392   :  { %4229 = vmatpush1.bf16.msra.mxu1 %v4955_v19  ;;  %v5054_v19 = vcombine.high %v2771_v11, %v2775_v17  ;;  %v2822_v11 = vld [vmem:[#allocation10 + $0x5a0] sm:$0xff]  ;;  %v2823_v17 = vld [vmem:[#allocation10 + $0x5a8] sm:$0xff] }
 0x393   :  { %4230 = vmatprep.subr.bf16.mxu1 %v4964_v21  ;;  %v6185_v21 = vld [vmem:[%s6256_s7] sm:$0xf] }
 0x394   :  { %4343 = vmatprep.subr.bf16.mxu0 %v5054_v19  ;;  %v2375_v22 = vrot.slane %v6185_v21, %v6142_v12  ;;  %v2379_v20 = vrot.slane %v6185_v21, %v6150_v14  ;;  %v5100_v19 = vcombine.high %v2818_v10, %v2822_v11 }
 0x396   :  { %4231 = vmatpush1.bf16.msra.mxu1 %v4963_v27 }
 0x397   :  { %4232 = vmatprep.subr.bf16.mxu1 %v4972_v9 }
 0x39a   :  { %4233 = vmatpush1.bf16.msra.mxu1 %v4971_v23 }
 0x39b   :  { %4234 = vmatprep.subr.bf16.mxu1 %v4980_v30 }
 0x39e   :  { %4235 = vmatpush1.bf16.msra.mxu1 %v4979_v33 }
 0x39f   :  { %4236 = vmatprep.subr.bf16.mxu1 %v4988_v34  ;;  %v2782_v34 = vld [vmem:[#allocation10 + $0x460] sm:$0xff] }
 0x3a0   :  { %v5060_v39 = vcombine.high %v2778_v32, %v2782_v34 }
 0x3a2   :  { %4237 = vmatpush1.bf16.msra.mxu1 %v4987_v37 }
 0x3a3   :  { %4238 = vmatprep.subr.bf16.mxu1 %v4996_v38 }
 0x3a6   :  { %4239 = vmatpush1.bf16.msra.mxu1 %v4995_v41  ;;  %v2786_v41 = vld [vmem:[#allocation10 + $0x480] sm:$0xff] }
 0x3a7   :  { %4240 = vmatprep.subr.bf16.mxu1 %v5004_v26  ;;  %v2790_v26 = vld [vmem:[#allocation10 + $0x4a0] sm:$0xff] }
 0x3a8   :  { %v5068_v47 = vcombine.high %v2786_v41, %v2790_v26 }
 0x3aa   :  { %4241 = vmatpush1.bf16.msra.mxu1 %v5003_v45  ;;  %v5059_v45 = vcombine.low %v2778_v32, %v2782_v34 }
 0x3ab   :  { %4242 = vmatprep.subr.bf16.mxu1 %v5012_v46  ;;  %v5061_v46 = vcombine.low %v2779_v35, %v2783_v36  ;;  %v2838_v35 = vld [vmem:[#allocation10 + $0x620] sm:$0xff]  ;;  %v2835_v36 = vld [vmem:[#allocation10 + $0x608] sm:$0xff] }
 0x3ae   :  { %4243 = vmatpush1.bf16.msra.mxu1 %v5011_v50  ;;  %v2794_v50 = vld [vmem:[#allocation10 + $0x4c0] sm:$0xff] }
 0x3af   :  { %4244 = vmatprep.subr.bf16.mxu1 %v5020_v51  ;;  %v2798_v51 = vld [vmem:[#allocation10 + $0x4e0] sm:$0xff] }
 0x3b0   :  { %v5075_v61 = vcombine.low %v2794_v50, %v2798_v51 }
 0x3b2   :  { %4245 = vmatpush1.bf16.msra.mxu1 %v5019_v25  ;;  %v5067_v25 = vcombine.low %v2786_v41, %v2790_v26 }
 0x3b3   :  { %4246 = vmatprep.subr.bf16.mxu1 %v5028_v54  ;;  %v5069_v54 = vcombine.low %v2787_v42, %v2791_v44 }
 0x3b6   :  { %4247 = vmatpush1.bf16.msra.mxu1 %v5027_v24  ;;  %v5076_v24 = vcombine.high %v2794_v50, %v2798_v51  ;;  %v2846_v51 = vld [vmem:[#allocation10 + $0x660] sm:$0xff] }
 0x3b7   :  { %4248 = vmatprep.subr.bf16.mxu1 %v5036_v58  ;;  %v2803_v58 = vld [vmem:[#allocation10 + $0x508] sm:$0xff] }
 0x3b8   :  { %v5086_v0 = vcombine.high %v2803_v58, %v2807_v59  ;;  %v5085_v6 = vcombine.low %v2803_v58, %v2807_v59  ;;  %v2854_v58 = vld [vmem:[#allocation10 + $0x6a0] sm:$0xff]  ;;  %v2851_v59 = vld [vmem:[#allocation10 + $0x688] sm:$0xff] }
 0x3ba   :  { %4249 = vmatpush1.bf16.msra.mxu1 %v5035_v63  ;;  %v5084_v63 = vcombine.high %v2802_v56, %v2806_v57  ;;  %v5126_v56 = vcombine.high %v2843_v52, %v2847_v53  ;;  %v2850_v57 = vld [vmem:[#allocation10 + $0x680] sm:$0xff] }
 0x3bb   :  { %4250 = vmatprep.subr.bf16.mxu1 %v5044_v3  ;;  %v2811_v3 = vld [vmem:[#allocation10 + $0x548] sm:$0xff] }
 0x3bc   :  { %v5094_v8 = vcombine.high %v2811_v3, %v2815_v4 }
 0x3be   :  { %4251 = vmatpush1.bf16.msra.mxu1 %v5043_v7  ;;  %v5092_v7 = vcombine.high %v2810_v1, %v2814_v2 }
 0x3bf   :  { %4261 = vmatprep.subr.bf16.mxu1 %v5052_v16  ;;  %v2819_v16 = vld [vmem:[#allocation10 + $0x588] sm:$0xff] }
 0x434   :  { %v2586_v27 = vpop.f32.mrb[4].mxu1 }
 0x435   :  { %v2587_v9 = vadd.f32 %v2586_v27, %v2375_v22  ;;  %v2588_v28 = vpop.f32.mrb[5].mxu1  ;;  %v5102_v22 = vcombine.high %v2819_v16, %v2823_v17  ;;  %v2830_v27 = vld [vmem:[#allocation10 + $0x5e0] sm:$0xff] }
 0x436   :  { %v2589_v29 = vadd.f32 %v2588_v28, %v2379_v20  ;;  %v2590_v23 = vpop.f32.mrb[6].mxu1  ;;  %v2826_v20 = vld [vmem:[#allocation10 + $0x5c0] sm:$0xff]  ;;  %v2831_v28 = vld [vmem:[#allocation10 + $0x5e8] sm:$0xff] }
 0x437   :  { %v2634_v30 = vmax.f32 %v2587_v9, 0.0  ;;  %v2591_v31 = vpop.f32.mrb[7].mxu1  ;;  %v2827_v9 = vld [vmem:[#allocation10 + $0x5c8] sm:$0xff]  ;;  %v5099_v23 = vcombine.low %v2818_v10, %v2822_v11  ;;  %v5107_v42 = vcombine.low %v2826_v20, %v2830_v27  ;;  %v2866_v11 = vld [vmem:[#allocation10 + $0x700] sm:$0xff] }
 0x438   :  { %v2635_v33 = vmax.f32 %v2589_v29, 0.0  ;;  %v2387_v29 = vrot.slane %v6185_v21, %v6153_v15  ;;  %v5108_v31 = vcombine.high %v2826_v20, %v2830_v27  ;;  %v5110_v32 = vcombine.high %v2827_v9, %v2831_v28  ;;  %v2874_v27 = vld [vmem:[#allocation10 + $0x740] sm:$0xff] }
 0x439   :  { %v6193_v38 = vpack.c.bf16 %v2634_v30, %v2634_v30  ;;  %v5101_v30 = vcombine.low %v2819_v16, %v2823_v17  ;;  %v5109_v44 = vcombine.low %v2827_v9, %v2831_v28  ;;  %v2870_v16 = vld [vmem:[#allocation10 + $0x720] sm:$0xff]  ;;  %v2867_v17 = vld [vmem:[#allocation10 + $0x708] sm:$0xff] }
 0x43a   :  { %v6191_v37 = vpack.c.bf16 %v2635_v33, %v2635_v33  ;;  %v2834_v33 = vld [vmem:[#allocation10 + $0x600] sm:$0xff]  ;;  %v2875_v28 = vld [vmem:[#allocation10 + $0x748] sm:$0xff] }
 0x43b   :  { %v2878_v9 = vld [vmem:[#allocation10 + $0x760] sm:$0xff] }
 0x43c   :  { %4252 = vmatprep.mubr.bf16.mxu1 %v6191_v37  ;;  %4334 = vmatprep.mubr.bf16.mxu0 %v6191_v37 }
 0x43d   :  { %4253 = vmatmul.mubr.bf16.vlgmr.msra.gmra.mrb[12].mxu1 %v6193_v38  ;;  %4335 = vmatmul.mubr.bf16.vlgmr.msra.gmra.mrb[8].mxu0 %v6193_v38 }
 0x43e   :  { %4262 = vmatpush1.bf16.msra.mxu1 %v5051_v18  ;;  %4344 = vmatpush1.bf16.msra.mxu0 %v5053_v13  ;;  %v5091_v18 = vcombine.low %v2810_v1, %v2814_v2  ;;  %v5093_v13 = vcombine.low %v2811_v3, %v2815_v4  ;;  %v2858_v2 = vld [vmem:[#allocation10 + $0x6c0] sm:$0xff]  ;;  %v2859_v4 = vld [vmem:[#allocation10 + $0x6c8] sm:$0xff] }
 0x43f   :  { %4263 = vmatprep.subr.bf16.mxu1 %v5060_v39  ;;  %4345 = vmatprep.subr.bf16.mxu0 %v5062_v40  ;;  %v2839_v39 = vld [vmem:[#allocation10 + $0x628] sm:$0xff]  ;;  %v2862_v3 = vld [vmem:[#allocation10 + $0x6e0] sm:$0xff] }
 0x442   :  { %4264 = vmatpush1.bf16.msra.mxu1 %v5059_v45  ;;  %4346 = vmatpush1.bf16.msra.mxu0 %v5061_v46  ;;  %v5116_v46 = vcombine.high %v2834_v33, %v2838_v35 }
 0x443   :  { %4265 = vmatprep.subr.bf16.mxu1 %v5068_v47  ;;  %4347 = vmatprep.subr.bf16.mxu0 %v5070_v48  ;;  %v5118_v47 = vcombine.high %v2835_v36, %v2839_v39  ;;  %v2842_v48 = vld [vmem:[#allocation10 + $0x640] sm:$0xff] }
 0x446   :  { %4266 = vmatpush1.bf16.msra.mxu1 %v5067_v25  ;;  %4348 = vmatpush1.bf16.msra.mxu0 %v5069_v54  ;;  %v5115_v54 = vcombine.low %v2834_v33, %v2838_v35  ;;  %v2882_v33 = vld [vmem:[#allocation10 + $0x780] sm:$0xff] }
 0x447   :  { %4267 = vmatprep.subr.bf16.mxu1 %v5076_v24  ;;  %4349 = vmatprep.subr.bf16.mxu0 %v5078_v55  ;;  %v5117_v24 = vcombine.low %v2835_v36, %v2839_v39  ;;  %v5124_v55 = vcombine.high %v2842_v48, %v2846_v51  ;;  %v2886_v35 = vld [vmem:[#allocation10 + $0x7a0] sm:$0xff]  ;;  %v2883_v36 = vld [vmem:[#allocation10 + $0x788] sm:$0xff] }
 0x448   :  { %v2887_v39 = vld [vmem:[#allocation10 + $0x7a8] sm:$0xff] }
 0x44a   :  { %4268 = vmatpush1.bf16.msra.mxu1 %v5075_v61  ;;  %4350 = vmatpush1.bf16.msra.mxu0 %v5077_v62  ;;  %v2855_v61 = vld [vmem:[#allocation10 + $0x6a8] sm:$0xff]  ;;  %v5123_v62 = vcombine.low %v2842_v48, %v2846_v51  ;;  %v5165_v51 = vcombine.low %v2883_v36, %v2887_v39 }
 0x44b   :  { %4269 = vmatprep.subr.bf16.mxu1 %v5084_v63  ;;  %4351 = vmatprep.subr.bf16.mxu0 %v5086_v0  ;;  %v5125_v63 = vcombine.low %v2843_v52, %v2847_v53  ;;  %v5132_v0 = vcombine.high %v2850_v57, %v2854_v58  ;;  %v5134_v1 = vcombine.high %v2851_v59, %v2855_v61  ;;  %v2895_v48 = vld [vmem:[#allocation10 + $0x7e8] sm:$0xff] }
 0x44e   :  { %4270 = vmatpush1.bf16.msra.mxu1 %v5083_v5  ;;  %4352 = vmatpush1.bf16.msra.mxu0 %v5085_v6  ;;  %v2863_v5 = vld [vmem:[#allocation10 + $0x6e8] sm:$0xff]  ;;  %v5131_v6 = vcombine.low %v2850_v57, %v2854_v58 }
 0x44f   :  { %4271 = vmatprep.subr.bf16.mxu1 %v5092_v7  ;;  %4353 = vmatprep.subr.bf16.mxu0 %v5094_v8  ;;  %v5133_v7 = vcombine.low %v2851_v59, %v2855_v61  ;;  %v5140_v8 = vcombine.high %v2858_v2, %v2862_v3  ;;  %v5142_v10 = vcombine.high %v2859_v4, %v2863_v5 }
 0x452   :  { %4272 = vmatpush1.bf16.msra.mxu1 %v5091_v18  ;;  %4354 = vmatpush1.bf16.msra.mxu0 %v5093_v13  ;;  %v2871_v18 = vld [vmem:[#allocation10 + $0x728] sm:$0xff]  ;;  %v5139_v13 = vcombine.low %v2858_v2, %v2862_v3 }
 0x453   :  { %4273 = vmatprep.subr.bf16.mxu1 %v5100_v19  ;;  %4355 = vmatprep.subr.bf16.mxu0 %v5102_v22  ;;  %v5141_v19 = vcombine.low %v2859_v4, %v2863_v5  ;;  %v5148_v22 = vcombine.high %v2866_v11, %v2870_v16  ;;  %v5150_v20 = vcombine.high %v2867_v17, %v2871_v18 }
 0x454   :  { %v6201_v34 = vpop.f32.mrb[8].mxu1 }
 0x455   :  { %v2629_v40 = vpop.f32.mrb[9].mxu1 }
 0x456   :  { %v2630_v41 = vadd.f32 %v2629_v40, %v2387_v29  ;;  %v2631_v26 = vpop.f32.mrb[10].mxu1  ;;  %4274 = vmatpush1.bf16.msra.mxu1 %v5099_v23  ;;  %4356 = vmatpush1.bf16.msra.mxu0 %v5101_v30  ;;  %v2879_v29 = vld [vmem:[#allocation10 + $0x768] sm:$0xff]  ;;  %v5147_v23 = vcombine.low %v2866_v11, %v2870_v16  ;;  %v5149_v30 = vcombine.low %v2867_v17, %v2871_v18  ;;  %v2665_v11 = vld [vmem:[#allocation10 + $0xb8] sm:$0xff] }
 0x457   :  { %v2632_v45 = vpop.f32.mrb[11].mxu1  ;;  %4275 = vmatprep.subr.bf16.mxu1 %v5108_v31  ;;  %4357 = vmatprep.subr.bf16.mxu0 %v5110_v32  ;;  %v5156_v31 = vcombine.high %v2874_v27, %v2878_v9  ;;  %v5158_v32 = vcombine.high %v2875_v28, %v2879_v29  ;;  %v5155_v40 = vcombine.low %v2874_v27, %v2878_v9  ;;  %v2673_v27 = vld [vmem:[#allocation10 + $0xf8] sm:$0xff] }
 0x458   :  { %v2637_v50 = vmax.f32 %v2630_v41, 0.0  ;;  %v5157_v41 = vcombine.low %v2875_v28, %v2879_v29  ;;  %v2383_v26 = vrot.slane %v6185_v21, %v6164_v60  ;;  %v2890_v45 = vld [vmem:[#allocation10 + $0x7c0] sm:$0xff]  ;;  %v2648_v21 = vld [vmem:[#allocation10 + $0x30] sm:$0xff] }
 0x45a   :  { %v6203_v25 = vpack.c.bf16 %v2637_v50, %v2637_v50  ;;  %4276 = vmatpush1.bf16.msra.mxu1 %v5107_v42  ;;  %4358 = vmatpush1.bf16.msra.mxu0 %v5109_v44  ;;  %v5164_v42 = vcombine.high %v2882_v33, %v2886_v35  ;;  %v5166_v44 = vcombine.high %v2883_v36, %v2887_v39 }
 0x45b   :  { %4277 = vmatprep.subr.bf16.mxu1 %v5116_v46  ;;  %4359 = vmatprep.subr.bf16.mxu0 %v5118_v47  ;;  %v2894_v46 = vld [vmem:[#allocation10 + $0x7e0] sm:$0xff]  ;;  %v2891_v47 = vld [vmem:[#allocation10 + $0x7c8] sm:$0xff]  ;;  %v5163_v50 = vcombine.low %v2882_v33, %v2886_v35  ;;  %v2628_v52 = vadd.f32 %v6201_v34, %v2383_v26  ;;  %v2653_v34 = vld [vmem:[#allocation10 + $0x58] sm:$0xff] }
 0x45c   :  { %4293 = vmatprep.mubr.bf16.mxu1 %v6203_v25  ;;  %4375 = vmatprep.mubr.bf16.mxu0 %v6203_v25  ;;  %v5172_v53 = vcombine.high %v2890_v45, %v2894_v46  ;;  %v5171_v57 = vcombine.low %v2890_v45, %v2894_v46  ;;  %v5173_v58 = vcombine.low %v2891_v47, %v2895_v48  ;;  %v2685_v26 = vld [vmem:[#allocation10 + $0x158] sm:$0xff] }
 0x45d   :  { %v2636_v59 = vmax.f32 %v2628_v52, 0.0  ;;  %v2697_v52 = vld [vmem:[#allocation10 + $0x1b8] sm:$0xff] }
 0x45e   :  { %4278 = vmatpush1.bf16.msra.mxu1 %v5115_v54  ;;  %4360 = vmatpush1.bf16.msra.mxu0 %v5117_v24  ;;  %v5174_v54 = vcombine.high %v2891_v47, %v2895_v48  ;;  %v2644_v24 = vld [vmem:[#allocation10 + $0x10] sm:$0xff] }
 0x45f   :  { %4279 = vmatprep.subr.bf16.mxu1 %v5124_v55  ;;  %4361 = vmatprep.subr.bf16.mxu0 %v5126_v56  ;;  %v2645_v55 = vld [vmem:[#allocation10 + $0x18] sm:$0xff]  ;;  %v4928_v61 = vcombine.high %v2644_v24, %v2648_v21  ;;  %v4927_v2 = vcombine.low %v2644_v24, %v2648_v21  ;;  %v6210_v3 = vpack.c.bf16 %v2636_v59, %v2636_v59  ;;  %v2692_v48 = vld [vmem:[#allocation10 + $0x190] sm:$0xff] }
 0x460   :  { %v2649_v56 = vld [vmem:[#allocation10 + $0x38] sm:$0xff] }
 0x461   :  { %v4929_v4 = vcombine.low %v2645_v55, %v2649_v56 }
 0x462   :  { %4280 = vmatpush1.bf16.msra.mxu1 %v5123_v62  ;;  %4362 = vmatpush1.bf16.msra.mxu0 %v5125_v63  ;;  %v4930_v62 = vcombine.high %v2645_v55, %v2649_v56  ;;  %v2652_v63 = vld [vmem:[#allocation10 + $0x50] sm:$0xff] }
 0x463   :  { %4281 = vmatprep.subr.bf16.mxu1 %v5132_v0  ;;  %4363 = vmatprep.subr.bf16.mxu0 %v5134_v1  ;;  %v2656_v0 = vld [vmem:[#allocation10 + $0x70] sm:$0xff]  ;;  %v2657_v1 = vld [vmem:[#allocation10 + $0x78] sm:$0xff] }
 0x464   :  { %v4936_v5 = vcombine.high %v2652_v63, %v2656_v0  ;;  %v4935_v16 = vcombine.low %v2652_v63, %v2656_v0  ;;  %v4937_v17 = vcombine.low %v2653_v34, %v2657_v1  ;;  %v2700_v55 = vld [vmem:[#allocation10 + $0x1d0] sm:$0xff] }
 0x465   :  { %v2704_v56 = vld [vmem:[#allocation10 + $0x1f0] sm:$0xff] }
 0x466   :  { %4282 = vmatpush1.bf16.msra.mxu1 %v5131_v6  ;;  %4364 = vmatpush1.bf16.msra.mxu0 %v5133_v7  ;;  %v4938_v6 = vcombine.high %v2653_v34, %v2657_v1  ;;  %v2660_v7 = vld [vmem:[#allocation10 + $0x90] sm:$0xff]  ;;  %v2709_v1 = vld [vmem:[#allocation10 + $0x218] sm:$0xff] }
 0x467   :  { %4283 = vmatprep.subr.bf16.mxu1 %v5140_v8  ;;  %4365 = vmatprep.subr.bf16.mxu0 %v5142_v10  ;;  %v2664_v8 = vld [vmem:[#allocation10 + $0xb0] sm:$0xff]  ;;  %v2661_v10 = vld [vmem:[#allocation10 + $0x98] sm:$0xff] }
 0x468   :  { %v4944_v18 = vcombine.high %v2660_v7, %v2664_v8  ;;  %v4943_v9 = vcombine.low %v2660_v7, %v2664_v8  ;;  %v4945_v28 = vcombine.low %v2661_v10, %v2665_v11  ;;  %v2708_v0 = vld [vmem:[#allocation10 + $0x210] sm:$0xff] }
 0x469   :  { %v2712_v34 = vld [vmem:[#allocation10 + $0x230] sm:$0xff] }
 0x46a   :  { %4284 = vmatpush1.bf16.msra.mxu1 %v5139_v13  ;;  %4366 = vmatpush1.bf16.msra.mxu0 %v5141_v19  ;;  %v4946_v13 = vcombine.high %v2661_v10, %v2665_v11  ;;  %v2668_v19 = vld [vmem:[#allocation10 + $0xd0] sm:$0xff]  ;;  %v2717_v11 = vld [vmem:[#allocation10 + $0x258] sm:$0xff] }
 0x46b   :  { %4285 = vmatprep.subr.bf16.mxu1 %v5148_v22  ;;  %4367 = vmatprep.subr.bf16.mxu0 %v5150_v20  ;;  %v2672_v22 = vld [vmem:[#allocation10 + $0xf0] sm:$0xff]  ;;  %v2669_v20 = vld [vmem:[#allocation10 + $0xd8] sm:$0xff] }
 0x46c   :  { %v4952_v29 = vcombine.high %v2668_v19, %v2672_v22  ;;  %v4951_v33 = vcombine.low %v2668_v19, %v2672_v22  ;;  %v4953_v35 = vcombine.low %v2669_v20, %v2673_v27  ;;  %v2716_v8 = vld [vmem:[#allocation10 + $0x250] sm:$0xff] }
 0x46d   :  { %v2720_v10 = vld [vmem:[#allocation10 + $0x270] sm:$0xff] }
 0x46e   :  { %4286 = vmatpush1.bf16.msra.mxu1 %v5147_v23  ;;  %4368 = vmatpush1.bf16.msra.mxu0 %v5149_v30  ;;  %v4954_v23 = vcombine.high %v2669_v20, %v2673_v27  ;;  %v2676_v30 = vld [vmem:[#allocation10 + $0x110] sm:$0xff]  ;;  %v2725_v27 = vld [vmem:[#allocation10 + $0x298] sm:$0xff] }
 0x46f   :  { %4287 = vmatprep.subr.bf16.mxu1 %v5156_v31  ;;  %4369 = vmatprep.subr.bf16.mxu0 %v5158_v32  ;;  %v2680_v31 = vld [vmem:[#allocation10 + $0x130] sm:$0xff]  ;;  %v2681_v32 = vld [vmem:[#allocation10 + $0x138] sm:$0xff] }
 0x470   :  { %v4960_v36 = vcombine.high %v2676_v30, %v2680_v31  ;;  %v2724_v22 = vld [vmem:[#allocation10 + $0x290] sm:$0xff] }
 0x471   :  { %v2728_v20 = vld [vmem:[#allocation10 + $0x2b0] sm:$0xff] }
 0x472   :  { %4288 = vmatpush1.bf16.msra.mxu1 %v5155_v40  ;;  %4370 = vmatpush1.bf16.msra.mxu0 %v5157_v41  ;;  %v2684_v40 = vld [vmem:[#allocation10 + $0x150] sm:$0xff] }
 0x473   :  { %4289 = vmatprep.subr.bf16.mxu1 %v5164_v42  ;;  %4371 = vmatprep.subr.bf16.mxu0 %v5166_v44  ;;  %v2688_v41 = vld [vmem:[#allocation10 + $0x170] sm:$0xff]  ;;  %v2689_v42 = vld [vmem:[#allocation10 + $0x178] sm:$0xff]  ;;  %v4959_v44 = vcombine.low %v2676_v30, %v2680_v31 }
 0x474   :  { %v4968_v46 = vcombine.high %v2684_v40, %v2688_v41  ;;  %v4970_v47 = vcombine.high %v2685_v26, %v2689_v42  ;;  %v2732_v31 = vld [vmem:[#allocation10 + $0x2d0] sm:$0xff] }
 0x476   :  { %4290 = vmatpush1.bf16.msra.mxu1 %v5163_v50  ;;  %4372 = vmatpush1.bf16.msra.mxu0 %v5165_v51  ;;  %v2696_v50 = vld [vmem:[#allocation10 + $0x1b0] sm:$0xff]  ;;  %v2693_v51 = vld [vmem:[#allocation10 + $0x198] sm:$0xff] }
 0x477   :  { %4291 = vmatprep.subr.bf16.mxu1 %v5172_v53  ;;  %4373 = vmatprep.subr.bf16.mxu0 %v5174_v54  ;;  %v4967_v53 = vcombine.low %v2684_v40, %v2688_v41  ;;  %v4969_v54 = vcombine.low %v2685_v26, %v2689_v42  ;;  %v4976_v24 = vcombine.high %v2692_v48, %v2696_v50  ;;  %v2740_v41 = vld [vmem:[#allocation10 + $0x310] sm:$0xff]  ;;  %v2741_v42 = vld [vmem:[#allocation10 + $0x318] sm:$0xff] }
 0x478   :  { %v4978_v21 = vcombine.high %v2693_v51, %v2697_v52  ;;  %v4975_v59 = vcombine.low %v2692_v48, %v2696_v50  ;;  %v2744_v26 = vld [vmem:[#allocation10 + $0x330] sm:$0xff] }
 0x479   :  { %v2748_v50 = vld [vmem:[#allocation10 + $0x350] sm:$0xff] }
 0x47a   :  { %4292 = vmatpush1.bf16.msra.mxu1 %v5171_v57  ;;  %4374 = vmatpush1.bf16.msra.mxu0 %v5173_v58  ;;  %v2701_v57 = vld [vmem:[#allocation10 + $0x1d8] sm:$0xff] }
 0x47b   :  { %4384 = vmatprep.subr.bf16.mxu1 %v4928_v61  ;;  %4466 = vmatprep.subr.bf16.mxu0 %v4930_v62  ;;  %v2705_v58 = vld [vmem:[#allocation10 + $0x1f8] sm:$0xff]  ;;  %v4977_v61 = vcombine.low %v2693_v51, %v2697_v52  ;;  %v4984_v62 = vcombine.high %v2700_v55, %v2704_v56  ;;  %v2752_v51 = vld [vmem:[#allocation10 + $0x370] sm:$0xff] }
 0x47c   :  { %v4986_v63 = vcombine.high %v2701_v57, %v2705_v58  ;;  %v2749_v52 = vld [vmem:[#allocation10 + $0x358] sm:$0xff] }
 0x47d   :  { %4294 = vmatmul.mubr.bf16.vlgmr.msra.gmra.mrb[12].mxu1 %v6210_v3  ;;  %4376 = vmatmul.mubr.bf16.vlgmr.msra.gmra.mrb[8].mxu0 %v6210_v3 }
 0x47e   :  { %4385 = vmatpush1.bf16.msra.mxu1 %v4927_v2  ;;  %4416 = vmatprep.mubr.bf16.mxu1 %v6191_v37  ;;  %v2713_v2 = vld [vmem:[#allocation10 + $0x238] sm:$0xff] }
 0x47f   :  { %4467 = vmatpush1.bf16.msra.mxu0 %v4929_v4  ;;  %4498 = vmatprep.mubr.bf16.mxu0 %v6191_v37  ;;  %v2677_v37 = vld [vmem:[#allocation10 + $0x118] sm:$0xff]  ;;  %v4983_v4 = vcombine.low %v2700_v55, %v2704_v56  ;;  %v4994_v7 = vcombine.high %v2709_v1, %v2713_v2  ;;  %v2756_v56 = vld [vmem:[#allocation10 + $0x390] sm:$0xff] }
 0x480   :  { %4386 = vmatprep.subr.bf16.mxu1 %v4936_v5  ;;  %4468 = vmatprep.subr.bf16.mxu0 %v4938_v6  ;;  %v4962_v39 = vcombine.high %v2677_v37, %v2681_v32  ;;  %v4961_v45 = vcombine.low %v2677_v37, %v2681_v32  ;;  %v4985_v5 = vcombine.low %v2701_v57, %v2705_v58  ;;  %v2736_v37 = vld [vmem:[#allocation10 + $0x2f0] sm:$0xff]  ;;  %v2733_v32 = vld [vmem:[#allocation10 + $0x2d8] sm:$0xff] }
 0x481   :  { %v4992_v6 = vcombine.high %v2708_v0, %v2712_v34  ;;  %v2760_v57 = vld [vmem:[#allocation10 + $0x3b0] sm:$0xff]  ;;  %v2757_v58 = vld [vmem:[#allocation10 + $0x398] sm:$0xff] }
 0x482   :  { %4387 = vmatpush1.bf16.msra.mxu1 %v4935_v16  ;;  %v2721_v16 = vld [vmem:[#allocation10 + $0x278] sm:$0xff] }
 0x483   :  { %4469 = vmatpush1.bf16.msra.mxu0 %v4937_v17  ;;  %4388 = vmatprep.subr.bf16.mxu1 %v4944_v18  ;;  %v4991_v17 = vcombine.low %v2708_v0, %v2712_v34  ;;  %v4993_v18 = vcombine.low %v2709_v1, %v2713_v2  ;;  %v5002_v19 = vcombine.high %v2717_v11, %v2721_v16  ;;  %v2764_v34 = vld [vmem:[#allocation10 + $0x3d0] sm:$0xff]  ;;  %v2765_v2 = vld [vmem:[#allocation10 + $0x3d8] sm:$0xff] }
 0x484   :  { %4470 = vmatprep.subr.bf16.mxu0 %v4946_v13  ;;  %v5000_v13 = vcombine.high %v2716_v8, %v2720_v10  ;;  %v2768_v1 = vld [vmem:[#allocation10 + $0x3f0] sm:$0xff] }
 0x486   :  { %4389 = vmatpush1.bf16.msra.mxu1 %v4943_v9  ;;  %v2729_v9 = vld [vmem:[#allocation10 + $0x2b8] sm:$0xff] }
 0x487   :  { %4471 = vmatpush1.bf16.msra.mxu0 %v4945_v28  ;;  %4390 = vmatprep.subr.bf16.mxu1 %v4952_v29  ;;  %v4999_v28 = vcombine.low %v2716_v8, %v2720_v10  ;;  %v5001_v29 = vcombine.low %v2717_v11, %v2721_v16  ;;  %v5010_v30 = vcombine.high %v2725_v27, %v2729_v9  ;;  %v2772_v10 = vld [vmem:[#allocation10 + $0x410] sm:$0xff]  ;;  %v2773_v16 = vld [vmem:[#allocation10 + $0x418] sm:$0xff] }
 0x488   :  { %4472 = vmatprep.subr.bf16.mxu0 %v4954_v23  ;;  %v5008_v23 = vcombine.high %v2724_v22, %v2728_v20  ;;  %v2776_v11 = vld [vmem:[#allocation10 + $0x430] sm:$0xff] }
 0x48a   :  { %4391 = vmatpush1.bf16.msra.mxu1 %v4951_v33  ;;  %v2737_v33 = vld [vmem:[#allocation10 + $0x2f8] sm:$0xff] }
 0x48b   :  { %4473 = vmatpush1.bf16.msra.mxu0 %v4953_v35  ;;  %4392 = vmatprep.subr.bf16.mxu1 %v4960_v36  ;;  %v5007_v35 = vcombine.low %v2724_v22, %v2728_v20  ;;  %v5009_v36 = vcombine.low %v2725_v27, %v2729_v9  ;;  %v5018_v40 = vcombine.high %v2733_v32, %v2737_v33  ;;  %v2780_v20 = vld [vmem:[#allocation10 + $0x450] sm:$0xff] }
 0x48c   :  { %4474 = vmatprep.subr.bf16.mxu0 %v4962_v39  ;;  %v5016_v39 = vcombine.high %v2732_v31, %v2736_v37  ;;  %v2784_v27 = vld [vmem:[#allocation10 + $0x470] sm:$0xff]  ;;  %v5055_v9 = vcombine.low %v2772_v10, %v2776_v11 }
 0x48e   :  { %4393 = vmatpush1.bf16.msra.mxu1 %v4959_v44  ;;  %v2745_v44 = vld [vmem:[#allocation10 + $0x338] sm:$0xff] }
 0x48f   :  { %4475 = vmatpush1.bf16.msra.mxu0 %v4961_v45  ;;  %4394 = vmatprep.subr.bf16.mxu1 %v4968_v46  ;;  %v5015_v45 = vcombine.low %v2732_v31, %v2736_v37  ;;  %v5017_v46 = vcombine.low %v2733_v32, %v2737_v33  ;;  %v5026_v48 = vcombine.high %v2741_v42, %v2745_v44  ;;  %v2788_v31 = vld [vmem:[#allocation10 + $0x490] sm:$0xff]  ;;  %v2789_v33 = vld [vmem:[#allocation10 + $0x498] sm:$0xff] }
 0x490   :  { %4476 = vmatprep.subr.bf16.mxu0 %v4970_v47  ;;  %v5024_v47 = vcombine.high %v2740_v41, %v2744_v26  ;;  %v2792_v37 = vld [vmem:[#allocation10 + $0x4b0] sm:$0xff] }
 0x492   :  { %4395 = vmatpush1.bf16.msra.mxu1 %v4967_v53  ;;  %v2753_v53 = vld [vmem:[#allocation10 + $0x378] sm:$0xff] }
 0x493   :  { %4477 = vmatpush1.bf16.msra.mxu0 %v4969_v54  ;;  %4396 = vmatprep.subr.bf16.mxu1 %v4976_v24  ;;  %v5023_v54 = vcombine.low %v2740_v41, %v2744_v26  ;;  %v5025_v24 = vcombine.low %v2741_v42, %v2745_v44  ;;  %v5034_v55 = vcombine.high %v2749_v52, %v2753_v53  ;;  %v2796_v26 = vld [vmem:[#allocation10 + $0x4d0] sm:$0xff]  ;;  %v2797_v44 = vld [vmem:[#allocation10 + $0x4d8] sm:$0xff] }
 0x494   :  { %4478 = vmatprep.subr.bf16.mxu0 %v4978_v21  ;;  %v5032_v21 = vcombine.high %v2748_v50, %v2752_v51  ;;  %v2800_v42 = vld [vmem:[#allocation10 + $0x4f0] sm:$0xff] }
 0x496   :  { %4397 = vmatpush1.bf16.msra.mxu1 %v4975_v59  ;;  %v2761_v59 = vld [vmem:[#allocation10 + $0x3b8] sm:$0xff] }
 0x497   :  { %4479 = vmatpush1.bf16.msra.mxu0 %v4977_v61  ;;  %4398 = vmatprep.subr.bf16.mxu1 %v4984_v62  ;;  %v5031_v61 = vcombine.low %v2748_v50, %v2752_v51  ;;  %v5033_v62 = vcombine.low %v2749_v52, %v2753_v53  ;;  %v5042_v0 = vcombine.high %v2757_v58, %v2761_v59  ;;  %v2804_v50 = vld [vmem:[#allocation10 + $0x510] sm:$0xff]  ;;  %v2805_v52 = vld [vmem:[#allocation10 + $0x518] sm:$0xff] }
 0x498   :  { %4480 = vmatprep.subr.bf16.mxu0 %v4986_v63  ;;  %v5040_v63 = vcombine.high %v2756_v56, %v2760_v57  ;;  %v2808_v51 = vld [vmem:[#allocation10 + $0x530] sm:$0xff]  ;;  %v2809_v53 = vld [vmem:[#allocation10 + $0x538] sm:$0xff] }
 0x49a   :  { %4399 = vmatpush1.bf16.msra.mxu1 %v4983_v4  ;;  %v2769_v4 = vld [vmem:[#allocation10 + $0x3f8] sm:$0xff] }
 0x49b   :  { %4481 = vmatpush1.bf16.msra.mxu0 %v4985_v5  ;;  %4400 = vmatprep.subr.bf16.mxu1 %v4992_v6  ;;  %v5039_v5 = vcombine.low %v2756_v56, %v2760_v57  ;;  %v5041_v6 = vcombine.low %v2757_v58, %v2761_v59  ;;  %v5050_v8 = vcombine.high %v2765_v2, %v2769_v4  ;;  %v2816_v56 = vld [vmem:[#allocation10 + $0x570] sm:$0xff]  ;;  %v2813_v57 = vld [vmem:[#allocation10 + $0x558] sm:$0xff] }
 0x49c   :  { %4482 = vmatprep.subr.bf16.mxu0 %v4994_v7  ;;  %v5048_v7 = vcombine.high %v2764_v34, %v2768_v1  ;;  %v2817_v58 = vld [vmem:[#allocation10 + $0x578] sm:$0xff]  ;;  %v5087_v59 = vcombine.low %v2804_v50, %v2808_v51 }
 0x49e   :  { %4401 = vmatpush1.bf16.msra.mxu1 %v4991_v17  ;;  %v2777_v17 = vld [vmem:[#allocation10 + $0x438] sm:$0xff] }
 0x49f   :  { %4483 = vmatpush1.bf16.msra.mxu0 %v4993_v18  ;;  %4402 = vmatprep.subr.bf16.mxu1 %v5000_v13  ;;  %v5047_v18 = vcombine.low %v2764_v34, %v2768_v1  ;;  %v5049_v13 = vcombine.low %v2765_v2, %v2769_v4  ;;  %v5058_v22 = vcombine.high %v2773_v16, %v2777_v17  ;;  %v2824_v34 = vld [vmem:[#allocation10 + $0x5b0] sm:$0xff]  ;;  %v2821_v1 = vld [vmem:[#allocation10 + $0x598] sm:$0xff] }
 0x4a0   :  { %4484 = vmatprep.subr.bf16.mxu0 %v5002_v19  ;;  %v5056_v19 = vcombine.high %v2772_v10, %v2776_v11  ;;  %v2825_v2 = vld [vmem:[#allocation10 + $0x5b8] sm:$0xff]  ;;  %v2832_v10 = vld [vmem:[#allocation10 + $0x5f0] sm:$0xff] }
 0x4a1   :  { %v2829_v11 = vld [vmem:[#allocation10 + $0x5d8] sm:$0xff] }
 0x4a2   :  { %4403 = vmatpush1.bf16.msra.mxu1 %v4999_v28  ;;  %v2781_v28 = vld [vmem:[#allocation10 + $0x458] sm:$0xff] }
 0x4a3   :  { %4485 = vmatpush1.bf16.msra.mxu0 %v5001_v29  ;;  %4404 = vmatprep.subr.bf16.mxu1 %v5008_v23  ;;  %v2785_v29 = vld [vmem:[#allocation10 + $0x478] sm:$0xff]  ;;  %v5057_v23 = vcombine.low %v2773_v16, %v2777_v17 }
 0x4a4   :  { %4486 = vmatprep.subr.bf16.mxu0 %v5010_v30  ;;  %v5064_v30 = vcombine.high %v2780_v20, %v2784_v27  ;;  %v5066_v32 = vcombine.high %v2781_v28, %v2785_v29  ;;  %v2833_v16 = vld [vmem:[#allocation10 + $0x5f8] sm:$0xff] }
 0x4a6   :  { %4405 = vmatpush1.bf16.msra.mxu1 %v5007_v35  ;;  %v2793_v35 = vld [vmem:[#allocation10 + $0x4b8] sm:$0xff] }
 0x4a7   :  { %4487 = vmatpush1.bf16.msra.mxu0 %v5009_v36  ;;  %4406 = vmatprep.subr.bf16.mxu1 %v5016_v39  ;;  %v5063_v36 = vcombine.low %v2780_v20, %v2784_v27  ;;  %v5065_v39 = vcombine.low %v2781_v28, %v2785_v29  ;;  %v5074_v41 = vcombine.high %v2789_v33, %v2793_v35  ;;  %v2840_v20 = vld [vmem:[#allocation10 + $0x630] sm:$0xff]  ;;  %v2837_v27 = vld [vmem:[#allocation10 + $0x618] sm:$0xff] }
 0x4a8   :  { %4488 = vmatprep.subr.bf16.mxu0 %v5018_v40  ;;  %v5072_v40 = vcombine.high %v2788_v31, %v2792_v37  ;;  %v5113_v29 = vcombine.low %v2829_v11, %v2833_v16 }
 0x4aa   :  { %4407 = vmatpush1.bf16.msra.mxu1 %v5015_v45  ;;  %v2801_v45 = vld [vmem:[#allocation10 + $0x4f8] sm:$0xff] }
 0x4ab   :  { %4489 = vmatpush1.bf16.msra.mxu0 %v5017_v46  ;;  %4408 = vmatprep.subr.bf16.mxu1 %v5024_v47  ;;  %v5071_v46 = vcombine.low %v2788_v31, %v2792_v37  ;;  %v5080_v47 = vcombine.high %v2796_v26, %v2800_v42  ;;  %v2844_v31 = vld [vmem:[#allocation10 + $0x650] sm:$0xff] }
 0x4ac   :  { %4490 = vmatprep.subr.bf16.mxu0 %v5026_v48  ;;  %v5082_v48 = vcombine.high %v2797_v44, %v2801_v45  ;;  %v2848_v37 = vld [vmem:[#allocation10 + $0x670] sm:$0xff] }
 0x4ae   :  { %4409 = vmatpush1.bf16.msra.mxu1 %v5023_v54  ;;  %v5081_v54 = vcombine.low %v2797_v44, %v2801_v45  ;;  %v2857_v44 = vld [vmem:[#allocation10 + $0x6b8] sm:$0xff]  ;;  %v5127_v45 = vcombine.low %v2844_v31, %v2848_v37 }
 0x4af   :  { %4491 = vmatpush1.bf16.msra.mxu0 %v5025_v24  ;;  %4410 = vmatprep.subr.bf16.mxu1 %v5032_v21  ;;  %v5088_v24 = vcombine.high %v2804_v50, %v2808_v51  ;;  %v5090_v21 = vcombine.high %v2805_v52, %v2809_v53  ;;  %v2864_v50 = vld [vmem:[#allocation10 + $0x6f0] sm:$0xff]  ;;  %v2861_v51 = vld [vmem:[#allocation10 + $0x6d8] sm:$0xff] }
 0x4b0   :  { %4492 = vmatprep.subr.bf16.mxu0 %v5034_v55  ;;  %v2812_v55 = vld [vmem:[#allocation10 + $0x550] sm:$0xff] }
 0x4b1   :  { %v5095_v4 = vcombine.low %v2812_v55, %v2816_v56 }
 0x4b2   :  { %4411 = vmatpush1.bf16.msra.mxu1 %v5031_v61  ;;  %v5089_v61 = vcombine.low %v2805_v52, %v2809_v53  ;;  %v2865_v52 = vld [vmem:[#allocation10 + $0x6f8] sm:$0xff] }
 0x4b3   :  { %4493 = vmatpush1.bf16.msra.mxu0 %v5033_v62  ;;  %4412 = vmatprep.subr.bf16.mxu1 %v5040_v63  ;;  %v5096_v62 = vcombine.high %v2812_v55, %v2816_v56  ;;  %v5098_v63 = vcombine.high %v2813_v57, %v2817_v58  ;;  %v2872_v55 = vld [vmem:[#allocation10 + $0x730] sm:$0xff]  ;;  %v2869_v56 = vld [vmem:[#allocation10 + $0x718] sm:$0xff] }
 0x4b4   :  { %4494 = vmatprep.subr.bf16.mxu0 %v5042_v0  ;;  %v2820_v0 = vld [vmem:[#allocation10 + $0x590] sm:$0xff] }
 0x4b5   :  { %v5103_v17 = vcombine.low %v2820_v0, %v2824_v34 }
 0x4b6   :  { %4413 = vmatpush1.bf16.msra.mxu1 %v5039_v5  ;;  %v5097_v5 = vcombine.low %v2813_v57, %v2817_v58  ;;  %v2873_v57 = vld [vmem:[#allocation10 + $0x738] sm:$0xff] }
 0x4b7   :  { %4495 = vmatpush1.bf16.msra.mxu0 %v5041_v6  ;;  %4414 = vmatprep.subr.bf16.mxu1 %v5048_v7  ;;  %v5104_v6 = vcombine.high %v2820_v0, %v2824_v34  ;;  %v5106_v7 = vcombine.high %v2821_v1, %v2825_v2  ;;  %v2880_v0 = vld [vmem:[#allocation10 + $0x770] sm:$0xff]  ;;  %v2877_v34 = vld [vmem:[#allocation10 + $0x758] sm:$0xff] }
 0x4b8   :  { %4496 = vmatprep.subr.bf16.mxu0 %v5050_v8  ;;  %v2828_v8 = vld [vmem:[#allocation10 + $0x5d0] sm:$0xff] }
 0x4b9   :  { %v5111_v28 = vcombine.low %v2828_v8, %v2832_v10 }
 0x4ba   :  { %4415 = vmatpush1.bf16.msra.mxu1 %v5047_v18  ;;  %v5105_v18 = vcombine.low %v2821_v1, %v2825_v2  ;;  %v2881_v1 = vld [vmem:[#allocation10 + $0x778] sm:$0xff] }
 0x4bb   :  { %4497 = vmatpush1.bf16.msra.mxu0 %v5049_v13  ;;  %4425 = vmatprep.subr.bf16.mxu1 %v5056_v19  ;;  %v5112_v13 = vcombine.high %v2828_v8, %v2832_v10  ;;  %v5114_v19 = vcombine.high %v2829_v11, %v2833_v16  ;;  %v2888_v8 = vld [vmem:[#allocation10 + $0x7b0] sm:$0xff]  ;;  %v2885_v10 = vld [vmem:[#allocation10 + $0x798] sm:$0xff] }
 0x4bc   :  { %4507 = vmatprep.subr.bf16.mxu0 %v5058_v22  ;;  %v2836_v22 = vld [vmem:[#allocation10 + $0x610] sm:$0xff]  ;;  %v2889_v11 = vld [vmem:[#allocation10 + $0x7b8] sm:$0xff] }
 0x4bd   :  { %4417 = vmatmul.mubr.bf16.vlgmr.msra.gmra.mrb[16].mxu1 %v6193_v38 }
 0x4be   :  { %4499 = vmatmul.mubr.bf16.vlgmr.msra.gmra.mrb[12].mxu0 %v6193_v38  ;;  %4426 = vmatpush1.bf16.msra.mxu1 %v5055_v9  ;;  %v5073_v38 = vcombine.low %v2789_v33, %v2793_v35  ;;  %v2841_v9 = vld [vmem:[#allocation10 + $0x638] sm:$0xff]  ;;  %v5119_v35 = vcombine.low %v2836_v22, %v2840_v20 }
 0x4bf   :  { %4457 = vmatprep.mubr.bf16.mxu1 %v6203_v25  ;;  %4508 = vmatpush1.bf16.msra.mxu0 %v5057_v23  ;;  %v5120_v23 = vcombine.high %v2836_v22, %v2840_v20  ;;  %v2849_v33 = vld [vmem:[#allocation10 + $0x678] sm:$0xff]  ;;  %v2896_v22 = vld [vmem:[#allocation10 + $0x7f0] sm:$0xff] }
 0x4c0   :  { %4539 = vmatprep.mubr.bf16.mxu0 %v6203_v25  ;;  %4427 = vmatprep.subr.bf16.mxu1 %v5064_v30  ;;  %v5079_v25 = vcombine.low %v2796_v26, %v2800_v42  ;;  %v5122_v30 = vcombine.high %v2837_v27, %v2841_v9  ;;  %v2856_v26 = vld [vmem:[#allocation10 + $0x6b0] sm:$0xff]  ;;  %v2853_v42 = vld [vmem:[#allocation10 + $0x698] sm:$0xff] }
 0x4c1   :  { %4509 = vmatprep.subr.bf16.mxu0 %v5066_v32  ;;  %v2845_v32 = vld [vmem:[#allocation10 + $0x658] sm:$0xff] }
 0x4c2   :  { %4428 = vmatpush1.bf16.msra.mxu1 %v5063_v36  ;;  %v5121_v36 = vcombine.low %v2837_v27, %v2841_v9  ;;  %v2893_v20 = vld [vmem:[#allocation10 + $0x7d8] sm:$0xff] }
 0x4c3   :  { %4510 = vmatpush1.bf16.msra.mxu0 %v5065_v39  ;;  %4429 = vmatprep.subr.bf16.mxu1 %v5072_v40  ;;  %v5128_v39 = vcombine.high %v2844_v31, %v2848_v37  ;;  %v5130_v40 = vcombine.high %v2845_v32, %v2849_v33  ;;  %v2897_v27 = vld [vmem:[#allocation10 + $0x7f8] sm:$0xff]  ;;  %v2898_v37 = vld [vmem:[%s6258_s9] sm:$0xff]  ;;  %s5979_s9 = smov [#allocation11]  }
 0x4c4   :  { %4511 = vmatprep.subr.bf16.mxu0 %v5074_v41  ;;  %v2852_v41 = vld [vmem:[#allocation10 + $0x690] sm:$0xff]  ;;  %v5177_v31 = vcombine.low %v2893_v20, %v2897_v27  ;;  %s4620_s26 = sshll.u32 %s5979_s9, 4  ;;  %s4621_s26 = int_to_ptr.vmem [resolvable:$true] %s4620_s26 }
 0x4c5   :  { %v5135_v53 = vcombine.low %v2852_v41, %v2856_v26  ;;  %s5938_s29 = scalar_lea.vmem %s4621_s26, 256  ;;  %p5943_p13 = scmp.lt.s32.totalorder %s4621_s26, %s4621_s26 }
 0x4c6   :  { %4430 = vmatpush1.bf16.msra.mxu1 %v5071_v46  ;;  %v5129_v46 = vcombine.low %v2845_v32, %v2849_v33  ;;  %v2903_v32 = vrot.slane %v2898_v37, %v6142_v12  ;;  %v2911_v33 = vrot.slane %v2898_v37, %v6164_v60  ;;  %p5939_p12 = scmp.ne.s32.totalorder %s4621_s26, %s5938_s29  ;;  %p5944_p0 = scmp.lt.s32.totalorder %s5938_s29, %s5938_s29 }
 0x4c7   :  { %4512 = vmatpush1.bf16.msra.mxu0 %v5073_v38  ;;  %4431 = vmatprep.subr.bf16.mxu1 %v5080_v47  ;;  %v5136_v38 = vcombine.high %v2852_v41, %v2856_v26  ;;  %v5138_v47 = vcombine.high %v2853_v42, %v2857_v44 }
 0x4c8   :  { %4513 = vmatprep.subr.bf16.mxu0 %v5082_v48  ;;  %v2860_v48 = vld [vmem:[#allocation10 + $0x6d0] sm:$0xff]  ;;  %p5945_p1 = por %p5944_p0, %p5943_p13 }
 0x4c9   :  { %v5143_v58 = vcombine.low %v2860_v48, %v2864_v50 }
 0x4ca   :  { %4432 = vmatpush1.bf16.msra.mxu1 %v5079_v25  ;;  %v5137_v25 = vcombine.low %v2853_v42, %v2857_v44  ;;  %p5946_p2 = pnand %p5945_p1, %p5939_p12 }
 0x4cb   :  { %4514 = vmatpush1.bf16.msra.mxu0 %v5081_v54  ;;  %4433 = vmatprep.subr.bf16.mxu1 %v5088_v24  ;;  %v5144_v54 = vcombine.high %v2860_v48, %v2864_v50  ;;  %v5146_v24 = vcombine.high %v2861_v51, %v2865_v52 }
 0x4cc   :  { %4515 = vmatprep.subr.bf16.mxu0 %v5090_v21  ;;  %v2868_v21 = vld [vmem:[#allocation10 + $0x710] sm:$0xff] }
 0x4cd   :  { %v5151_v2 = vcombine.low %v2868_v21, %v2872_v55 }
 0x4ce   :  { %4434 = vmatpush1.bf16.msra.mxu1 %v5087_v59  ;;  %v5145_v59 = vcombine.low %v2861_v51, %v2865_v52 }
 0x4cf   :  { %4516 = vmatpush1.bf16.msra.mxu0 %v5089_v61  ;;  %4435 = vmatprep.subr.bf16.mxu1 %v5096_v62  ;;  %v5152_v61 = vcombine.high %v2868_v21, %v2872_v55  ;;  %v5154_v62 = vcombine.high %v2869_v56, %v2873_v57  ;;  %v2922_v21 = vsub.s32 5, %v6109_v43  ;;  %v2930_v55 = vsub.s32 7, %v6109_v43 }
 0x4d0   :  { %4517 = vmatprep.subr.bf16.mxu0 %v5098_v63  ;;  %v2876_v63 = vld [vmem:[#allocation10 + $0x750] sm:$0xff] }
 0x4d1   :  { %v5159_v16 = vcombine.low %v2876_v63, %v2880_v0 }
 0x4d2   :  { %4436 = vmatpush1.bf16.msra.mxu1 %v5095_v4  ;;  %v5153_v4 = vcombine.low %v2869_v56, %v2873_v57 }
 0x4d3   :  { %4518 = vmatpush1.bf16.msra.mxu0 %v5097_v5  ;;  %4437 = vmatprep.subr.bf16.mxu1 %v5104_v6  ;;  %v5160_v5 = vcombine.high %v2876_v63, %v2880_v0  ;;  %v5162_v6 = vcombine.high %v2877_v34, %v2881_v1 }
 0x4d4   :  { %4519 = vmatprep.subr.bf16.mxu0 %v5106_v7  ;;  %v2884_v7 = vld [vmem:[#allocation10 + $0x790] sm:$0xff] }
 0x4d5   :  { %v5167_v9 = vcombine.low %v2884_v7, %v2888_v8 }
 0x4d6   :  { %4438 = vmatpush1.bf16.msra.mxu1 %v5103_v17  ;;  %v5161_v17 = vcombine.low %v2877_v34, %v2881_v1 }
 0x4d7   :  { %4520 = vmatpush1.bf16.msra.mxu0 %v5105_v18  ;;  %4439 = vmatprep.subr.bf16.mxu1 %v5112_v13  ;;  %v5168_v18 = vcombine.high %v2884_v7, %v2888_v8  ;;  %v5170_v13 = vcombine.high %v2885_v10, %v2889_v11 }
 0x4d8   :  { %4521 = vmatprep.subr.bf16.mxu0 %v5114_v19  ;;  %v2892_v19 = vld [vmem:[#allocation10 + $0x7d0] sm:$0xff] }
 0x4da   :  { %4440 = vmatpush1.bf16.msra.mxu1 %v5111_v28  ;;  %v5169_v28 = vcombine.low %v2885_v10, %v2889_v11 }
 0x4db   :  { %4522 = vmatpush1.bf16.msra.mxu0 %v5113_v29  ;;  %4441 = vmatprep.subr.bf16.mxu1 %v5120_v23  ;;  %v5176_v29 = vcombine.high %v2892_v19, %v2896_v22  ;;  %v5178_v23 = vcombine.high %v2893_v20, %v2897_v27 }
 0x4dc   :  { %4523 = vmatprep.subr.bf16.mxu0 %v5122_v30  ;;  %v5175_v30 = vcombine.low %v2892_v19, %v2896_v22 }
 0x4de   :  { %4442 = vmatpush1.bf16.msra.mxu1 %v5119_v35  ;;  %v2907_v35 = vrot.slane %v2898_v37, %v6150_v14 }
 0x4df   :  { %4524 = vmatpush1.bf16.msra.mxu0 %v5121_v36  ;;  %4443 = vmatprep.subr.bf16.mxu1 %v5128_v39  ;;  %v2915_v36 = vrot.slane %v2898_v37, %v6153_v15 }
 0x4e0   :  { %4525 = vmatprep.subr.bf16.mxu0 %v5130_v40 }
 0x4e2   :  { %4444 = vmatpush1.bf16.msra.mxu1 %v5127_v45 }
 0x4e3   :  { %4526 = vmatpush1.bf16.msra.mxu0 %v5129_v46  ;;  %4445 = vmatprep.subr.bf16.mxu1 %v5136_v38 }
 0x4e4   :  { %4527 = vmatprep.subr.bf16.mxu0 %v5138_v47 }
 0x4e6   :  { %4446 = vmatpush1.bf16.msra.mxu1 %v5135_v53 }
 0x4e7   :  { %4528 = vmatpush1.bf16.msra.mxu0 %v5137_v25  ;;  %4447 = vmatprep.subr.bf16.mxu1 %v5144_v54  ;;  %v2918_v54 = vsub.s32 4, %v6109_v43 }
 0x4e8   :  { %4529 = vmatprep.subr.bf16.mxu0 %v5146_v24  ;;  %v2926_v24 = vsub.s32 6, %v6109_v43 }
 0x4e9   :  { %v2919_v56 = vrot.slane %v2898_v37, %v2918_v54 }
 0x4ea   :  { %4448 = vmatpush1.bf16.msra.mxu1 %v5143_v58  ;;  %v2927_v57 = vrot.slane %v2898_v37, %v2926_v24  ;;  %v2923_v58 = vrot.slane %v2898_v37, %v2922_v21 }
 0x4eb   :  { %4530 = vmatpush1.bf16.msra.mxu0 %v5145_v59  ;;  %4449 = vmatprep.subr.bf16.mxu1 %v5152_v61  ;;  %v2931_v59 = vrot.slane %v2898_v37, %v2930_v55 }
 0x4ec   :  { %4531 = vmatprep.subr.bf16.mxu0 %v5154_v62 }
 0x4ee   :  { %4450 = vmatpush1.bf16.msra.mxu1 %v5151_v2 }
 0x4ef   :  { %4532 = vmatpush1.bf16.msra.mxu0 %v5153_v4  ;;  %4451 = vmatprep.subr.bf16.mxu1 %v5160_v5 }
 0x4f0   :  { %4533 = vmatprep.subr.bf16.mxu0 %v5162_v6 }
 0x4f2   :  { %4452 = vmatpush1.bf16.msra.mxu1 %v5159_v16 }
 0x4f3   :  { %4534 = vmatpush1.bf16.msra.mxu0 %v5161_v17  ;;  %4453 = vmatprep.subr.bf16.mxu1 %v5168_v18 }
 0x4f4   :  { %4535 = vmatprep.subr.bf16.mxu0 %v5170_v13 }
 0x4f6   :  { %4454 = vmatpush1.bf16.msra.mxu1 %v5167_v9 }
 0x4f7   :  { %4536 = vmatpush1.bf16.msra.mxu0 %v5169_v28  ;;  %4455 = vmatprep.subr.bf16.mxu1 %v5176_v29 }
 0x4f8   :  { %4537 = vmatprep.subr.bf16.mxu0 %v5178_v23 }
 0x4fa   :  { %4456 = vmatpush1.bf16.msra.mxu1 %v5175_v30 }
 0x4fb   :  { %4538 = vmatpush1.bf16.msra.mxu0 %v5177_v31 }
 0x4fd   :  { %4458 = vmatmul.mubr.bf16.vlgmr.msra.gmra.mrb[16].mxu1 %v6210_v3 }
 0x4fe   :  { %4540 = vmatmul.mubr.bf16.vlgmr.msra.gmra.mrb[12].mxu0 %v6210_v3 }
 0x550   :  { %v4295_v39 = vpop.f32.mrb[12].mxu1  ;;  %v4377_v40 = vpop.f32.mrb[8].mxu0 }
 0x551   :  { %v5314_v41 = vadd.f32 %v4295_v39, %v2903_v32  ;;  %v5316_v26 = vadd.f32 %v4377_v40, %v2911_v33  ;;  %v4297_v42 = vpop.f32.mrb[13].mxu1  ;;  %v4379_v44 = vpop.f32.mrb[9].mxu0 }
 0x552   :  { %v5315_v45 = vadd.f32 %v4297_v42, %v2907_v35  ;;  %v5317_v3 = vadd.f32 %v4379_v44, %v2915_v36  ;;  %v4299_v46 = vpop.f32.mrb[14].mxu1  ;;  %v4381_v38 = vpop.f32.mrb[10].mxu0 }
 0x553   :  { %5812 = vtanh.f32 %v5314_v41  ;;  %v4300_v47 = vpop.f32.mrb[15].mxu1  ;;  %v4382_v48 = vpop.f32.mrb[11].mxu0 }
 0x554   :  { %5814 = vtanh.f32 %v5316_v26 }
 0x555   :  { %5816 = vtanh.f32 %v5315_v45 }
 0x556   :  { %5818 = vtanh.f32 %v5317_v3 }
 0x55d   :  { %v5813_v12 = vpop.eup %5812 }
 0x55e   :  { %v5815_v14 = vpop.eup %5814 }
 0x55f   :  { %v5817_v60 = vpop.eup %5816 }
 0x560   :  { %v5819_v15 = vpop.eup %5818  ;;  %v4564_v50 = vcombine.low %v5813_v12, %v5817_v60 }
 0x561   :  { %v4565_v51 = vcombine.low %v5815_v14, %v5819_v15 }
 0x562   :  { %v4572_v52 = vrot.slane %v4564_v50, %v6112_v49 }
 0x563   :  { %v4579_v53 = vrot.slane %v4565_v51, %v6112_v49 }
 0x565   :  { %v4580_v25 = vcombine.low %v4572_v52, %v4579_v53 }
 0x567   :  { %4600 = vst [vmem:[#allocation11] sm:$0xff] %v4580_v25 }
 0x5d0   :  { %v4459_v61 = vpop.f32.mrb[16].mxu1 }
 0x5d1   :  { %v5318_v62 = vadd.f32 %v4459_v61, %v2919_v56  ;;  %v4541_v63 = vpop.f32.mrb[12].mxu0  ;;  %v4461_v0 = vpop.f32.mrb[17].mxu1 }
 0x5d2   :  { %v5320_v34 = vadd.f32 %v4541_v63, %v2927_v57  ;;  %v5319_v1 = vadd.f32 %v4461_v0, %v2923_v58  ;;  %v4543_v2 = vpop.f32.mrb[13].mxu0  ;;  %v4463_v4 = vpop.f32.mrb[18].mxu1 }
 0x5d3   :  { %5820 = vtanh.f32 %v5318_v62  ;;  %v5321_v5 = vadd.f32 %v4543_v2, %v2931_v59  ;;  %v4545_v6 = vpop.f32.mrb[14].mxu0  ;;  %v4464_v7 = vpop.f32.mrb[19].mxu1 }
 0x5d4   :  { %5822 = vtanh.f32 %v5320_v34  ;;  %v4546_v8 = vpop.f32.mrb[15].mxu0 }
 0x5d5   :  { %5824 = vtanh.f32 %v5319_v1 }
 0x5d6   :  { %5826 = vtanh.f32 %v5321_v5 }
 0x5dd   :  { %v5821_v43 = vpop.eup %5820 }
 0x5de   :  { %v5823_v10 = vpop.eup %5822 }
 0x5df   :  { %v5825_v11 = vpop.eup %5824 }
 0x5e0   :  { %v5827_v16 = vpop.eup %5826  ;;  %v4581_v17 = vcombine.low %v5821_v43, %v5825_v11 }
 0x5e1   :  { %v4582_v18 = vcombine.low %v5823_v10, %v5827_v16 }
 0x5e2   :  { %v4589_v13 = vrot.slane %v4581_v17, %v6112_v49 }
 0x5e3   :  { %v4596_v19 = vrot.slane %v4582_v18, %v6112_v49 }
 0x5e5   :  { %v4597_v22 = vcombine.low %v4589_v13, %v4596_v19 }
 0x5e7   :  { %4601 = vst [vmem:[#allocation11 + $0x8] sm:$0xff] %v4597_v22 }
 0x5e8   :  { %5949 = shalt.err (!%p5946_p2)
}
 0x5e9   :  { %s5950_s30 = scalar_lea.hbm %s6259_s10, 256 }
 0x5ea   :  { %p5951_p3 = scmp.ne.s32.totalorder %s6259_s10, %s5950_s30  ;;  %p5954_p4 = scmp.lt.u32.totalorder %s5950_s30, %s6259_s10 }
 0x5ec   :  { %p5956_p5 = pnand %p5954_p4, %p5951_p3 }
 0x5ee   :  { %5959 = shalt.err (!%p5956_p5)
}
 0x5ef   :  { %4623 = dma.vmem_to_hbm [thread:$0]  %s4621_s26, 256, %s6259_s10, [#allocation4]  }
 0x5f0   :  { %5966 = dma.done.wait [#allocation4], 256  }
 0x5f1   :  { %5967 = vsyncadd [#allocation4], 4294967040 }
 0x5f2   :  { %4631 = vsyncpa [#allocation3], 1 }
 0x5f3   :  { %4632 = vsyncpa [#allocation6], 1 }
 0x5f4   :  { %4633 = vsyncpa [#allocation9], 1 }
 0x5f5   :  { %4634 = vsyncpa [#allocation4], 1 }

</bundles_post_ra>
